<compile_context>
chip_gen: v7x
topology: tpu7x:2x2x1
jax: 0.10.0
libtpu: 0.0.40
codegen_flags: <defaults>
</compile_context>

<pallas_src>
import functools

import jax
import jax.numpy as jnp
from jax.experimental import pallas as pl
from jax.experimental.pallas import tpu as pltpu

_LANE = 128


def _round_up(x, m):
    return (x + m - 1) // m * m


def _rgcn_fused_kernel(a_ref, feat_ref,
                       w1_ref, wl1_ref, b1_ref, g1_ref, be1_ref,
                       w2_ref, wl2_ref, b2_ref, g2_ref, be2_ref,
                       w3_ref, wl3_ref, b3_ref, g3_ref, be3_ref,
                       out_ref, *, num_rels, n_pad, d_out_true, apply_relu,
                       eps=1e-5):
    """All three RelGraphConv layers fused; everything stays resident in VMEM."""
    a = a_ref[...]  # (R * n_pad, n_pad) bf16, relation-stacked adjacency

    def layer(hb, w_ref, wl_ref, b_ref, g_ref, be_ref, d_true, relu):
        # hb: (n_pad, d_in_pad) bf16
        d_out_pad = w_ref.shape[2]

        # One big MXU matmul over all relations: (R*n_pad, n_pad) @ (n_pad, d_in_pad).
        # Cast the whole result to bf16 once (feeds the per-relation weight matmuls).
        ah = jnp.dot(a, hb, preferred_element_type=jnp.float32).astype(jnp.bfloat16)

        # Per-relation weight matmuls, accumulated in f32 (static R, unrolled).
        agg = jnp.zeros((n_pad, d_out_pad), jnp.float32)
        for r in range(num_rels):
            agg = agg + jnp.dot(ah[r * n_pad:(r + 1) * n_pad, :], w_ref[r],
                                preferred_element_type=jnp.float32)

        # LayerNorm over the true (unpadded) feature width; padded lanes of agg are
        # exactly zero (weights are zero-padded) so only the variance needs a mask.
        lane = jax.lax.broadcasted_iota(jnp.int32, agg.shape, 1)
        valid = lane < d_true
        inv_d = 1.0 / d_true
        mean = jnp.sum(agg, axis=-1, keepdims=True) * inv_d
        cen = jnp.where(valid, agg - mean, 0.0)
        var = jnp.sum(cen * cen, axis=-1, keepdims=True) * inv_d
        h = cen * jax.lax.rsqrt(var + eps)                 # rsqrt -> EUP slot
        h = h * g_ref[...] + be_ref[...]                   # affine
        h = h + b_ref[...]                                 # bias
        h = h + jnp.dot(hb, wl_ref[...],                   # self loop (post-LN, per DGL)
                        preferred_element_type=jnp.float32)
        if relu:
            h = jnp.maximum(h, 0.0)
        # TODO(synk): dropout is identity here (inference mode); training-mode dropout
        # would need pltpu.prng_random_bits + masking.
        return h

    h = layer(feat_ref[...], w1_ref, wl1_ref, b1_ref, g1_ref, be1_ref,
              d_out_true[0], apply_relu[0])
    h = layer(h.astype(jnp.bfloat16), w2_ref, wl2_ref, b2_ref, g2_ref, be2_ref,
              d_out_true[1], apply_relu[1])
    h = layer(h.astype(jnp.bfloat16), w3_ref, wl3_ref, b3_ref, g3_ref, be3_ref,
              d_out_true[2], apply_relu[2])
    out_ref[...] = h.astype(out_ref.dtype)


def _prep_layer(p, d_in_pad, d_out_pad):
    """Zero-pad layer params to lane-dense (128) feature dims; cast weights to bf16."""
    w = p["w"]
    w = jnp.pad(w, ((0, 0), (0, d_in_pad - w.shape[1]),
                    (0, d_out_pad - w.shape[2]))).astype(jnp.bfloat16)
    wl = jnp.pad(p["w_loop"], ((0, d_in_pad - p["w_loop"].shape[0]),
                               (0, d_out_pad - p["w_loop"].shape[1]))
                 ).astype(jnp.bfloat16)

    def vec(v):
        return jnp.pad(v, ((0, 0), (0, d_out_pad - v.shape[1]))).astype(jnp.float32)

    return w, wl, vec(p["bias"]), vec(p["gamma"]), vec(p["beta"])


def rgcn_encoder(adj, feat, params):
    """Three stacked RelGraphConv layers (ReLU, ReLU, none) in a single pallas_call.

    adj:  (R, N, N) float, adj[r, dst, src] = edge multiplicity of relation r.
    feat: (N, d_in) float node features.
    """
    R, N, _ = adj.shape
    in_dim = feat.shape[1]
    hid_dim = params["in_layer"]["w"].shape[2]
    out_dim = params["out_layer"]["w"].shape[2]

    # Pad the node dim to 128 too: the adjacency's last (src) dim becomes lane-dense
    # (unmasked vld) and every MXU contraction dim is a 128-multiple.
    n_pad = _round_up(N, _LANE)
    d_in_p = _round_up(in_dim, _LANE)
    d_hid_p = _round_up(hid_dim, _LANE)
    d_out_p = _round_up(out_dim, _LANE)

    feat_p = jnp.pad(feat, ((0, n_pad - N), (0, d_in_p - in_dim))
                     ).astype(jnp.bfloat16)
    # Stack relations along the dst axis: (R*N_pad, N_pad) so aggregation over all
    # relations is one matmul inside the kernel.
    a_flat = jnp.pad(adj, ((0, 0), (0, n_pad - N), (0, n_pad - N))
                     ).astype(jnp.bfloat16).reshape(R * n_pad, n_pad)

    l1 = _prep_layer(params["in_layer"], d_in_p, d_hid_p)
    l2 = _prep_layer(params["hid_layer"], d_hid_p, d_hid_p)
    l3 = _prep_layer(params["out_layer"], d_hid_p, d_out_p)

    kernel = functools.partial(
        _rgcn_fused_kernel,
        num_rels=R, n_pad=n_pad,
        d_out_true=(hid_dim, hid_dim, out_dim),
        apply_relu=(True, True, False))

    n_inputs = 2 + 3 * 5
    out = pl.pallas_call(
        kernel,
        out_shape=jax.ShapeDtypeStruct((n_pad, d_out_p), jnp.float32),
        in_specs=[pl.BlockSpec(memory_space=pltpu.MemorySpace.VMEM)] * n_inputs,
        out_specs=pl.BlockSpec(memory_space=pltpu.MemorySpace.VMEM),
    )(a_flat, feat_p, *l1, *l2, *l3)

    return out[:N, :out_dim]


def model_forward(adj, feat, params, node_mask, edge_mask):
    """Model.forward with do_train=True: Pallas RGCN encoder + node/edge heads."""
    h = rgcn_encoder(adj, feat, params["rgcn"])
    # The predicator heads are data-dependent row gathers feeding tiny Linear layers;
    # negligible next to the encoder, left to plain XLA.
    node_logits = h[node_mask] @ params["node_w"].T + params["node_b"]
    pair = jnp.concatenate([h[edge_mask[:, 0]], h[edge_mask[:, 1]]], axis=-1)
    edge_logits = pair @ params["edge_w"].T + params["edge_b"]
    return node_logits, edge_logits


def init_layer_params(key, d_in, d_out, num_rels):
    k1, k2 = jax.random.split(key)
    return {
        "w": 0.1 * jax.random.normal(k1, (num_rels, d_in, d_out), jnp.float32),
        "w_loop": 0.1 * jax.random.normal(k2, (d_in, d_out), jnp.float32),
        "bias": jnp.zeros((1, d_out), jnp.float32),
        "gamma": jnp.ones((1, d_out), jnp.float32),
        "beta": jnp.zeros((1, d_out), jnp.float32),
    }


if __name__ == "__main__":
    key = jax.random.PRNGKey(0)

    # Small synthetic graph / dims.
    in_dim, hid_dim, out_dim = 16, 32, 16
    num_rels = 4
    num_nodes = 8
    num_edges = 24

    keys = jax.random.split(key, 10)

    feat = jax.random.normal(keys[0], (num_nodes, in_dim), jnp.float32)
    src = jax.random.randint(keys[1], (num_edges,), 0, num_nodes)
    dst = jax.random.randint(keys[2], (num_edges,), 0, num_nodes)
    etypes = jax.random.randint(keys[3], (num_edges,), 0, num_rels)

    # Densify the graph: adj[r, dst, src] = number of (src -> dst) edges of rel r.
    adj = jnp.zeros((num_rels, num_nodes, num_nodes), jnp.float32)
    adj = adj.at[etypes, dst, src].add(1.0)

    params = {
        "rgcn": {
            "in_layer": init_layer_params(keys[4], in_dim, hid_dim, num_rels),
            "hid_layer": init_layer_params(keys[5], hid_dim, hid_dim, num_rels),
            "out_layer": init_layer_params(keys[6], hid_dim, out_dim, num_rels),
        },
        "node_w": 0.1 * jax.random.normal(keys[7], (num_nodes, out_dim), jnp.float32),
        "node_b": jnp.zeros((num_nodes,), jnp.float32),
        "edge_w": 0.1 * jax.random.normal(keys[8], (num_rels + 1, 2 * out_dim),
                                          jnp.float32),
        "edge_b": jnp.zeros((num_rels + 1,), jnp.float32),
    }

    node_mask = jnp.array([0, 2, 5, 7], dtype=jnp.int32)
    edge_mask = jnp.stack([src[:6], dst[:6], etypes[:6]], axis=1)

    node_logits, edge_logits = jax.jit(model_forward)(
        adj, feat, params, node_mask, edge_mask)
    jax.block_until_ready((node_logits, edge_logits))
    assert node_logits.shape == (node_mask.shape[0], num_nodes)
    assert edge_logits.shape == (edge_mask.shape[0], num_rels + 1)

    h = jax.jit(rgcn_encoder)(adj, feat, params["rgcn"])
    jax.block_until_ready(h)
    assert h.shape == (num_nodes, out_dim)

    print("KERNEL_OK")
</pallas_src>

<mosaic_0001>
module attributes {stable_mosaic.version = 11 : i64} {
  func.func @_rgcn_fused_kernel(%arg0: memref<512x128xbf16, #tpu.memory_space<vmem>>, %arg1: memref<128x128xbf16, #tpu.memory_space<vmem>>, %arg2: memref<4x128x128xbf16, #tpu.memory_space<vmem>>, %arg3: memref<128x128xbf16, #tpu.memory_space<vmem>>, %arg4: memref<1x128xf32, #tpu.memory_space<vmem>>, %arg5: memref<1x128xf32, #tpu.memory_space<vmem>>, %arg6: memref<1x128xf32, #tpu.memory_space<vmem>>, %arg7: memref<4x128x128xbf16, #tpu.memory_space<vmem>>, %arg8: memref<128x128xbf16, #tpu.memory_space<vmem>>, %arg9: memref<1x128xf32, #tpu.memory_space<vmem>>, %arg10: memref<1x128xf32, #tpu.memory_space<vmem>>, %arg11: memref<1x128xf32, #tpu.memory_space<vmem>>, %arg12: memref<4x128x128xbf16, #tpu.memory_space<vmem>>, %arg13: memref<128x128xbf16, #tpu.memory_space<vmem>>, %arg14: memref<1x128xf32, #tpu.memory_space<vmem>>, %arg15: memref<1x128xf32, #tpu.memory_space<vmem>>, %arg16: memref<1x128xf32, #tpu.memory_space<vmem>>, %arg17: memref<128x128xf32, #tpu.memory_space<vmem>>) attributes {dimension_semantics = [], scalar_prefetch = 0 : i64, scratch_operands = 0 : i64, tpu.core_type = #tpu.core_type<tc>} {
    %c0 = arith.constant 0 : index
    %c0_0 = arith.constant 0 : index
    %0 = vector.load %arg0[%c0, %c0_0] : memref<512x128xbf16, #tpu.memory_space<vmem>>, vector<512x128xbf16>
    %c0_1 = arith.constant 0 : index
    %c0_2 = arith.constant 0 : index
    %1 = vector.load %arg1[%c0_1, %c0_2] : memref<128x128xbf16, #tpu.memory_space<vmem>>, vector<128x128xbf16>
    %cst = arith.constant dense<0.000000e+00> : vector<512x128xf32>
    %2 = tpu.matmul %0, %1, %cst {dimension_numbers = #tpu.dot_dimension_numbers<[1], [0], [0], [1], [0, 0, 1, 1], [], []>} : vector<512x128xbf16>, vector<128x128xbf16>, vector<512x128xf32> -> vector<512x128xf32>
    %3 = arith.truncf %2 : vector<512x128xf32> to vector<512x128xbf16>
    %cst_3 = arith.constant 0.000000e+00 : f32
    %4 = vector.broadcast %cst_3 : f32 to vector<128x128xf32>
    %5 = vector.extract_strided_slice %3 {offsets = [0, 0], sizes = [128, 128], strides = [1, 1]} : vector<512x128xbf16> to vector<128x128xbf16>
    %c0_4 = arith.constant 0 : index
    %c0_5 = arith.constant 0 : index
    %c0_6 = arith.constant 0 : index
    %6 = vector.load %arg2[%c0_4, %c0_5, %c0_6] : memref<4x128x128xbf16, #tpu.memory_space<vmem>>, vector<1x128x128xbf16>
    %7 = vector.shape_cast %6 : vector<1x128x128xbf16> to vector<128x128xbf16>
    %cst_7 = arith.constant dense<0.000000e+00> : vector<128x128xf32>
    %8 = tpu.matmul %5, %7, %cst_7 {dimension_numbers = #tpu.dot_dimension_numbers<[1], [0], [0], [1], [0, 0, 1, 1], [], []>} : vector<128x128xbf16>, vector<128x128xbf16>, vector<128x128xf32> -> vector<128x128xf32>
    %9 = arith.addf %4, %8 : vector<128x128xf32>
    %10 = vector.extract_strided_slice %3 {offsets = [128, 0], sizes = [128, 128], strides = [1, 1]} : vector<512x128xbf16> to vector<128x128xbf16>
    %c1 = arith.constant 1 : index
    %c0_8 = arith.constant 0 : index
    %c0_9 = arith.constant 0 : index
    %11 = vector.load %arg2[%c1, %c0_8, %c0_9] : memref<4x128x128xbf16, #tpu.memory_space<vmem>>, vector<1x128x128xbf16>
    %12 = vector.shape_cast %11 : vector<1x128x128xbf16> to vector<128x128xbf16>
    %cst_10 = arith.constant dense<0.000000e+00> : vector<128x128xf32>
    %13 = tpu.matmul %10, %12, %cst_10 {dimension_numbers = #tpu.dot_dimension_numbers<[1], [0], [0], [1], [0, 0, 1, 1], [], []>} : vector<128x128xbf16>, vector<128x128xbf16>, vector<128x128xf32> -> vector<128x128xf32>
    %14 = arith.addf %9, %13 : vector<128x128xf32>
    %15 = vector.extract_strided_slice %3 {offsets = [256, 0], sizes = [128, 128], strides = [1, 1]} : vector<512x128xbf16> to vector<128x128xbf16>
    %c2 = arith.constant 2 : index
    %c0_11 = arith.constant 0 : index
    %c0_12 = arith.constant 0 : index
    %16 = vector.load %arg2[%c2, %c0_11, %c0_12] : memref<4x128x128xbf16, #tpu.memory_space<vmem>>, vector<1x128x128xbf16>
    %17 = vector.shape_cast %16 : vector<1x128x128xbf16> to vector<128x128xbf16>
    %cst_13 = arith.constant dense<0.000000e+00> : vector<128x128xf32>
    %18 = tpu.matmul %15, %17, %cst_13 {dimension_numbers = #tpu.dot_dimension_numbers<[1], [0], [0], [1], [0, 0, 1, 1], [], []>} : vector<128x128xbf16>, vector<128x128xbf16>, vector<128x128xf32> -> vector<128x128xf32>
    %19 = arith.addf %14, %18 : vector<128x128xf32>
    %20 = vector.extract_strided_slice %3 {offsets = [384, 0], sizes = [128, 128], strides = [1, 1]} : vector<512x128xbf16> to vector<128x128xbf16>
    %c3 = arith.constant 3 : index
    %c0_14 = arith.constant 0 : index
    %c0_15 = arith.constant 0 : index
    %21 = vector.load %arg2[%c3, %c0_14, %c0_15] : memref<4x128x128xbf16, #tpu.memory_space<vmem>>, vector<1x128x128xbf16>
    %22 = vector.shape_cast %21 : vector<1x128x128xbf16> to vector<128x128xbf16>
    %cst_16 = arith.constant dense<0.000000e+00> : vector<128x128xf32>
    %23 = tpu.matmul %20, %22, %cst_16 {dimension_numbers = #tpu.dot_dimension_numbers<[1], [0], [0], [1], [0, 0, 1, 1], [], []>} : vector<128x128xbf16>, vector<128x128xbf16>, vector<128x128xf32> -> vector<128x128xf32>
    %24 = arith.addf %19, %23 : vector<128x128xf32>
    %25 = tpu.iota {dimensions = array<i32: 1>} : vector<128x128xi32>
    %c32_i32 = arith.constant 32 : i32
    %26 = vector.broadcast %c32_i32 : i32 to vector<128x128xi32>
    %27 = arith.cmpi slt, %25, %26 : vector<128x128xi32>
    %cst_17 = arith.constant dense<0.000000e+00> : vector<128xf32>
    %28 = vector.multi_reduction <add>, %24, %cst_17 [1] : vector<128x128xf32> to vector<128xf32>
    %29 = vector.shape_cast %28 : vector<128xf32> to vector<128x1xf32>
    %cst_18 = arith.constant 3.125000e-02 : f32
    %30 = vector.broadcast %cst_18 : f32 to vector<128x1xf32>
    %31 = arith.mulf %29, %30 : vector<128x1xf32>
    %32 = vector.broadcast %31 : vector<128x1xf32> to vector<128x128xf32>
    %33 = arith.subf %24, %32 : vector<128x128xf32>
    %cst_19 = arith.constant 0.000000e+00 : f32
    %34 = vector.broadcast %cst_19 : f32 to vector<128x128xf32>
    %35 = arith.select %27, %33, %34 : vector<128x128xi1>, vector<128x128xf32>
    %36 = arith.mulf %35, %35 : vector<128x128xf32>
    %cst_20 = arith.constant dense<0.000000e+00> : vector<128xf32>
    %37 = vector.multi_reduction <add>, %36, %cst_20 [1] : vector<128x128xf32> to vector<128xf32>
    %38 = vector.shape_cast %37 : vector<128xf32> to vector<128x1xf32>
    %cst_21 = arith.constant 3.125000e-02 : f32
    %39 = vector.broadcast %cst_21 : f32 to vector<128x1xf32>
    %40 = arith.mulf %38, %39 : vector<128x1xf32>
    %cst_22 = arith.constant 9.99999974E-6 : f32
    %41 = vector.broadcast %cst_22 : f32 to vector<128x1xf32>
    %42 = arith.addf %40, %41 : vector<128x1xf32>
    %43 = math.rsqrt %42 : vector<128x1xf32>
    %44 = vector.broadcast %43 : vector<128x1xf32> to vector<128x128xf32>
    %45 = arith.mulf %35, %44 : vector<128x128xf32>
    %c0_23 = arith.constant 0 : index
    %c0_24 = arith.constant 0 : index
    %46 = vector.load %arg5[%c0_23, %c0_24] : memref<1x128xf32, #tpu.memory_space<vmem>>, vector<1x128xf32>
    %47 = vector.broadcast %46 : vector<1x128xf32> to vector<128x128xf32>
    %48 = arith.mulf %45, %47 : vector<128x128xf32>
    %c0_25 = arith.constant 0 : index
    %c0_26 = arith.constant 0 : index
    %49 = vector.load %arg6[%c0_25, %c0_26] : memref<1x128xf32, #tpu.memory_space<vmem>>, vector<1x128xf32>
    %50 = vector.broadcast %49 : vector<1x128xf32> to vector<128x128xf32>
    %51 = arith.addf %48, %50 : vector<128x128xf32>
    %c0_27 = arith.constant 0 : index
    %c0_28 = arith.constant 0 : index
    %52 = vector.load %arg4[%c0_27, %c0_28] : memref<1x128xf32, #tpu.memory_space<vmem>>, vector<1x128xf32>
    %53 = vector.broadcast %52 : vector<1x128xf32> to vector<128x128xf32>
    %54 = arith.addf %51, %53 : vector<128x128xf32>
    %c0_29 = arith.constant 0 : index
    %c0_30 = arith.constant 0 : index
    %55 = vector.load %arg3[%c0_29, %c0_30] : memref<128x128xbf16, #tpu.memory_space<vmem>>, vector<128x128xbf16>
    %cst_31 = arith.constant dense<0.000000e+00> : vector<128x128xf32>
    %56 = tpu.matmul %1, %55, %cst_31 {dimension_numbers = #tpu.dot_dimension_numbers<[1], [0], [0], [1], [0, 0, 1, 1], [], []>} : vector<128x128xbf16>, vector<128x128xbf16>, vector<128x128xf32> -> vector<128x128xf32>
    %57 = arith.addf %54, %56 : vector<128x128xf32>
    %cst_32 = arith.constant 0.000000e+00 : f32
    %58 = vector.broadcast %cst_32 : f32 to vector<128x128xf32>
    %59 = arith.maximumf %57, %58 : vector<128x128xf32>
    %60 = arith.truncf %59 : vector<128x128xf32> to vector<128x128xbf16>
    %cst_33 = arith.constant dense<0.000000e+00> : vector<512x128xf32>
    %61 = tpu.matmul %0, %60, %cst_33 {dimension_numbers = #tpu.dot_dimension_numbers<[1], [0], [0], [1], [0, 0, 1, 1], [], []>} : vector<512x128xbf16>, vector<128x128xbf16>, vector<512x128xf32> -> vector<512x128xf32>
    %62 = arith.truncf %61 : vector<512x128xf32> to vector<512x128xbf16>
    %cst_34 = arith.constant 0.000000e+00 : f32
    %63 = vector.broadcast %cst_34 : f32 to vector<128x128xf32>
    %64 = vector.extract_strided_slice %62 {offsets = [0, 0], sizes = [128, 128], strides = [1, 1]} : vector<512x128xbf16> to vector<128x128xbf16>
    %c0_35 = arith.constant 0 : index
    %c0_36 = arith.constant 0 : index
    %c0_37 = arith.constant 0 : index
    %65 = vector.load %arg7[%c0_35, %c0_36, %c0_37] : memref<4x128x128xbf16, #tpu.memory_space<vmem>>, vector<1x128x128xbf16>
    %66 = vector.shape_cast %65 : vector<1x128x128xbf16> to vector<128x128xbf16>
    %cst_38 = arith.constant dense<0.000000e+00> : vector<128x128xf32>
    %67 = tpu.matmul %64, %66, %cst_38 {dimension_numbers = #tpu.dot_dimension_numbers<[1], [0], [0], [1], [0, 0, 1, 1], [], []>} : vector<128x128xbf16>, vector<128x128xbf16>, vector<128x128xf32> -> vector<128x128xf32>
    %68 = arith.addf %63, %67 : vector<128x128xf32>
    %69 = vector.extract_strided_slice %62 {offsets = [128, 0], sizes = [128, 128], strides = [1, 1]} : vector<512x128xbf16> to vector<128x128xbf16>
    %c1_39 = arith.constant 1 : index
    %c0_40 = arith.constant 0 : index
    %c0_41 = arith.constant 0 : index
    %70 = vector.load %arg7[%c1_39, %c0_40, %c0_41] : memref<4x128x128xbf16, #tpu.memory_space<vmem>>, vector<1x128x128xbf16>
    %71 = vector.shape_cast %70 : vector<1x128x128xbf16> to vector<128x128xbf16>
    %cst_42 = arith.constant dense<0.000000e+00> : vector<128x128xf32>
    %72 = tpu.matmul %69, %71, %cst_42 {dimension_numbers = #tpu.dot_dimension_numbers<[1], [0], [0], [1], [0, 0, 1, 1], [], []>} : vector<128x128xbf16>, vector<128x128xbf16>, vector<128x128xf32> -> vector<128x128xf32>
    %73 = arith.addf %68, %72 : vector<128x128xf32>
    %74 = vector.extract_strided_slice %62 {offsets = [256, 0], sizes = [128, 128], strides = [1, 1]} : vector<512x128xbf16> to vector<128x128xbf16>
    %c2_43 = arith.constant 2 : index
    %c0_44 = arith.constant 0 : index
    %c0_45 = arith.constant 0 : index
    %75 = vector.load %arg7[%c2_43, %c0_44, %c0_45] : memref<4x128x128xbf16, #tpu.memory_space<vmem>>, vector<1x128x128xbf16>
    %76 = vector.shape_cast %75 : vector<1x128x128xbf16> to vector<128x128xbf16>
    %cst_46 = arith.constant dense<0.000000e+00> : vector<128x128xf32>
    %77 = tpu.matmul %74, %76, %cst_46 {dimension_numbers = #tpu.dot_dimension_numbers<[1], [0], [0], [1], [0, 0, 1, 1], [], []>} : vector<128x128xbf16>, vector<128x128xbf16>, vector<128x128xf32> -> vector<128x128xf32>
    %78 = arith.addf %73, %77 : vector<128x128xf32>
    %79 = vector.extract_strided_slice %62 {offsets = [384, 0], sizes = [128, 128], strides = [1, 1]} : vector<512x128xbf16> to vector<128x128xbf16>
    %c3_47 = arith.constant 3 : index
    %c0_48 = arith.constant 0 : index
    %c0_49 = arith.constant 0 : index
    %80 = vector.load %arg7[%c3_47, %c0_48, %c0_49] : memref<4x128x128xbf16, #tpu.memory_space<vmem>>, vector<1x128x128xbf16>
    %81 = vector.shape_cast %80 : vector<1x128x128xbf16> to vector<128x128xbf16>
    %cst_50 = arith.constant dense<0.000000e+00> : vector<128x128xf32>
    %82 = tpu.matmul %79, %81, %cst_50 {dimension_numbers = #tpu.dot_dimension_numbers<[1], [0], [0], [1], [0, 0, 1, 1], [], []>} : vector<128x128xbf16>, vector<128x128xbf16>, vector<128x128xf32> -> vector<128x128xf32>
    %83 = arith.addf %78, %82 : vector<128x128xf32>
    %84 = tpu.iota {dimensions = array<i32: 1>} : vector<128x128xi32>
    %c32_i32_51 = arith.constant 32 : i32
    %85 = vector.broadcast %c32_i32_51 : i32 to vector<128x128xi32>
    %86 = arith.cmpi slt, %84, %85 : vector<128x128xi32>
    %cst_52 = arith.constant dense<0.000000e+00> : vector<128xf32>
    %87 = vector.multi_reduction <add>, %83, %cst_52 [1] : vector<128x128xf32> to vector<128xf32>
    %88 = vector.shape_cast %87 : vector<128xf32> to vector<128x1xf32>
    %cst_53 = arith.constant 3.125000e-02 : f32
    %89 = vector.broadcast %cst_53 : f32 to vector<128x1xf32>
    %90 = arith.mulf %88, %89 : vector<128x1xf32>
    %91 = vector.broadcast %90 : vector<128x1xf32> to vector<128x128xf32>
    %92 = arith.subf %83, %91 : vector<128x128xf32>
    %cst_54 = arith.constant 0.000000e+00 : f32
    %93 = vector.broadcast %cst_54 : f32 to vector<128x128xf32>
    %94 = arith.select %86, %92, %93 : vector<128x128xi1>, vector<128x128xf32>
    %95 = arith.mulf %94, %94 : vector<128x128xf32>
    %cst_55 = arith.constant dense<0.000000e+00> : vector<128xf32>
    %96 = vector.multi_reduction <add>, %95, %cst_55 [1] : vector<128x128xf32> to vector<128xf32>
    %97 = vector.shape_cast %96 : vector<128xf32> to vector<128x1xf32>
    %cst_56 = arith.constant 3.125000e-02 : f32
    %98 = vector.broadcast %cst_56 : f32 to vector<128x1xf32>
    %99 = arith.mulf %97, %98 : vector<128x1xf32>
    %cst_57 = arith.constant 9.99999974E-6 : f32
    %100 = vector.broadcast %cst_57 : f32 to vector<128x1xf32>
    %101 = arith.addf %99, %100 : vector<128x1xf32>
    %102 = math.rsqrt %101 : vector<128x1xf32>
    %103 = vector.broadcast %102 : vector<128x1xf32> to vector<128x128xf32>
    %104 = arith.mulf %94, %103 : vector<128x128xf32>
    %c0_58 = arith.constant 0 : index
    %c0_59 = arith.constant 0 : index
    %105 = vector.load %arg10[%c0_58, %c0_59] : memref<1x128xf32, #tpu.memory_space<vmem>>, vector<1x128xf32>
    %106 = vector.broadcast %105 : vector<1x128xf32> to vector<128x128xf32>
    %107 = arith.mulf %104, %106 : vector<128x128xf32>
    %c0_60 = arith.constant 0 : index
    %c0_61 = arith.constant 0 : index
    %108 = vector.load %arg11[%c0_60, %c0_61] : memref<1x128xf32, #tpu.memory_space<vmem>>, vector<1x128xf32>
    %109 = vector.broadcast %108 : vector<1x128xf32> to vector<128x128xf32>
    %110 = arith.addf %107, %109 : vector<128x128xf32>
    %c0_62 = arith.constant 0 : index
    %c0_63 = arith.constant 0 : index
    %111 = vector.load %arg9[%c0_62, %c0_63] : memref<1x128xf32, #tpu.memory_space<vmem>>, vector<1x128xf32>
    %112 = vector.broadcast %111 : vector<1x128xf32> to vector<128x128xf32>
    %113 = arith.addf %110, %112 : vector<128x128xf32>
    %c0_64 = arith.constant 0 : index
    %c0_65 = arith.constant 0 : index
    %114 = vector.load %arg8[%c0_64, %c0_65] : memref<128x128xbf16, #tpu.memory_space<vmem>>, vector<128x128xbf16>
    %cst_66 = arith.constant dense<0.000000e+00> : vector<128x128xf32>
    %115 = tpu.matmul %60, %114, %cst_66 {dimension_numbers = #tpu.dot_dimension_numbers<[1], [0], [0], [1], [0, 0, 1, 1], [], []>} : vector<128x128xbf16>, vector<128x128xbf16>, vector<128x128xf32> -> vector<128x128xf32>
    %116 = arith.addf %113, %115 : vector<128x128xf32>
    %cst_67 = arith.constant 0.000000e+00 : f32
    %117 = vector.broadcast %cst_67 : f32 to vector<128x128xf32>
    %118 = arith.maximumf %116, %117 : vector<128x128xf32>
    %119 = arith.truncf %118 : vector<128x128xf32> to vector<128x128xbf16>
    %cst_68 = arith.constant dense<0.000000e+00> : vector<512x128xf32>
    %120 = tpu.matmul %0, %119, %cst_68 {dimension_numbers = #tpu.dot_dimension_numbers<[1], [0], [0], [1], [0, 0, 1, 1], [], []>} : vector<512x128xbf16>, vector<128x128xbf16>, vector<512x128xf32> -> vector<512x128xf32>
    %121 = arith.truncf %120 : vector<512x128xf32> to vector<512x128xbf16>
    %cst_69 = arith.constant 0.000000e+00 : f32
    %122 = vector.broadcast %cst_69 : f32 to vector<128x128xf32>
    %123 = vector.extract_strided_slice %121 {offsets = [0, 0], sizes = [128, 128], strides = [1, 1]} : vector<512x128xbf16> to vector<128x128xbf16>
    %c0_70 = arith.constant 0 : index
    %c0_71 = arith.constant 0 : index
    %c0_72 = arith.constant 0 : index
    %124 = vector.load %arg12[%c0_70, %c0_71, %c0_72] : memref<4x128x128xbf16, #tpu.memory_space<vmem>>, vector<1x128x128xbf16>
    %125 = vector.shape_cast %124 : vector<1x128x128xbf16> to vector<128x128xbf16>
    %cst_73 = arith.constant dense<0.000000e+00> : vector<128x128xf32>
    %126 = tpu.matmul %123, %125, %cst_73 {dimension_numbers = #tpu.dot_dimension_numbers<[1], [0], [0], [1], [0, 0, 1, 1], [], []>} : vector<128x128xbf16>, vector<128x128xbf16>, vector<128x128xf32> -> vector<128x128xf32>
    %127 = arith.addf %122, %126 : vector<128x128xf32>
    %128 = vector.extract_strided_slice %121 {offsets = [128, 0], sizes = [128, 128], strides = [1, 1]} : vector<512x128xbf16> to vector<128x128xbf16>
    %c1_74 = arith.constant 1 : index
    %c0_75 = arith.constant 0 : index
    %c0_76 = arith.constant 0 : index
    %129 = vector.load %arg12[%c1_74, %c0_75, %c0_76] : memref<4x128x128xbf16, #tpu.memory_space<vmem>>, vector<1x128x128xbf16>
    %130 = vector.shape_cast %129 : vector<1x128x128xbf16> to vector<128x128xbf16>
    %cst_77 = arith.constant dense<0.000000e+00> : vector<128x128xf32>
    %131 = tpu.matmul %128, %130, %cst_77 {dimension_numbers = #tpu.dot_dimension_numbers<[1], [0], [0], [1], [0, 0, 1, 1], [], []>} : vector<128x128xbf16>, vector<128x128xbf16>, vector<128x128xf32> -> vector<128x128xf32>
    %132 = arith.addf %127, %131 : vector<128x128xf32>
    %133 = vector.extract_strided_slice %121 {offsets = [256, 0], sizes = [128, 128], strides = [1, 1]} : vector<512x128xbf16> to vector<128x128xbf16>
    %c2_78 = arith.constant 2 : index
    %c0_79 = arith.constant 0 : index
    %c0_80 = arith.constant 0 : index
    %134 = vector.load %arg12[%c2_78, %c0_79, %c0_80] : memref<4x128x128xbf16, #tpu.memory_space<vmem>>, vector<1x128x128xbf16>
    %135 = vector.shape_cast %134 : vector<1x128x128xbf16> to vector<128x128xbf16>
    %cst_81 = arith.constant dense<0.000000e+00> : vector<128x128xf32>
    %136 = tpu.matmul %133, %135, %cst_81 {dimension_numbers = #tpu.dot_dimension_numbers<[1], [0], [0], [1], [0, 0, 1, 1], [], []>} : vector<128x128xbf16>, vector<128x128xbf16>, vector<128x128xf32> -> vector<128x128xf32>
    %137 = arith.addf %132, %136 : vector<128x128xf32>
    %138 = vector.extract_strided_slice %121 {offsets = [384, 0], sizes = [128, 128], strides = [1, 1]} : vector<512x128xbf16> to vector<128x128xbf16>
    %c3_82 = arith.constant 3 : index
    %c0_83 = arith.constant 0 : index
    %c0_84 = arith.constant 0 : index
    %139 = vector.load %arg12[%c3_82, %c0_83, %c0_84] : memref<4x128x128xbf16, #tpu.memory_space<vmem>>, vector<1x128x128xbf16>
    %140 = vector.shape_cast %139 : vector<1x128x128xbf16> to vector<128x128xbf16>
    %cst_85 = arith.constant dense<0.000000e+00> : vector<128x128xf32>
    %141 = tpu.matmul %138, %140, %cst_85 {dimension_numbers = #tpu.dot_dimension_numbers<[1], [0], [0], [1], [0, 0, 1, 1], [], []>} : vector<128x128xbf16>, vector<128x128xbf16>, vector<128x128xf32> -> vector<128x128xf32>
    %142 = arith.addf %137, %141 : vector<128x128xf32>
    %143 = tpu.iota {dimensions = array<i32: 1>} : vector<128x128xi32>
    %c16_i32 = arith.constant 16 : i32
    %144 = vector.broadcast %c16_i32 : i32 to vector<128x128xi32>
    %145 = arith.cmpi slt, %143, %144 : vector<128x128xi32>
    %cst_86 = arith.constant dense<0.000000e+00> : vector<128xf32>
    %146 = vector.multi_reduction <add>, %142, %cst_86 [1] : vector<128x128xf32> to vector<128xf32>
    %147 = vector.shape_cast %146 : vector<128xf32> to vector<128x1xf32>
    %cst_87 = arith.constant 6.250000e-02 : f32
    %148 = vector.broadcast %cst_87 : f32 to vector<128x1xf32>
    %149 = arith.mulf %147, %148 : vector<128x1xf32>
    %150 = vector.broadcast %149 : vector<128x1xf32> to vector<128x128xf32>
    %151 = arith.subf %142, %150 : vector<128x128xf32>
    %cst_88 = arith.constant 0.000000e+00 : f32
    %152 = vector.broadcast %cst_88 : f32 to vector<128x128xf32>
    %153 = arith.select %145, %151, %152 : vector<128x128xi1>, vector<128x128xf32>
    %154 = arith.mulf %153, %153 : vector<128x128xf32>
    %cst_89 = arith.constant dense<0.000000e+00> : vector<128xf32>
    %155 = vector.multi_reduction <add>, %154, %cst_89 [1] : vector<128x128xf32> to vector<128xf32>
    %156 = vector.shape_cast %155 : vector<128xf32> to vector<128x1xf32>
    %cst_90 = arith.constant 6.250000e-02 : f32
    %157 = vector.broadcast %cst_90 : f32 to vector<128x1xf32>
    %158 = arith.mulf %156, %157 : vector<128x1xf32>
    %cst_91 = arith.constant 9.99999974E-6 : f32
    %159 = vector.broadcast %cst_91 : f32 to vector<128x1xf32>
    %160 = arith.addf %158, %159 : vector<128x1xf32>
    %161 = math.rsqrt %160 : vector<128x1xf32>
    %162 = vector.broadcast %161 : vector<128x1xf32> to vector<128x128xf32>
    %163 = arith.mulf %153, %162 : vector<128x128xf32>
    %c0_92 = arith.constant 0 : index
    %c0_93 = arith.constant 0 : index
    %164 = vector.load %arg15[%c0_92, %c0_93] : memref<1x128xf32, #tpu.memory_space<vmem>>, vector<1x128xf32>
    %165 = vector.broadcast %164 : vector<1x128xf32> to vector<128x128xf32>
    %166 = arith.mulf %163, %165 : vector<128x128xf32>
    %c0_94 = arith.constant 0 : index
    %c0_95 = arith.constant 0 : index
    %167 = vector.load %arg16[%c0_94, %c0_95] : memref<1x128xf32, #tpu.memory_space<vmem>>, vector<1x128xf32>
    %168 = vector.broadcast %167 : vector<1x128xf32> to vector<128x128xf32>
    %169 = arith.addf %166, %168 : vector<128x128xf32>
    %c0_96 = arith.constant 0 : index
    %c0_97 = arith.constant 0 : index
    %170 = vector.load %arg14[%c0_96, %c0_97] : memref<1x128xf32, #tpu.memory_space<vmem>>, vector<1x128xf32>
    %171 = vector.broadcast %170 : vector<1x128xf32> to vector<128x128xf32>
    %172 = arith.addf %169, %171 : vector<128x128xf32>
    %c0_98 = arith.constant 0 : index
    %c0_99 = arith.constant 0 : index
    %173 = vector.load %arg13[%c0_98, %c0_99] : memref<128x128xbf16, #tpu.memory_space<vmem>>, vector<128x128xbf16>
    %cst_100 = arith.constant dense<0.000000e+00> : vector<128x128xf32>
    %174 = tpu.matmul %119, %173, %cst_100 {dimension_numbers = #tpu.dot_dimension_numbers<[1], [0], [0], [1], [0, 0, 1, 1], [], []>} : vector<128x128xbf16>, vector<128x128xbf16>, vector<128x128xf32> -> vector<128x128xf32>
    %175 = arith.addf %172, %174 : vector<128x128xf32>
    %c0_101 = arith.constant 0 : index
    %c0_102 = arith.constant 0 : index
    %176 = vector.load %arg17[%c0_101, %c0_102] : memref<128x128xf32, #tpu.memory_space<vmem>>, vector<128x128xf32>
    tpu.vector_store %arg17[%c0_101, %c0_102], %175 {strides = array<i32>} : memref<128x128xf32, #tpu.memory_space<vmem>>, vector<128x128xf32>,
    return
  }
}

</mosaic_0001>

<bundles_post_ra>
// kernel: model_forward.1
= control target key start
LH: loop header
LB: loop body
LE: loop exit
PB: predicated region body
PF: predicated region fallthrough
CT: control target
= control target key end

     0   :  { %s8706_s1 = inlined_call_operand.vmem [shape: bf16[128,128], index: 1, kind: input, shape index: {}]   ;;  %s8707_s0 = inlined_call_operand.vmem [shape: bf16[512,128], index: 0, kind: input, shape index: {}]   ;;  %s8708_s2 = inlined_call_operand.vmem [shape: bf16[4,128,128], index: 2, kind: input, shape index: {}]   ;;  %s8709_s3 = inlined_call_operand.vmem [shape: bf16[128,128], index: 3, kind: input, shape index: {}]   ;;  %s8710_s5 = inlined_call_operand.vmem [shape: f32[1,128], index: 5, kind: input, shape index: {}]   ;;  %s8711_s6 = inlined_call_operand.vmem [shape: f32[1,128], index: 6, kind: input, shape index: {}]   ;;  %s8712_s4 = inlined_call_operand.vmem [shape: f32[1,128], index: 4, kind: input, shape index: {}]   ;;  %s8713_s8 = inlined_call_operand.vmem [shape: bf16[128,128], index: 8, kind: input, shape index: {}]   ;;  %s8714_s7 = inlined_call_operand.vmem [shape: bf16[4,128,128], index: 7, kind: input, shape index: {}]   ;;  %s8715_s10 = inlined_call_operand.vmem [shape: f32[1,128], index: 10, kind: input, shape index: {}]   ;;  %s8716_s11 = inlined_call_operand.vmem [shape: f32[1,128], index: 11, kind: input, shape index: {}]   ;;  %s8717_s9 = inlined_call_operand.vmem [shape: f32[1,128], index: 9, kind: input, shape index: {}]   ;;  %s8718_s13 = inlined_call_operand.vmem [shape: bf16[128,128], index: 13, kind: input, shape index: {}]   ;;  %s8719_s12 = inlined_call_operand.vmem [shape: bf16[4,128,128], index: 12, kind: input, shape index: {}]   ;;  %s8720_s15 = inlined_call_operand.vmem [shape: f32[1,128], index: 15, kind: input, shape index: {}]   ;;  %s8721_s16 = inlined_call_operand.vmem [shape: f32[1,128], index: 16, kind: input, shape index: {}]   ;;  %s8722_s14 = inlined_call_operand.vmem [shape: f32[1,128], index: 14, kind: input, shape index: {}]   ;;  %s8723_s17 = inlined_call_operand.vmem [shape: f32[128,128], index: 17, kind: output, shape index: {}]  }
   0x1   :  { %8726 = sst [smem:[#allocation2_spill]] %s8706_s1  ;;  %v6356_v33 = vld [vmem:[%s8708_s2 + $0x40] sm:$0xff]   ;;  %v6357_v36 = vld [vmem:[%s8708_s2 + $0x48] sm:$0xff]   ;;  %v6358_v37 = vld [vmem:[%s8708_s2 + $0x50] sm:$0xff]  }
   0x2   :  { %8727 = sst [smem:[#allocation3_spill]] %s8707_s0  ;;  %s8728_s26 = sld [smem:[#allocation2_spill]]  ;;  %5516 = vmatprep.subr.bf16.mxu1 %v6356_v33  ;;  %v6359_v40 = vld [vmem:[%s8708_s2 + $0x58] sm:$0xff]   ;;  %v6360_v41 = vld [vmem:[%s8708_s2 + $0x60] sm:$0xff]   ;;  %v6361_v44 = vld [vmem:[%s8708_s2 + $0x68] sm:$0xff]  }
   0x3   :  { %s8729_s20 = sld [smem:[#allocation3_spill]]  ;;  %5517 = vmatpush3.bf16.msra.mxu1 %v6356_v33  ;;  %v6362_v45 = vld [vmem:[%s8708_s2 + $0x70] sm:$0xff]   ;;  %v6363_v47 = vld [vmem:[%s8708_s2 + $0x78] sm:$0xff]   ;;  %v6364_v48 = vld [vmem:[%s8708_s2] sm:$0xff]  }
   0x4   :  { %5518 = vmatprep.subr.bf16.mxu1 %v6357_v36  ;;  %v6367_v33 = vld [vmem:[%s8708_s2 + $0x18] sm:$0xff]  }
   0x7   :  { %5519 = vmatpush3.bf16.msra.mxu1 %v6357_v36  ;;  %v6368_v36 = vld [vmem:[%s8708_s2 + $0x20] sm:$0xff]  }
   0x8   :  { %v6728_v0 = vld [vmem:[%s8728_s26] sm:$0xff]   ;;  %v6733_v1 = vld [vmem:[%s8728_s26 + $0x8] sm:$0xff]   ;;  %v6741_v2 = vld [vmem:[%s8728_s26 + $0x10] sm:$0xff]   ;;  %5520 = vmatprep.subr.bf16.mxu1 %v6358_v37 }
   0x9   :  { %5436 = vmatprep.subr.bf16.mxu0 %v6728_v0  ;;  %v6747_v3 = vld [vmem:[%s8728_s26 + $0x18] sm:$0xff]   ;;  %v6753_v4 = vld [vmem:[%s8729_s20] sm:$0xff]   ;;  %v6768_v6 = vld [vmem:[%s8728_s26 + $0x28] sm:$0xff]  }
   0xa   :  { %5437 = vmatpush3.bf16.msra.mxu0 %v6728_v0  ;;  %5452 = vmatprep.mubr.bf16.mxu0 %v6753_v4  ;;  %v6761_v5 = vld [vmem:[%s8728_s26 + $0x20] sm:$0xff]   ;;  %v6775_v7 = vld [vmem:[%s8728_s26 + $0x30] sm:$0xff]   ;;  %v6782_v8 = vld [vmem:[%s8728_s26 + $0x38] sm:$0xff]  }
   0xb   :  { %5438 = vmatprep.subr.bf16.mxu0 %v6733_v1  ;;  %v6325_v9 = vld [vmem:[%s8729_s20 + $0x8] sm:$0xff]   ;;  %v6326_v10 = vld [vmem:[%s8729_s20 + $0x10] sm:$0xff]   ;;  %v6327_v11 = vld [vmem:[%s8729_s20 + $0x18] sm:$0xff]   ;;  %5521 = vmatpush3.bf16.msra.mxu1 %v6358_v37 }
   0xc   :  { %v6328_v12 = vld [vmem:[%s8729_s20 + $0x20] sm:$0xff]   ;;  %v6329_v13 = vld [vmem:[%s8729_s20 + $0x28] sm:$0xff]   ;;  %v6330_v14 = vld [vmem:[%s8729_s20 + $0x30] sm:$0xff]   ;;  %5522 = vmatprep.subr.bf16.mxu1 %v6359_v40 }
   0xd   :  { %v6331_v15 = vld [vmem:[%s8729_s20 + $0x38] sm:$0xff]   ;;  %v6332_v16 = vld [vmem:[%s8729_s20 + $0x40] sm:$0xff]   ;;  %v6333_v17 = vld [vmem:[%s8729_s20 + $0x48] sm:$0xff]  }
   0xe   :  { %5439 = vmatpush3.bf16.msra.mxu0 %v6733_v1  ;;  %v6334_v18 = vld [vmem:[%s8729_s20 + $0x50] sm:$0xff]   ;;  %v6335_v19 = vld [vmem:[%s8729_s20 + $0x58] sm:$0xff]   ;;  %v6336_v20 = vld [vmem:[%s8729_s20 + $0x60] sm:$0xff]  }
   0xf   :  { %5440 = vmatprep.subr.bf16.mxu0 %v6741_v2  ;;  %v6337_v21 = vld [vmem:[%s8729_s20 + $0x68] sm:$0xff]   ;;  %v6338_v22 = vld [vmem:[%s8729_s20 + $0x70] sm:$0xff]   ;;  %v6339_v23 = vld [vmem:[%s8729_s20 + $0x78] sm:$0xff]   ;;  %5523 = vmatpush3.bf16.msra.mxu1 %v6359_v40 }
  0x10   :  { %v6340_v24 = vld [vmem:[%s8729_s20 + $0x80] sm:$0xff]   ;;  %v6341_v25 = vld [vmem:[%s8729_s20 + $0x88] sm:$0xff]   ;;  %v6342_v26 = vld [vmem:[%s8729_s20 + $0x90] sm:$0xff]   ;;  %5524 = vmatprep.subr.bf16.mxu1 %v6360_v41 }
  0x11   :  { %v6343_v27 = vld [vmem:[%s8729_s20 + $0x98] sm:$0xff]   ;;  %v6344_v28 = vld [vmem:[%s8729_s20 + $0xa0] sm:$0xff]   ;;  %v6345_v29 = vld [vmem:[%s8729_s20 + $0xa8] sm:$0xff]  }
  0x12   :  { %5441 = vmatpush3.bf16.msra.mxu0 %v6741_v2  ;;  %v6346_v30 = vld [vmem:[%s8729_s20 + $0xb0] sm:$0xff]   ;;  %v6347_v31 = vld [vmem:[%s8729_s20 + $0xb8] sm:$0xff]   ;;  %v6348_v32 = vld [vmem:[%s8729_s20 + $0xc0] sm:$0xff]  }
  0x13   :  { %5442 = vmatprep.subr.bf16.mxu0 %v6747_v3  ;;  %v6349_v34 = vld [vmem:[%s8729_s20 + $0xc8] sm:$0xff]   ;;  %v6350_v35 = vld [vmem:[%s8729_s20 + $0xd0] sm:$0xff]   ;;  %v6351_v38 = vld [vmem:[%s8729_s20 + $0xd8] sm:$0xff]   ;;  %5525 = vmatpush3.bf16.msra.mxu1 %v6360_v41 }
  0x14   :  { %v6352_v39 = vld [vmem:[%s8729_s20 + $0xe0] sm:$0xff]   ;;  %v6353_v42 = vld [vmem:[%s8729_s20 + $0xe8] sm:$0xff]   ;;  %v6354_v43 = vld [vmem:[%s8729_s20 + $0xf0] sm:$0xff]   ;;  %5526 = vmatprep.subr.bf16.mxu1 %v6361_v44 }
  0x15   :  { %v6355_v46 = vld [vmem:[%s8729_s20 + $0xf8] sm:$0xff]   ;;  %v6369_v41 = vld [vmem:[%s8708_s2 + $0x28] sm:$0xff]  }
  0x16   :  { %5443 = vmatpush3.bf16.msra.mxu0 %v6747_v3 }
  0x17   :  { %5444 = vmatprep.subr.bf16.mxu0 %v6761_v5  ;;  %5527 = vmatpush3.bf16.msra.mxu1 %v6361_v44  ;;  %v6370_v44 = vld [vmem:[%s8708_s2 + $0x30] sm:$0xff]  }
  0x18   :  { %5528 = vmatprep.subr.bf16.mxu1 %v6362_v45 }
  0x1a   :  { %5445 = vmatpush3.bf16.msra.mxu0 %v6761_v5 }
  0x1b   :  { %5446 = vmatprep.subr.bf16.mxu0 %v6768_v6  ;;  %5529 = vmatpush3.bf16.msra.mxu1 %v6362_v45 }
  0x1c   :  { %5530 = vmatprep.subr.bf16.mxu1 %v6363_v47 }
  0x1e   :  { %5447 = vmatpush3.bf16.msra.mxu0 %v6768_v6 }
  0x1f   :  { %5448 = vmatprep.subr.bf16.mxu0 %v6775_v7  ;;  %5531 = vmatpush3.bf16.msra.mxu1 %v6363_v47 }
  0x20   :  { %5548 = vmatprep.subr.bf16.mxu1 %v6364_v48 }
  0x22   :  { %5449 = vmatpush3.bf16.msra.mxu0 %v6775_v7 }
  0x23   :  { %5450 = vmatprep.subr.bf16.mxu0 %v6782_v8 }
  0x26   :  { %5451 = vmatpush3.bf16.msra.mxu0 %v6782_v8 }
  0x29   :  { %5453 = vmatmul.mubr.bf16.vlgmr.msra.gmra.mrb[0].mxu0 %v6325_v9 }
  0x2a   :  { %5456 = vmatprep.mubr.bf16.mxu0 %v6326_v10 }
  0x31   :  { %5457 = vmatmul.mubr.bf16.gmra.mrb[4].mxu0 %v6327_v11 }
  0x32   :  { %5460 = vmatprep.mubr.bf16.mxu0 %v6328_v12 }
  0x39   :  { %5461 = vmatmul.mubr.bf16.gmra.mrb[8].mxu0 %v6329_v13 }
  0x3a   :  { %5464 = vmatprep.mubr.bf16.mxu0 %v6330_v14 }
  0x41   :  { %5465 = vmatmul.mubr.bf16.gmra.mrb[12].mxu0 %v6331_v15 }
  0x42   :  { %5468 = vmatprep.mubr.bf16.mxu0 %v6332_v16 }
  0x49   :  { %5469 = vmatmul.mubr.bf16.gmra.mrb[16].mxu0 %v6333_v17 }
  0x4a   :  { %5472 = vmatprep.mubr.bf16.mxu0 %v6334_v18  ;;  %v6388_v18 = vld [vmem:[%s8709_s3] sm:$0xff]  }
  0x4b   :  { %5644 = vmatprep.subr.bf16.mxu0 %v6388_v18 }
  0x4c   :  { %5645 = vmatpush3.bf16.msra.mxu0 %v6388_v18 }
  0x51   :  { %5473 = vmatmul.mubr.bf16.gmra.mrb[20].mxu0 %v6335_v19 }
  0x52   :  { %5476 = vmatprep.mubr.bf16.mxu0 %v6336_v20  ;;  %v6389_v20 = vld [vmem:[%s8709_s3 + $0x8] sm:$0xff]  }
  0x53   :  { %5646 = vmatprep.subr.bf16.mxu0 %v6389_v20 }
  0x54   :  { %5647 = vmatpush3.bf16.msra.mxu0 %v6389_v20 }
  0x59   :  { %5477 = vmatmul.mubr.bf16.gmra.mrb[24].mxu0 %v6337_v21 }
  0x5a   :  { %5480 = vmatprep.mubr.bf16.mxu0 %v6338_v22 }
  0x61   :  { %5481 = vmatmul.mubr.bf16.gmra.mrb[28].mxu0 %v6339_v23 }
  0x62   :  { %5484 = vmatprep.mubr.bf16.mxu0 %v6340_v24  ;;  %v6365_v24 = vld [vmem:[%s8708_s2 + $0x8] sm:$0xff]  }
  0x69   :  { %5485 = vmatmul.mubr.bf16.gmra.mrb[32].mxu0 %v6341_v25 }
  0x6a   :  { %5488 = vmatprep.mubr.bf16.mxu0 %v6342_v26 }
  0x71   :  { %5489 = vmatmul.mubr.bf16.gmra.mrb[36].mxu0 %v6343_v27 }
  0x72   :  { %5492 = vmatprep.mubr.bf16.mxu0 %v6344_v28  ;;  %v6366_v28 = vld [vmem:[%s8708_s2 + $0x10] sm:$0xff]  }
  0x79   :  { %5493 = vmatmul.mubr.bf16.gmra.mrb[40].mxu0 %v6345_v29 }
  0x7a   :  { %5496 = vmatprep.mubr.bf16.mxu0 %v6346_v30 }
  0x81   :  { %5497 = vmatmul.mubr.bf16.gmra.mrb[44].mxu0 %v6347_v31 }
  0x82   :  { %5500 = vmatprep.mubr.bf16.mxu0 %v6348_v32 }
  0x89   :  { %5501 = vmatmul.mubr.bf16.gmra.mrb[48].mxu0 %v6349_v34 }
  0x8a   :  { %5504 = vmatprep.mubr.bf16.mxu0 %v6350_v35 }
  0x91   :  { %5505 = vmatmul.mubr.bf16.gmra.mrb[52].mxu0 %v6351_v38 }
  0x92   :  { %5508 = vmatprep.mubr.bf16.mxu0 %v6352_v39 }
  0x99   :  { %5509 = vmatmul.mubr.bf16.gmra.mrb[56].mxu0 %v6353_v42 }
  0x9a   :  { %5512 = vmatprep.mubr.bf16.mxu0 %v6354_v43 }
  0xa1   :  { %5513 = vmatmul.mubr.bf16.gmra.mrb[60].mxu0 %v6355_v46 }
  0xa2   :  { %5660 = vmatprep.mubr.bf16.mxu0 %v6728_v0 }
  0xfc   :  { %v6908_v49 = vpop.f32.mrb[0].mxu0 }
  0xfd   :  { %v6910_v50 = vpop.f32.mrb[1].mxu0 }
  0xfe   :  { %v6912_v51 = vpop.f32.mrb[2].mxu0 }
  0xff   :  { %v667_v52 = vpack.c.bf16 %v6912_v51, %v6908_v49  ;;  %v6916_v53 = vpop.f32.mrb[3].mxu0 }
 0x100   :  { %v666_v54 = vpack.c.bf16 %v6916_v53, %v6910_v50  ;;  %v6373_v50 = vld [vmem:[%s8708_s2 + $0x88] sm:$0xff]  }
 0x104   :  { %v6920_v55 = vpop.f32.mrb[4].mxu0 }
 0x105   :  { %v6922_v56 = vpop.f32.mrb[5].mxu0 }
 0x106   :  { %v6924_v57 = vpop.f32.mrb[6].mxu0 }
 0x107   :  { %v669_v58 = vpack.c.bf16 %v6924_v57, %v6920_v55  ;;  %v6928_v59 = vpop.f32.mrb[7].mxu0 }
 0x108   :  { %v668_v60 = vpack.c.bf16 %v6928_v59, %v6922_v56  ;;  %v6376_v59 = vld [vmem:[%s8708_s2 + $0xa0] sm:$0xff]  }
 0x10c   :  { %v6932_v61 = vpop.f32.mrb[8].mxu0 }
 0x10d   :  { %v6934_v62 = vpop.f32.mrb[9].mxu0 }
 0x10e   :  { %v6936_v63 = vpop.f32.mrb[10].mxu0 }
 0x10f   :  { %v671_v0 = vpack.c.bf16 %v6936_v63, %v6932_v61  ;;  %v6940_v9 = vpop.f32.mrb[11].mxu0 }
 0x110   :  { %v670_v10 = vpack.c.bf16 %v6940_v9, %v6934_v62  ;;  %v6378_v9 = vld [vmem:[%s8708_s2 + $0xb0] sm:$0xff]  }
 0x114   :  { %v6944_v11 = vpop.f32.mrb[12].mxu0 }
 0x115   :  { %v6946_v12 = vpop.f32.mrb[13].mxu0 }
 0x116   :  { %v6948_v13 = vpop.f32.mrb[14].mxu0 }
 0x117   :  { %v673_v14 = vpack.c.bf16 %v6948_v13, %v6944_v11  ;;  %v6952_v15 = vpop.f32.mrb[15].mxu0  ;;  %v6381_v11 = vld [vmem:[%s8708_s2 + $0xc8] sm:$0xff]  }
 0x118   :  { %v672_v16 = vpack.c.bf16 %v6952_v15, %v6946_v12  ;;  %v6380_v15 = vld [vmem:[%s8708_s2 + $0xc0] sm:$0xff]  }
 0x11c   :  { %v5470_v17 = vpop.f32.mrb[16].mxu0 }
 0x11d   :  { %v475_v19 = vpop.f32.mrb[17].mxu0 }
 0x11e   :  { %v5471_v21 = vpop.f32.mrb[18].mxu0 }
 0x11f   :  { %v675_v22 = vpack.c.bf16 %v5471_v21, %v5470_v17  ;;  %v478_v23 = vpop.f32.mrb[19].mxu0  ;;  %v6371_v17 = vld [vmem:[%s8708_s2 + $0x38] sm:$0xff]  }
 0x120   :  { %v674_v25 = vpack.c.bf16 %v478_v23, %v475_v19  ;;  %v6372_v19 = vld [vmem:[%s8708_s2 + $0x80] sm:$0xff]  }
 0x122   :  { %5532 = vmatprep.mubr.bf16.mxu1 %v674_v25 }
 0x123   :  { %5533 = vmatmul.mubr.bf16.vlgmr.msra.gmra.mrb[0].mxu1 %v675_v22 }
 0x124   :  { %v5474_v26 = vpop.f32.mrb[20].mxu0  ;;  %5549 = vmatpush3.bf16.msra.mxu1 %v6364_v48 }
 0x125   :  { %v491_v27 = vpop.f32.mrb[21].mxu0  ;;  %5550 = vmatprep.subr.bf16.mxu1 %v6365_v24 }
 0x126   :  { %v5475_v29 = vpop.f32.mrb[22].mxu0 }
 0x127   :  { %v677_v30 = vpack.c.bf16 %v5475_v29, %v5474_v26  ;;  %v494_v31 = vpop.f32.mrb[23].mxu0 }
 0x128   :  { %v676_v32 = vpack.c.bf16 %v494_v31, %v491_v27  ;;  %5551 = vmatpush3.bf16.msra.mxu1 %v6365_v24 }
 0x129   :  { %5552 = vmatprep.subr.bf16.mxu1 %v6366_v28 }
 0x12a   :  { %5536 = vmatprep.mubr.bf16.mxu1 %v676_v32 }
 0x12b   :  { %5537 = vmatmul.mubr.bf16.gmra.mrb[4].mxu1 %v677_v30 }
 0x12c   :  { %v5478_v34 = vpop.f32.mrb[24].mxu0  ;;  %5553 = vmatpush3.bf16.msra.mxu1 %v6366_v28 }
 0x12d   :  { %v507_v35 = vpop.f32.mrb[25].mxu0  ;;  %5554 = vmatprep.subr.bf16.mxu1 %v6367_v33 }
 0x12e   :  { %v5479_v37 = vpop.f32.mrb[26].mxu0 }
 0x12f   :  { %v679_v38 = vpack.c.bf16 %v5479_v37, %v5478_v34  ;;  %v510_v39 = vpop.f32.mrb[27].mxu0 }
 0x130   :  { %v678_v40 = vpack.c.bf16 %v510_v39, %v507_v35  ;;  %5555 = vmatpush3.bf16.msra.mxu1 %v6367_v33 }
 0x131   :  { %5556 = vmatprep.subr.bf16.mxu1 %v6368_v36 }
 0x132   :  { %5540 = vmatprep.mubr.bf16.mxu1 %v678_v40 }
 0x133   :  { %5541 = vmatmul.mubr.bf16.gmra.mrb[8].mxu1 %v679_v38 }
 0x134   :  { %v5482_v42 = vpop.f32.mrb[28].mxu0  ;;  %5557 = vmatpush3.bf16.msra.mxu1 %v6368_v36 }
 0x135   :  { %v523_v43 = vpop.f32.mrb[29].mxu0  ;;  %5558 = vmatprep.subr.bf16.mxu1 %v6369_v41 }
 0x136   :  { %v5483_v45 = vpop.f32.mrb[30].mxu0 }
 0x137   :  { %v681_v46 = vpack.c.bf16 %v5483_v45, %v5482_v42  ;;  %v526_v47 = vpop.f32.mrb[31].mxu0 }
 0x138   :  { %v680_v48 = vpack.c.bf16 %v526_v47, %v523_v43  ;;  %5559 = vmatpush3.bf16.msra.mxu1 %v6369_v41  ;;  %v6383_v41 = vld [vmem:[%s8708_s2 + $0xd8] sm:$0xff]   ;;  %v6384_v43 = vld [vmem:[%s8708_s2 + $0xe0] sm:$0xff]  }
 0x139   :  { %5560 = vmatprep.subr.bf16.mxu1 %v6370_v44 }
 0x13a   :  { %5544 = vmatprep.mubr.bf16.mxu1 %v680_v48 }
 0x13b   :  { %5545 = vmatmul.mubr.bf16.gmra.mrb[12].mxu1 %v681_v46 }
 0x13c   :  { %5561 = vmatpush3.bf16.msra.mxu1 %v6370_v44  ;;  %5564 = vmatprep.mubr.bf16.mxu1 %v666_v54  ;;  %v6986_v18 = vpop.f32.mrb[32].mxu0  ;;  %v6374_v54 = vld [vmem:[%s8708_s2 + $0x90] sm:$0xff]  }
 0x13d   :  { %5562 = vmatprep.subr.bf16.mxu1 %v6371_v17  ;;  %v539_v20 = vpop.f32.mrb[33].mxu0 }
 0x13e   :  { %v6991_v21 = vpop.f32.mrb[34].mxu0 }
 0x13f   :  { %v683_v22 = vpack.c.bf16 %v6991_v21, %v6986_v18  ;;  %v542_v23 = vpop.f32.mrb[35].mxu0 }
 0x140   :  { %5563 = vmatpush3.bf16.msra.mxu1 %v6371_v17  ;;  %v682_v24 = vpack.c.bf16 %v542_v23, %v539_v20  ;;  %v6385_v17 = vld [vmem:[%s8708_s2 + $0xe8] sm:$0xff]  }
 0x141   :  { %5580 = vmatprep.subr.bf16.mxu1 %v6372_v19 }
 0x143   :  { %5565 = vmatmul.mubr.bf16.vlgmr.msra.gmra.mrb[0].mxu1 %v667_v52  ;;  %v6375_v52 = vld [vmem:[%s8708_s2 + $0x98] sm:$0xff]  }
 0x144   :  { %5568 = vmatprep.mubr.bf16.mxu1 %v668_v60  ;;  %5581 = vmatpush3.bf16.msra.mxu1 %v6372_v19  ;;  %v7004_v53 = vpop.f32.mrb[36].mxu0  ;;  %v6386_v19 = vld [vmem:[%s8708_s2 + $0xf0] sm:$0xff]  }
 0x145   :  { %5582 = vmatprep.subr.bf16.mxu1 %v6373_v50  ;;  %v555_v25 = vpop.f32.mrb[37].mxu0 }
 0x146   :  { %v7009_v26 = vpop.f32.mrb[38].mxu0 }
 0x147   :  { %v685_v27 = vpack.c.bf16 %v7009_v26, %v7004_v53  ;;  %v558_v49 = vpop.f32.mrb[39].mxu0  ;;  %v6390_v53 = vld [vmem:[%s8709_s3 + $0x10] sm:$0xff]  }
 0x148   :  { %5583 = vmatpush3.bf16.msra.mxu1 %v6373_v50  ;;  %v684_v51 = vpack.c.bf16 %v558_v49, %v555_v25  ;;  %v6387_v50 = vld [vmem:[%s8708_s2 + $0xf8] sm:$0xff]   ;;  %5648 = vmatprep.subr.bf16.mxu0 %v6390_v53  ;;  %v6392_v25 = vld [vmem:[%s8709_s3 + $0x20] sm:$0xff]   ;;  %v6394_v26 = vld [vmem:[%s8709_s3 + $0x30] sm:$0xff]  }
 0x149   :  { %5584 = vmatprep.subr.bf16.mxu1 %v6374_v54  ;;  %5649 = vmatpush3.bf16.msra.mxu0 %v6390_v53 }
 0x14b   :  { %5569 = vmatmul.mubr.bf16.gmra.mrb[4].mxu1 %v669_v58  ;;  %v6377_v58 = vld [vmem:[%s8708_s2 + $0xa8] sm:$0xff]  }
 0x14c   :  { %5572 = vmatprep.mubr.bf16.mxu1 %v670_v10  ;;  %5585 = vmatpush3.bf16.msra.mxu1 %v6374_v54  ;;  %v7022_v56 = vpop.f32.mrb[40].mxu0  ;;  %v6391_v54 = vld [vmem:[%s8709_s3 + $0x18] sm:$0xff]  }
 0x14d   :  { %5586 = vmatprep.subr.bf16.mxu1 %v6375_v52  ;;  %v571_v60 = vpop.f32.mrb[41].mxu0  ;;  %5650 = vmatprep.subr.bf16.mxu0 %v6391_v54 }
 0x14e   :  { %v7027_v28 = vpop.f32.mrb[42].mxu0  ;;  %5651 = vmatpush3.bf16.msra.mxu0 %v6391_v54 }
 0x14f   :  { %v687_v29 = vpack.c.bf16 %v7027_v28, %v7022_v56  ;;  %v574_v55 = vpop.f32.mrb[43].mxu0  ;;  %5652 = vmatprep.subr.bf16.mxu0 %v6392_v25 }
 0x150   :  { %5587 = vmatpush3.bf16.msra.mxu1 %v6375_v52  ;;  %v686_v57 = vpack.c.bf16 %v574_v55, %v571_v60 }
 0x151   :  { %5588 = vmatprep.subr.bf16.mxu1 %v6376_v59 }
 0x152   :  { %5653 = vmatpush3.bf16.msra.mxu0 %v6392_v25 }
 0x153   :  { %5573 = vmatmul.mubr.bf16.gmra.mrb[8].mxu1 %v671_v0  ;;  %v6379_v0 = vld [vmem:[%s8708_s2 + $0xb8] sm:$0xff]  }
 0x154   :  { %5576 = vmatprep.mubr.bf16.mxu1 %v672_v16  ;;  %5589 = vmatpush3.bf16.msra.mxu1 %v6376_v59  ;;  %v7040_v62 = vpop.f32.mrb[44].mxu0 }
 0x155   :  { %5590 = vmatprep.subr.bf16.mxu1 %v6377_v58  ;;  %v587_v10 = vpop.f32.mrb[45].mxu0 }
 0x156   :  { %v7045_v30 = vpop.f32.mrb[46].mxu0 }
 0x157   :  { %v689_v31 = vpack.c.bf16 %v7045_v30, %v7040_v62  ;;  %v590_v61 = vpop.f32.mrb[47].mxu0 }
 0x158   :  { %5591 = vmatpush3.bf16.msra.mxu1 %v6377_v58  ;;  %v688_v63 = vpack.c.bf16 %v590_v61, %v587_v10 }
 0x159   :  { %5592 = vmatprep.subr.bf16.mxu1 %v6378_v9 }
 0x15b   :  { %5577 = vmatmul.mubr.bf16.gmra.mrb[12].mxu1 %v673_v14  ;;  %v6382_v14 = vld [vmem:[%s8708_s2 + $0xd0] sm:$0xff]  }
 0x15c   :  { %5593 = vmatpush3.bf16.msra.mxu1 %v6378_v9  ;;  %5596 = vmatprep.mubr.bf16.mxu1 %v682_v24  ;;  %v5502_v12 = vpop.f32.mrb[48].mxu0 }
 0x15d   :  { %5594 = vmatprep.subr.bf16.mxu1 %v6379_v0  ;;  %v603_v16 = vpop.f32.mrb[49].mxu0 }
 0x15e   :  { %v5503_v32 = vpop.f32.mrb[50].mxu0 }
 0x15f   :  { %v691_v33 = vpack.c.bf16 %v5503_v32, %v5502_v12  ;;  %v606_v34 = vpop.f32.mrb[51].mxu0 }
 0x160   :  { %5595 = vmatpush3.bf16.msra.mxu1 %v6379_v0  ;;  %v690_v35 = vpack.c.bf16 %v606_v34, %v603_v16 }
 0x161   :  { %5612 = vmatprep.subr.bf16.mxu1 %v6380_v15 }
 0x163   :  { %5597 = vmatmul.mubr.bf16.vlgmr.msra.gmra.mrb[0].mxu1 %v683_v22 }
 0x164   :  { %5613 = vmatpush3.bf16.msra.mxu1 %v6380_v15  ;;  %5600 = vmatprep.mubr.bf16.mxu1 %v684_v51  ;;  %v5506_v13 = vpop.f32.mrb[52].mxu0 }
 0x165   :  { %5614 = vmatprep.subr.bf16.mxu1 %v6381_v11  ;;  %v619_v36 = vpop.f32.mrb[53].mxu0 }
 0x166   :  { %v5507_v37 = vpop.f32.mrb[54].mxu0 }
 0x167   :  { %v693_v38 = vpack.c.bf16 %v5507_v37, %v5506_v13  ;;  %v622_v39 = vpop.f32.mrb[55].mxu0 }
 0x168   :  { %5615 = vmatpush3.bf16.msra.mxu1 %v6381_v11  ;;  %v692_v40 = vpack.c.bf16 %v622_v39, %v619_v36 }
 0x169   :  { %5616 = vmatprep.subr.bf16.mxu1 %v6382_v14 }
 0x16b   :  { %5601 = vmatmul.mubr.bf16.gmra.mrb[4].mxu1 %v685_v27  ;;  %v6395_v27 = vld [vmem:[%s8709_s3 + $0x38] sm:$0xff]  }
 0x16c   :  { %5617 = vmatpush3.bf16.msra.mxu1 %v6382_v14  ;;  %5604 = vmatprep.mubr.bf16.mxu1 %v686_v57  ;;  %v5510_v42 = vpop.f32.mrb[56].mxu0  ;;  %v1377_v57 = vlaneseq }
 0x16d   :  { %5618 = vmatprep.subr.bf16.mxu1 %v6383_v41  ;;  %v635_v44 = vpop.f32.mrb[57].mxu0 }
 0x16e   :  { %v5511_v45 = vpop.f32.mrb[58].mxu0  ;;  %v7135_v58 = vand.u32 127, %v1377_v57 }
 0x16f   :  { %v695_v46 = vpack.c.bf16 %v5511_v45, %v5510_v42  ;;  %v638_v47 = vpop.f32.mrb[59].mxu0 }
 0x170   :  { %5619 = vmatpush3.bf16.msra.mxu1 %v6383_v41  ;;  %v694_v48 = vpack.c.bf16 %v638_v47, %v635_v44  ;;  %vm1379_vm0 = vcmp.lt.s32.totalorder %v7135_v58, 32  ;;  %vm4304_vm1 = vcmp.lt.s32.totalorder %v7135_v58, 16 }
 0x171   :  { %5620 = vmatprep.subr.bf16.mxu1 %v6384_v43 }
 0x173   :  { %5605 = vmatmul.mubr.bf16.gmra.mrb[8].mxu1 %v687_v29 }
 0x174   :  { %5621 = vmatpush3.bf16.msra.mxu1 %v6384_v43  ;;  %5608 = vmatprep.mubr.bf16.mxu1 %v688_v63  ;;  %v5514_v18 = vpop.f32.mrb[60].mxu0 }
 0x175   :  { %5622 = vmatprep.subr.bf16.mxu1 %v6385_v17  ;;  %v651_v20 = vpop.f32.mrb[61].mxu0 }
 0x176   :  { %v5515_v21 = vpop.f32.mrb[62].mxu0 }
 0x177   :  { %v697_v22 = vpack.c.bf16 %v5515_v21, %v5514_v18  ;;  %v654_v23 = vpop.f32.mrb[63].mxu0 }
 0x178   :  { %5623 = vmatpush3.bf16.msra.mxu1 %v6385_v17  ;;  %v696_v24 = vpack.c.bf16 %v654_v23, %v651_v20 }
 0x179   :  { %5624 = vmatprep.subr.bf16.mxu1 %v6386_v19 }
 0x17b   :  { %5609 = vmatmul.mubr.bf16.gmra.mrb[12].mxu1 %v689_v31 }
 0x17c   :  { %5625 = vmatpush3.bf16.msra.mxu1 %v6386_v19  ;;  %5628 = vmatprep.mubr.bf16.mxu1 %v690_v35 }
 0x17d   :  { %5626 = vmatprep.subr.bf16.mxu1 %v6387_v50 }
 0x180   :  { %5627 = vmatpush3.bf16.msra.mxu1 %v6387_v50 }
 0x183   :  { %5629 = vmatmul.mubr.bf16.vlgmr.msra.gmra.mrb[0].mxu1 %v691_v33 }
 0x184   :  { %5632 = vmatprep.mubr.bf16.mxu1 %v692_v40 }
 0x18b   :  { %5633 = vmatmul.mubr.bf16.gmra.mrb[4].mxu1 %v693_v38 }
 0x18c   :  { %5636 = vmatprep.mubr.bf16.mxu1 %v694_v48 }
 0x193   :  { %5637 = vmatmul.mubr.bf16.gmra.mrb[8].mxu1 %v695_v46 }
 0x194   :  { %5640 = vmatprep.mubr.bf16.mxu1 %v696_v24 }
 0x19b   :  { %5641 = vmatmul.mubr.bf16.gmra.mrb[12].mxu1 %v697_v22 }
 0x19c   :  { %5692 = vmatprep.mubr.bf16.mxu1 %v6753_v4  ;;  %v6393_v4 = vld [vmem:[%s8709_s3 + $0x28] sm:$0xff]  }
 0x19d   :  { %5654 = vmatprep.subr.bf16.mxu0 %v6393_v4 }
 0x19e   :  { %5655 = vmatpush3.bf16.msra.mxu0 %v6393_v4 }
 0x19f   :  { %5656 = vmatprep.subr.bf16.mxu0 %v6394_v26 }
 0x1a2   :  { %5657 = vmatpush3.bf16.msra.mxu0 %v6394_v26 }
 0x1a3   :  { %5658 = vmatprep.subr.bf16.mxu0 %v6395_v27 }
 0x1a6   :  { %5659 = vmatpush3.bf16.msra.mxu0 %v6395_v27 }
 0x1a9   :  { %5661 = vmatmul.mubr.bf16.vlgmr.msra.gmra.mrb[64].mxu0 %v6733_v1 }
 0x1aa   :  { %5664 = vmatprep.mubr.bf16.mxu0 %v6741_v2 }
 0x1b1   :  { %5665 = vmatmul.mubr.bf16.gmra.mrb[68].mxu0 %v6747_v3 }
 0x1b2   :  { %5668 = vmatprep.mubr.bf16.mxu0 %v6761_v5 }
 0x1b9   :  { %5669 = vmatmul.mubr.bf16.gmra.mrb[72].mxu0 %v6768_v6 }
 0x1ba   :  { %5672 = vmatprep.mubr.bf16.mxu0 %v6775_v7 }
 0x1c1   :  { %5673 = vmatmul.mubr.bf16.gmra.mrb[76].mxu0 %v6782_v8 }
 0x256   :  { %v5630_v49 = vpop.f32.mrb[0].mxu1 }
 0x257   :  { %1384 = vadd.xlane.f32.xlu1 %v5630_v49  ;;  %v1298_v51 = vpop.f32.mrb[1].mxu1 }
 0x258   :  { %1380 = vadd.xlane.f32.xlu0 %v1298_v51  ;;  %v5631_v52 = vpop.f32.mrb[2].mxu1 }
 0x259   :  { %v1301_v56 = vpop.f32.mrb[3].mxu1 }
 0x25b   :  { %1386 = vadd.xlane.f32.xlu1 %v5631_v52 }
 0x25c   :  { %1382 = vadd.xlane.f32.xlu0 %v1301_v56 }
 0x25e   :  { %v7105_v1 = vpop.f32.mrb[4].mxu1 }
 0x25f   :  { %v1314_v2 = vpop.f32.mrb[5].mxu1 }
 0x260   :  { %1388 = vadd.xlane.f32.xlu0 %v1314_v2  ;;  %v7107_v3 = vpop.f32.mrb[6].mxu1 }
 0x261   :  { %v1317_v5 = vpop.f32.mrb[7].mxu1 }
 0x262   :  { %1390 = vadd.xlane.f32.xlu1 %v1317_v5 }
 0x264   :  { %1392 = vadd.xlane.f32.xlu0 %v7105_v1 }
 0x266   :  { %1394 = vadd.xlane.f32.xlu1 %v7107_v3  ;;  %v7111_v6 = vpop.f32.mrb[8].mxu1 }
 0x267   :  { %v7113_v7 = vpop.f32.mrb[9].mxu1 }
 0x268   :  { %1396 = vadd.xlane.f32.xlu0 %v7113_v7  ;;  %v7116_v8 = vpop.f32.mrb[10].mxu1 }
 0x269   :  { %v7118_v59 = vpop.f32.mrb[11].mxu1 }
 0x26a   :  { %1398 = vadd.xlane.f32.xlu1 %v7118_v59 }
 0x26c   :  { %1400 = vadd.xlane.f32.xlu0 %v7111_v6 }
 0x26e   :  { %1402 = vadd.xlane.f32.xlu1 %v7116_v8  ;;  %v7123_v60 = vpop.f32.mrb[12].mxu1 }
 0x26f   :  { %v7125_v28 = vpop.f32.mrb[13].mxu1 }
 0x270   :  { %1404 = vadd.xlane.f32.xlu0 %v7125_v28  ;;  %v7128_v29 = vpop.f32.mrb[14].mxu1 }
 0x271   :  { %v7130_v55 = vpop.f32.mrb[15].mxu1 }
 0x272   :  { %1406 = vadd.xlane.f32.xlu1 %v7130_v55 }
 0x274   :  { %1408 = vadd.xlane.f32.xlu0 %v7123_v60 }
 0x276   :  { %1410 = vadd.xlane.f32.xlu1 %v7128_v29 }
 0x2e4   :  { %v1385_v62 = vpop.xlane.xlu1 %1384 }
 0x2e5   :  { %v1414_v9 = vmul.f32 0.03125, %v1385_v62  ;;  %v1381_v10 = vpop.xlane.xlu0 %1380 }
 0x2e6   :  { %v1412_v30 = vmul.f32 0.03125, %v1381_v10 }
 0x2e7   :  { %v1430_v31 = vsub.f32 %v5630_v49, %v1414_v9 }
 0x2e8   :  { %v1428_v61 = vsub.f32 %v1298_v51, %v1412_v30  ;;  %v1387_v63 = vpop.xlane.xlu1 %1386 }
 0x2e9   :  { %v1415_v0 = vmul.f32 0.03125, %v1387_v63  ;;  %v1383_v12 = vpop.xlane.xlu0 %1382  ;;  %v7146_v35 = vsel %vm1379_vm0, %v1430_v31, 0.0 }
 0x2ea   :  { %v1413_v15 = vmul.f32 0.03125, %v1383_v12  ;;  %v7140_v16 = vsel %vm1379_vm0, %v1428_v61, 0.0  ;;  %v1462_v37 = vmul.f32 %v7146_v35, %v7146_v35 }
 0x2eb   :  { %v1460_v32 = vmul.f32 %v7140_v16, %v7140_v16  ;;  %v1431_v33 = vsub.f32 %v5631_v52, %v1415_v0 }
 0x2ec   :  { %v1429_v34 = vsub.f32 %v1301_v56, %v1413_v15 }
 0x2ed   :  { %v1389_v11 = vpop.xlane.xlu0 %1388  ;;  %1476 = vadd.xlane.f32.xlu0 %v1460_v32  ;;  %v7158_v41 = vsel %vm1379_vm0, %v1431_v33, 0.0 }
 0x2ee   :  { %v1416_v13 = vmul.f32 0.03125, %v1389_v11  ;;  %v7150_v14 = vsel %vm1379_vm0, %v1429_v34, 0.0  ;;  %v1463_v48 = vmul.f32 %v7158_v41, %v7158_v41 }
 0x2ef   :  { %v1391_v36 = vpop.xlane.xlu1 %1390  ;;  %v1461_v38 = vmul.f32 %v7150_v14, %v7150_v14 }
 0x2f0   :  { %v1432_v39 = vsub.f32 %v1314_v2, %v1416_v13  ;;  %v1417_v40 = vmul.f32 0.03125, %v1391_v36 }
 0x2f1   :  { %v1393_v42 = vpop.xlane.xlu0 %1392  ;;  %1480 = vadd.xlane.f32.xlu0 %v1462_v37  ;;  %1478 = vadd.xlane.f32.xlu1 %v1461_v38 }
 0x2f2   :  { %v1433_v43 = vsub.f32 %v1317_v5, %v1417_v40  ;;  %v1418_v44 = vmul.f32 0.03125, %v1393_v42  ;;  %v7162_v45 = vsel %vm1379_vm0, %v1432_v39, 0.0 }
 0x2f3   :  { %v1395_v46 = vpop.xlane.xlu1 %1394  ;;  %v1464_v47 = vmul.f32 %v7162_v45, %v7162_v45 }
 0x2f4   :  { %v1434_v17 = vsub.f32 %v7105_v1, %v1418_v44  ;;  %v1419_v18 = vmul.f32 0.03125, %v1395_v46  ;;  %v7171_v19 = vsel %vm1379_vm0, %v1433_v43, 0.0 }
 0x2f5   :  { %v1397_v20 = vpop.xlane.xlu0 %1396  ;;  %1484 = vadd.xlane.f32.xlu0 %v1464_v47  ;;  %1482 = vadd.xlane.f32.xlu1 %v1463_v48  ;;  %v1465_v53 = vmul.f32 %v7171_v19, %v7171_v19 }
 0x2f6   :  { %v1435_v21 = vsub.f32 %v7107_v3, %v1419_v18  ;;  %v1420_v22 = vmul.f32 0.03125, %v1397_v20  ;;  %v7176_v23 = vsel %vm1379_vm0, %v1434_v17, 0.0 }
 0x2f7   :  { %v1399_v24 = vpop.xlane.xlu1 %1398  ;;  %v1466_v50 = vmul.f32 %v7176_v23, %v7176_v23 }
 0x2f8   :  { %v1436_v54 = vsub.f32 %v7113_v7, %v1420_v22  ;;  %v1421_v25 = vmul.f32 0.03125, %v1399_v24  ;;  %v7185_v4 = vsel %vm1379_vm0, %v1435_v21, 0.0 }
 0x2f9   :  { %v1401_v26 = vpop.xlane.xlu0 %1400  ;;  %1488 = vadd.xlane.f32.xlu0 %v1466_v50  ;;  %1486 = vadd.xlane.f32.xlu1 %v1465_v53  ;;  %v1467_v1 = vmul.f32 %v7185_v4, %v7185_v4 }
 0x2fa   :  { %v1437_v27 = vsub.f32 %v7118_v59, %v1421_v25  ;;  %v1422_v49 = vmul.f32 0.03125, %v1401_v26  ;;  %v7190_v51 = vsel %vm1379_vm0, %v1436_v54, 0.0 }
 0x2fb   :  { %v1403_v52 = vpop.xlane.xlu1 %1402  ;;  %v1468_v56 = vmul.f32 %v7190_v51, %v7190_v51 }
 0x2fc   :  { %v1438_v2 = vsub.f32 %v7111_v6, %v1422_v49  ;;  %v1423_v3 = vmul.f32 0.03125, %v1403_v52  ;;  %v7199_v5 = vsel %vm1379_vm0, %v1437_v27, 0.0 }
 0x2fd   :  { %1492 = vadd.xlane.f32.xlu0 %v1468_v56  ;;  %v1405_v7 = vpop.xlane.xlu0 %1404  ;;  %1490 = vadd.xlane.f32.xlu1 %v1467_v1  ;;  %v1469_v6 = vmul.f32 %v7199_v5, %v7199_v5 }
 0x2fe   :  { %v1439_v59 = vsub.f32 %v7116_v8, %v1423_v3  ;;  %v1424_v57 = vmul.f32 0.03125, %v1405_v7  ;;  %v7204_v62 = vsel %vm1379_vm0, %v1438_v2, 0.0 }
 0x2ff   :  { %v1407_v9 = vpop.xlane.xlu1 %1406  ;;  %v1470_v10 = vmul.f32 %v7204_v62, %v7204_v62 }
 0x300   :  { %v1440_v30 = vsub.f32 %v7125_v28, %v1424_v57  ;;  %v1425_v31 = vmul.f32 0.03125, %v1407_v9  ;;  %v7213_v61 = vsel %vm1379_vm0, %v1439_v59, 0.0 }
 0x301   :  { %1496 = vadd.xlane.f32.xlu0 %v1470_v10  ;;  %v1409_v8 = vpop.xlane.xlu0 %1408  ;;  %1494 = vadd.xlane.f32.xlu1 %v1469_v6  ;;  %v1471_v28 = vmul.f32 %v7213_v61, %v7213_v61 }
 0x302   :  { %v1441_v63 = vsub.f32 %v7130_v55, %v1425_v31  ;;  %v1426_v0 = vmul.f32 0.03125, %v1409_v8  ;;  %v7218_v12 = vsel %vm1379_vm0, %v1440_v30, 0.0 }
 0x303   :  { %v1411_v15 = vpop.xlane.xlu1 %1410  ;;  %v1472_v32 = vmul.f32 %v7218_v12, %v7218_v12 }
 0x304   :  { %v1442_v33 = vsub.f32 %v7123_v60, %v1426_v0  ;;  %v1427_v34 = vmul.f32 0.03125, %v1411_v15  ;;  %v7227_v11 = vsel %vm1379_vm0, %v1441_v63, 0.0  ;;  %v7279_v15 = vld [vmem:[%s8710_s5] ss:$0 sm:$0xff] }
 0x305   :  { %1500 = vadd.xlane.f32.xlu0 %v1472_v32  ;;  %1498 = vadd.xlane.f32.xlu1 %v1471_v28  ;;  %v1473_v37 = vmul.f32 %v7227_v11, %v7227_v11 }
 0x306   :  { %v1443_v55 = vsub.f32 %v7128_v29, %v1427_v34  ;;  %v7232_v13 = vsel %vm1379_vm0, %v1442_v33, 0.0  ;;  %v7244_v29 = vpop.f32.mrb[64].mxu0 }
 0x307   :  { %v1474_v36 = vmul.f32 %v7232_v13, %v7232_v13  ;;  %v7246_v39 = vpop.f32.mrb[65].mxu0 }
 0x308   :  { %v7240_v60 = vsel %vm1379_vm0, %v1443_v55, 0.0  ;;  %v7248_v40 = vpop.f32.mrb[66].mxu0 }
 0x309   :  { %1504 = vadd.xlane.f32.xlu0 %v1474_v36  ;;  %1502 = vadd.xlane.f32.xlu1 %v1473_v37  ;;  %v1475_v38 = vmul.f32 %v7240_v60, %v7240_v60  ;;  %v7250_v42 = vpop.f32.mrb[67].mxu0  ;;  %v7285_v36 = vld [vmem:[%s8711_s6] ss:$0 sm:$0xff] }
 0x30a   :  { %v7252_v43 = vpop.f32.mrb[68].mxu0 }
 0x30b   :  { %v7254_v44 = vpop.f32.mrb[69].mxu0 }
 0x30c   :  { %v7256_v46 = vpop.f32.mrb[70].mxu0 }
 0x30d   :  { %1506 = vadd.xlane.f32.xlu1 %v1475_v38  ;;  %v7258_v47 = vpop.f32.mrb[71].mxu0 }
 0x30e   :  { %v7260_v48 = vpop.f32.mrb[72].mxu0 }
 0x30f   :  { %v7262_v17 = vpop.f32.mrb[73].mxu0 }
 0x310   :  { %v7264_v18 = vpop.f32.mrb[74].mxu0 }
 0x311   :  { %v7266_v20 = vpop.f32.mrb[75].mxu0 }
 0x312   :  { %v7268_v21 = vpop.f32.mrb[76].mxu0 }
 0x313   :  { %v7270_v22 = vpop.f32.mrb[77].mxu0 }
 0x314   :  { %v7272_v24 = vpop.f32.mrb[78].mxu0 }
 0x315   :  { %v7274_v50 = vpop.f32.mrb[79].mxu0 }
 0x37a   :  { %v1477_v53 = vpop.xlane.xlu0 %1476 }
 0x37b   :  { %v1508_v54 = vmul.f32 0.03125, %v1477_v53 }
 0x37d   :  { %v1524_v25 = vadd.f32 1e-05, %v1508_v54 }
 0x37e   :  { %v1481_v26 = vpop.xlane.xlu0 %1480  ;;  %v1479_v27 = vpop.xlane.xlu1 %1478 }
 0x37f   :  { %6476 = vrsqrt.f32 %v1524_v25  ;;  %v1510_v49 = vmul.f32 0.03125, %v1481_v26  ;;  %v1509_v52 = vmul.f32 0.03125, %v1479_v27  ;;  %v7291_v25 = vld [vmem:[%s8712_s4] ss:$0 sm:$0xff] }
 0x381   :  { %v1526_v56 = vadd.f32 1e-05, %v1510_v49  ;;  %v1525_v1 = vadd.f32 1e-05, %v1509_v52 }
 0x382   :  { %v1485_v2 = vpop.xlane.xlu0 %1484  ;;  %v1483_v3 = vpop.xlane.xlu1 %1482 }
 0x383   :  { %6478 = vrsqrt.f32 %v1526_v56  ;;  %v1512_v7 = vmul.f32 0.03125, %v1485_v2  ;;  %v1511_v59 = vmul.f32 0.03125, %v1483_v3 }
 0x384   :  { %6480 = vrsqrt.f32 %v1525_v1 }
 0x385   :  { %v1528_v57 = vadd.f32 1e-05, %v1512_v7  ;;  %v1527_v9 = vadd.f32 1e-05, %v1511_v59 }
 0x386   :  { %v1489_v10 = vpop.xlane.xlu0 %1488  ;;  %v1487_v6 = vpop.xlane.xlu1 %1486 }
 0x387   :  { %6482 = vrsqrt.f32 %v1528_v57  ;;  %v1514_v30 = vmul.f32 0.03125, %v1489_v10  ;;  %v1513_v31 = vmul.f32 0.03125, %v1487_v6 }
 0x388   :  { %6484 = vrsqrt.f32 %v1527_v9 }
 0x389   :  { %v6477_v8 = vpop.eup %6476  ;;  %v1530_v63 = vadd.f32 1e-05, %v1514_v30  ;;  %v1529_v0 = vadd.f32 1e-05, %v1513_v31 }
 0x38a   :  { %v1493_v32 = vpop.xlane.xlu0 %1492  ;;  %v1491_v28 = vpop.xlane.xlu1 %1490  ;;  %v1556_v33 = vmul.f32 %v6477_v8, %v7140_v16 }
 0x38b   :  { %6486 = vrsqrt.f32 %v1530_v63  ;;  %v1516_v34 = vmul.f32 0.03125, %v1493_v32  ;;  %v1515_v55 = vmul.f32 0.03125, %v1491_v28 }
 0x38c   :  { %v1579_v37 = vmul.f32 %v7279_v15, %v1556_v33  ;;  %6488 = vrsqrt.f32 %v1529_v0 }
 0x38d   :  { %v6479_v38 = vpop.eup %6478  ;;  %v1532_v53 = vadd.f32 1e-05, %v1516_v34  ;;  %v1531_v54 = vadd.f32 1e-05, %v1515_v55 }
 0x38e   :  { %v6481_v16 = vpop.eup %6480  ;;  %v1497_v26 = vpop.xlane.xlu0 %1496  ;;  %v1558_v49 = vmul.f32 %v6479_v38, %v7146_v35  ;;  %v1602_v52 = vadd.f32 %v7285_v36, %v1579_v37 }
 0x38f   :  { %v1495_v27 = vpop.xlane.xlu1 %1494  ;;  %6490 = vrsqrt.f32 %v1532_v53  ;;  %v1518_v56 = vmul.f32 0.03125, %v1497_v26  ;;  %v1557_v2 = vmul.f32 %v6481_v16, %v7150_v14 }
 0x390   :  { %v1517_v1 = vmul.f32 0.03125, %v1495_v27  ;;  %6492 = vrsqrt.f32 %v1531_v54  ;;  %v1581_v3 = vmul.f32 %v7279_v15, %v1558_v49  ;;  %v1625_v7 = vadd.f32 %v7291_v25, %v1602_v52 }
 0x391   :  { %v6483_v59 = vpop.eup %6482  ;;  %v1534_v57 = vadd.f32 1e-05, %v1518_v56  ;;  %v1580_v10 = vmul.f32 %v7279_v15, %v1557_v2 }
 0x392   :  { %v1533_v9 = vadd.f32 1e-05, %v1517_v1  ;;  %v6485_v6 = vpop.eup %6484  ;;  %v1604_v35 = vadd.f32 %v7285_v36, %v1581_v3  ;;  %v1802_v30 = vadd.f32 %v7246_v39, %v1625_v7  ;;  %v1501_v31 = vpop.xlane.xlu0 %1500  ;;  %v1560_v63 = vmul.f32 %v6483_v59, %v7162_v45 }
 0x393   :  { %v1499_v8 = vpop.xlane.xlu1 %1498  ;;  %6494 = vrsqrt.f32 %v1534_v57  ;;  %v1559_v14 = vmul.f32 %v6485_v6, %v7158_v41  ;;  %v1603_v0 = vadd.f32 %v7285_v36, %v1580_v10  ;;  %v1520_v32 = vmul.f32 0.03125, %v1501_v31 }
 0x394   :  { %6496 = vrsqrt.f32 %v1533_v9  ;;  %v1627_v28 = vadd.f32 %v7291_v25, %v1604_v35  ;;  %v1519_v33 = vmul.f32 0.03125, %v1499_v8  ;;  %v1583_v38 = vmul.f32 %v7279_v15, %v1560_v63 }
 0x395   :  { %v6487_v34 = vpop.eup %6486  ;;  %v1582_v55 = vmul.f32 %v7279_v15, %v1559_v14  ;;  %v1626_v37 = vadd.f32 %v7291_v25, %v1603_v0  ;;  %v1536_v39 = vadd.f32 1e-05, %v1520_v32  ;;  %v1818_v53 = vmax.f32 %v1802_v30, 0.0 }
 0x396   :  { %v1804_v45 = vadd.f32 %v7244_v29, %v1627_v28  ;;  %v1535_v54 = vadd.f32 1e-05, %v1519_v33  ;;  %v1505_v41 = vpop.xlane.xlu0 %1504  ;;  %v1562_v26 = vmul.f32 %v6487_v34, %v7176_v23  ;;  %v6489_v27 = vpop.eup %6488  ;;  %v1606_v9 = vadd.f32 %v7285_v36, %v1583_v38 }
 0x397   :  { %v1503_v16 = vpop.xlane.xlu1 %1502  ;;  %v1605_v49 = vadd.f32 %v7285_v36, %v1582_v55  ;;  %v1803_v52 = vadd.f32 %v7250_v42, %v1626_v37  ;;  %6498 = vrsqrt.f32 %v1536_v39  ;;  %v1522_v56 = vmul.f32 0.03125, %v1505_v41 }
 0x398   :  { %v1820_v1 = vmax.f32 %v1804_v45, 0.0  ;;  %6500 = vrsqrt.f32 %v1535_v54  ;;  %v1521_v2 = vmul.f32 0.03125, %v1503_v16  ;;  %v1585_v3 = vmul.f32 %v7279_v15, %v1562_v26 }
 0x399   :  { %v6491_v7 = vpop.eup %6490  ;;  %v1628_v29 = vadd.f32 %v7291_v25, %v1605_v49  ;;  %v1819_v59 = vmax.f32 %v1803_v52, 0.0  ;;  %v1538_v57 = vadd.f32 1e-05, %v1522_v56  ;;  %v1561_v42 = vmul.f32 %v6489_v27, %v7171_v19 }
 0x39a   :  { %v6493_v23 = vpop.eup %6492  ;;  %v1537_v10 = vadd.f32 1e-05, %v1521_v2  ;;  %v1608_v6 = vadd.f32 %v7285_v36, %v1585_v3  ;;  %v1564_v30 = vmul.f32 %v6491_v7, %v7190_v51  ;;  %v1629_v63 = vadd.f32 %v7291_v25, %v1606_v9 }
 0x39b   :  { %v1507_v35 = vpop.xlane.xlu1 %1506  ;;  %v1805_v31 = vadd.f32 %v7248_v40, %v1628_v29  ;;  %v7319_v8 = vpack.c.bf16 %v1819_v59, %v1818_v53  ;;  %6502 = vrsqrt.f32 %v1538_v57  ;;  %v1563_v0 = vmul.f32 %v6493_v23, %v7185_v4 }
 0x39c   :  { %6504 = vrsqrt.f32 %v1537_v10  ;;  %v1631_v14 = vadd.f32 %v7291_v25, %v1608_v6  ;;  %v1584_v32 = vmul.f32 %v7279_v15, %v1561_v42  ;;  %v1806_v19 = vadd.f32 %v7254_v44, %v1629_v63 }
 0x39d   :  { %v6495_v28 = vpop.eup %6494  ;;  %v1821_v33 = vmax.f32 %v1805_v31, 0.0  ;;  %v1523_v34 = vmul.f32 0.03125, %v1507_v35  ;;  %5676 = vmatprep.subr.bf16.mxu1 %v7319_v8  ;;  %v1587_v51 = vmul.f32 %v7279_v15, %v1564_v30  ;;  %v1586_v55 = vmul.f32 %v7279_v15, %v1563_v0 }
 0x39e   :  { %v6497_v40 = vpop.eup %6496  ;;  %v1607_v37 = vadd.f32 %v7285_v36, %v1584_v32  ;;  %5677 = vmatpush3.bf16.msra.mxu1 %v7319_v8  ;;  %v1566_v4 = vmul.f32 %v6495_v28, %v7204_v62  ;;  %v1822_v44 = vmax.f32 %v1806_v19, 0.0  ;;  %v1808_v26 = vadd.f32 %v7252_v43, %v1631_v14 }
 0x39f   :  { %v7332_v39 = vpack.c.bf16 %v1821_v33, %v1820_v1  ;;  %v1539_v38 = vadd.f32 1e-05, %v1523_v34  ;;  %v1610_v45 = vadd.f32 %v7285_v36, %v1587_v51  ;;  %v1609_v53 = vadd.f32 %v7285_v36, %v1586_v55 }
 0x3a0   :  { %v1630_v54 = vadd.f32 %v7291_v25, %v1607_v37  ;;  %v1589_v41 = vmul.f32 %v7279_v15, %v1566_v4  ;;  %v1565_v62 = vmul.f32 %v6497_v40, %v7199_v5  ;;  %v1824_v9 = vmax.f32 %v1808_v26, 0.0 }
 0x3a1   :  { %v6499_v16 = vpop.eup %6498  ;;  %6506 = vrsqrt.f32 %v1539_v38  ;;  %v1633_v27 = vadd.f32 %v7291_v25, %v1610_v45  ;;  %5678 = vmatprep.subr.bf16.mxu1 %v7332_v39  ;;  %v1632_v52 = vadd.f32 %v7291_v25, %v1609_v53 }
 0x3a2   :  { %v6501_v49 = vpop.eup %6500  ;;  %v1807_v56 = vadd.f32 %v7258_v47, %v1630_v54  ;;  %v1612_v1 = vadd.f32 %v7285_v36, %v1589_v41  ;;  %5679 = vmatpush3.bf16.msra.mxu1 %v7332_v39  ;;  %v1568_v2 = vmul.f32 %v6499_v16, %v7218_v12  ;;  %v1588_v3 = vmul.f32 %v7279_v15, %v1565_v62  ;;  %v6573_v62 = vld [vmem:[%s8729_s20 + $0x10] sm:$0xff]  }
 0x3a3   :  { %v1567_v43 = vmul.f32 %v6501_v49, %v7213_v61  ;;  %v1809_v7 = vadd.f32 %v7256_v46, %v1632_v52  ;;  %v1810_v61 = vadd.f32 %v7262_v17, %v1633_v27  ;;  %v6398_v49 = vld [vmem:[%s8713_s8 + $0x10] sm:$0xff]   ;;  %v6399_v52 = vld [vmem:[%s8713_s8 + $0x18] sm:$0xff]  }
 0x3a4   :  { %v1823_v29 = vmax.f32 %v1807_v56, 0.0  ;;  %v1635_v5 = vadd.f32 %v7291_v25, %v1612_v1  ;;  %v1591_v59 = vmul.f32 %v7279_v15, %v1568_v2  ;;  %v1611_v23 = vadd.f32 %v7285_v36, %v1588_v3  ;;  %v6574_v56 = vld [vmem:[%s8729_s20 + $0x18] sm:$0xff]   ;;  %v6575_v1 = vld [vmem:[%s8729_s20 + $0x20] sm:$0xff]   ;;  %v6576_v3 = vld [vmem:[%s8729_s20 + $0x28] sm:$0xff]  }
 0x3a5   :  { %v6503_v57 = vpop.eup %6502  ;;  %v1590_v47 = vmul.f32 %v7279_v15, %v1567_v43  ;;  %v1825_v6 = vmax.f32 %v1809_v7, 0.0  ;;  %v6400_v2 = vld [vmem:[%s8713_s8 + $0x20] sm:$0xff]   ;;  %v6401_v43 = vld [vmem:[%s8713_s8 + $0x28] sm:$0xff]   ;;  %v6577_v7 = vld [vmem:[%s8729_s20 + $0x30] sm:$0xff]  }
 0x3a6   :  { %v6505_v10 = vpop.eup %6504  ;;  %v7354_v12 = vpack.c.bf16 %v1823_v29, %v1822_v44  ;;  %v1570_v42 = vmul.f32 %v6503_v57, %v7232_v13  ;;  %v1634_v35 = vadd.f32 %v7291_v25, %v1611_v23  ;;  %v1614_v30 = vadd.f32 %v7285_v36, %v1591_v59  ;;  %v6402_v29 = vld [vmem:[%s8713_s8 + $0x30] sm:$0xff]   ;;  %v6578_v59 = vld [vmem:[%s8729_s20 + $0x38] sm:$0xff]   ;;  %v6579_v57 = vld [vmem:[%s8729_s20 + $0x40] sm:$0xff]  }
 0x3a7   :  { %v1613_v46 = vadd.f32 %v7285_v36, %v1590_v47  ;;  %v1569_v31 = vmul.f32 %v6505_v10, %v7227_v11  ;;  %v7362_v63 = vpack.c.bf16 %v1825_v6, %v1824_v9  ;;  %v1812_v14 = vadd.f32 %v7260_v48, %v1635_v5  ;;  %v6403_v5 = vld [vmem:[%s8713_s8 + $0x38] sm:$0xff]   ;;  %v6580_v9 = vld [vmem:[%s8729_s20 + $0x48] sm:$0xff]   ;;  %v6581_v47 = vld [vmem:[%s8729_s20 + $0x50] sm:$0xff]  }
 0x3a8   :  { %5680 = vmatprep.subr.bf16.mxu1 %v7354_v12  ;;  %v1593_v0 = vmul.f32 %v7279_v15, %v1570_v42  ;;  %v1811_v13 = vadd.f32 %v7266_v20, %v1634_v35  ;;  %v1637_v32 = vadd.f32 %v7291_v25, %v1614_v30  ;;  %v1826_v48 = vmax.f32 %v1810_v61, 0.0  ;;  %v6582_v23 = vld [vmem:[%s8729_s20 + $0x58] sm:$0xff]   ;;  %v6583_v10 = vld [vmem:[%s8729_s20 + $0x60] sm:$0xff]   ;;  %v6584_v6 = vld [vmem:[%s8729_s20 + $0x68] sm:$0xff]  }
 0x3a9   :  { %v1636_v17 = vadd.f32 %v7291_v25, %v1613_v46  ;;  %5681 = vmatpush3.bf16.msra.mxu1 %v7354_v12  ;;  %v1592_v28 = vmul.f32 %v7279_v15, %v1569_v31  ;;  %v1828_v40 = vmax.f32 %v1812_v14, 0.0  ;;  %v6585_v61 = vld [vmem:[%s8729_s20 + $0x70] sm:$0xff]   ;;  %v6586_v42 = vld [vmem:[%s8729_s20 + $0x78] sm:$0xff]   ;;  %v6587_v46 = vld [vmem:[%s8729_s20 + $0x80] sm:$0xff]  }
 0x3aa   :  { %v1616_v11 = vadd.f32 %v7285_v36, %v1593_v0  ;;  %5682 = vmatprep.subr.bf16.mxu1 %v7362_v63  ;;  %v1827_v34 = vmax.f32 %v1811_v13, 0.0  ;;  %v1814_v4 = vadd.f32 %v7270_v22, %v1637_v32  ;;  %v6588_v35 = vld [vmem:[%s8729_s20 + $0x88] sm:$0xff]   ;;  %v6589_v30 = vld [vmem:[%s8729_s20 + $0x90] sm:$0xff]   ;;  %v6590_v31 = vld [vmem:[%s8729_s20 + $0x98] sm:$0xff]  }
 0x3ab   :  { %v6507_v33 = vpop.eup %6506  ;;  %v1813_v19 = vadd.f32 %v7264_v18, %v1636_v17  ;;  %v1615_v51 = vadd.f32 %v7285_v36, %v1592_v28  ;;  %v6591_v14 = vld [vmem:[%s8729_s20 + $0xa0] sm:$0xff]   ;;  %v6592_v0 = vld [vmem:[%s8729_s20 + $0xa8] sm:$0xff]   ;;  %v6593_v17 = vld [vmem:[%s8729_s20 + $0xb0] sm:$0xff]  }
 0x3ac   :  { %v1571_v20 = vmul.f32 %v6507_v33, %v7240_v60  ;;  %v7377_v37 = vpack.c.bf16 %v1827_v34, %v1826_v48  ;;  %v1639_v45 = vadd.f32 %v7291_v25, %v1616_v11  ;;  %v1830_v54 = vmax.f32 %v1814_v4, 0.0  ;;  %v6594_v13 = vld [vmem:[%s8729_s20 + $0xb8] sm:$0xff]   ;;  %v6404_v32 = vld [vmem:[%s8714_s7 + $0x40] sm:$0xff]   ;;  %v6405_v11 = vld [vmem:[%s8714_s7 + $0x48] sm:$0xff]  }
 0x3ad   :  { %v1829_v55 = vmax.f32 %v1813_v19, 0.0  ;;  %5683 = vmatpush3.bf16.msra.mxu1 %v7362_v63  ;;  %v1638_v38 = vadd.f32 %v7291_v25, %v1615_v51  ;;  %v6595_v28 = vld [vmem:[%s8729_s20 + $0xc0] sm:$0xff]   ;;  %5756 = vmatprep.subr.bf16.mxu0 %v6404_v32  ;;  %v6406_v33 = vld [vmem:[%s8714_s7 + $0x50] sm:$0xff]   ;;  %v6596_v48 = vld [vmem:[%s8729_s20 + $0xc8] sm:$0xff]  }
 0x3ae   :  { %v1594_v44 = vmul.f32 %v7279_v15, %v1571_v20  ;;  %5684 = vmatprep.subr.bf16.mxu1 %v7377_v37  ;;  %v1816_v22 = vadd.f32 %v7268_v21, %v1639_v45  ;;  %v6396_v21 = vld [vmem:[%s8713_s8] sm:$0xff]   ;;  %5757 = vmatpush3.bf16.msra.mxu0 %v6404_v32  ;;  %v6597_v19 = vld [vmem:[%s8729_s20 + $0xd0] sm:$0xff]   ;;  %v6407_v34 = vld [vmem:[%s8714_s7 + $0x58] sm:$0xff]  }
 0x3af   :  { %v7384_v18 = vpack.c.bf16 %v1829_v55, %v1828_v40  ;;  %v1815_v53 = vadd.f32 %v7274_v50, %v1638_v38  ;;  %5758 = vmatprep.subr.bf16.mxu0 %v6405_v11  ;;  %v6408_v51 = vld [vmem:[%s8714_s7 + $0x60] sm:$0xff]   ;;  %v6598_v40 = vld [vmem:[%s8729_s20 + $0xd8] sm:$0xff]   ;;  %v6409_v55 = vld [vmem:[%s8714_s7 + $0x68] sm:$0xff]  }
 0x3b0   :  { %v1617_v60 = vadd.f32 %v7285_v36, %v1594_v44  ;;  %v1832_v50 = vmax.f32 %v1816_v22, 0.0  ;;  %v6599_v20 = vld [vmem:[%s8729_s20 + $0xe0] sm:$0xff]   ;;  %v6410_v4 = vld [vmem:[%s8714_s7 + $0x70] sm:$0xff]   ;;  %v6600_v38 = vld [vmem:[%s8729_s20 + $0xe8] sm:$0xff]  }
 0x3b1   :  { %v1831_v41 = vmax.f32 %v1815_v53, 0.0  ;;  %5685 = vmatpush3.bf16.msra.mxu1 %v7377_v37  ;;  %v6601_v45 = vld [vmem:[%s8729_s20 + $0xf0] sm:$0xff]   ;;  %v6411_v44 = vld [vmem:[%s8714_s7 + $0x78] sm:$0xff]   ;;  %v6417_v32 = vld [vmem:[%s8714_s7 + $0x28] sm:$0xff]  }
 0x3b2   :  { %v1640_v16 = vadd.f32 %v7291_v25, %v1617_v60  ;;  %5686 = vmatprep.subr.bf16.mxu1 %v7384_v18  ;;  %v6572_v25 = vld [vmem:[%s8729_s20 + $0x8] sm:$0xff]   ;;  %5759 = vmatpush3.bf16.msra.mxu0 %v6405_v11  ;;  %v6602_v53 = vld [vmem:[%s8729_s20 + $0xf8] sm:$0xff]   ;;  %v6412_v60 = vld [vmem:[%s8714_s7] sm:$0xff]  }
 0x3b3   :  { %v7393_v26 = vpack.c.bf16 %v1831_v41, %v1830_v54  ;;  %5760 = vmatprep.subr.bf16.mxu0 %v6406_v33 }
 0x3b4   :  { %v1817_v15 = vadd.f32 %v7272_v24, %v1640_v16  ;;  %v6397_v24 = vld [vmem:[%s8713_s8 + $0x8] sm:$0xff]  }
 0x3b5   :  { %5687 = vmatpush3.bf16.msra.mxu1 %v7384_v18 }
 0x3b6   :  { %v1833_v27 = vmax.f32 %v1817_v15, 0.0  ;;  %5688 = vmatprep.subr.bf16.mxu1 %v7393_v26  ;;  %5761 = vmatpush3.bf16.msra.mxu0 %v6406_v33  ;;  %v6418_v33 = vld [vmem:[%s8714_s7 + $0x30] sm:$0xff]  }
 0x3b7   :  { %5762 = vmatprep.subr.bf16.mxu0 %v6407_v34 }
 0x3b8   :  { %v7398_v36 = vpack.c.bf16 %v1833_v27, %v1832_v50 }
 0x3b9   :  { %5689 = vmatpush3.bf16.msra.mxu1 %v7393_v26 }
 0x3ba   :  { %5690 = vmatprep.subr.bf16.mxu1 %v7398_v36  ;;  %5763 = vmatpush3.bf16.msra.mxu0 %v6407_v34 }
 0x3bb   :  { %5764 = vmatprep.subr.bf16.mxu0 %v6408_v51 }
 0x3bd   :  { %5691 = vmatpush3.bf16.msra.mxu1 %v7398_v36 }
 0x3be   :  { %5884 = vmatprep.subr.bf16.mxu1 %v6396_v21  ;;  %5765 = vmatpush3.bf16.msra.mxu0 %v6408_v51 }
 0x3bf   :  { %5766 = vmatprep.subr.bf16.mxu0 %v6409_v55 }
 0x3c0   :  { %5693 = vmatmul.mubr.bf16.vlgmr.msra.gmra.mrb[16].mxu1 %v6572_v25 }
 0x3c1   :  { %5696 = vmatprep.mubr.bf16.mxu1 %v6573_v62  ;;  %5885 = vmatpush3.bf16.msra.mxu1 %v6396_v21 }
 0x3c2   :  { %5886 = vmatprep.subr.bf16.mxu1 %v6397_v24  ;;  %5767 = vmatpush3.bf16.msra.mxu0 %v6409_v55  ;;  %v6420_v55 = vld [vmem:[%s8714_s7 + $0x80] sm:$0xff]  }
 0x3c3   :  { %5768 = vmatprep.subr.bf16.mxu0 %v6410_v4 }
 0x3c5   :  { %5887 = vmatpush3.bf16.msra.mxu1 %v6397_v24 }
 0x3c6   :  { %5888 = vmatprep.subr.bf16.mxu1 %v6398_v49  ;;  %5769 = vmatpush3.bf16.msra.mxu0 %v6410_v4 }
 0x3c7   :  { %5770 = vmatprep.subr.bf16.mxu0 %v6411_v44 }
 0x3c8   :  { %5697 = vmatmul.mubr.bf16.gmra.mrb[20].mxu1 %v6574_v56 }
 0x3c9   :  { %5700 = vmatprep.mubr.bf16.mxu1 %v6575_v1  ;;  %5889 = vmatpush3.bf16.msra.mxu1 %v6398_v49 }
 0x3ca   :  { %5890 = vmatprep.subr.bf16.mxu1 %v6399_v52  ;;  %5771 = vmatpush3.bf16.msra.mxu0 %v6411_v44 }
 0x3cb   :  { %5788 = vmatprep.subr.bf16.mxu0 %v6412_v60 }
 0x3cd   :  { %5891 = vmatpush3.bf16.msra.mxu1 %v6399_v52 }
 0x3ce   :  { %5892 = vmatprep.subr.bf16.mxu1 %v6400_v2 }
 0x3d0   :  { %5701 = vmatmul.mubr.bf16.gmra.mrb[24].mxu1 %v6576_v3 }
 0x3d1   :  { %5704 = vmatprep.mubr.bf16.mxu1 %v6577_v7  ;;  %5893 = vmatpush3.bf16.msra.mxu1 %v6400_v2 }
 0x3d2   :  { %5894 = vmatprep.subr.bf16.mxu1 %v6401_v43 }
 0x3d5   :  { %5895 = vmatpush3.bf16.msra.mxu1 %v6401_v43 }
 0x3d6   :  { %5896 = vmatprep.subr.bf16.mxu1 %v6402_v29 }
 0x3d8   :  { %5705 = vmatmul.mubr.bf16.gmra.mrb[28].mxu1 %v6578_v59 }
 0x3d9   :  { %5708 = vmatprep.mubr.bf16.mxu1 %v6579_v57  ;;  %5897 = vmatpush3.bf16.msra.mxu1 %v6402_v29  ;;  %v6413_v57 = vld [vmem:[%s8714_s7 + $0x8] sm:$0xff]  }
 0x3da   :  { %5898 = vmatprep.subr.bf16.mxu1 %v6403_v5 }
 0x3dd   :  { %5899 = vmatpush3.bf16.msra.mxu1 %v6403_v5 }
 0x3e0   :  { %5709 = vmatmul.mubr.bf16.gmra.mrb[32].mxu1 %v6580_v9 }
 0x3e1   :  { %5712 = vmatprep.mubr.bf16.mxu1 %v6581_v47 }
 0x3e8   :  { %5713 = vmatmul.mubr.bf16.gmra.mrb[36].mxu1 %v6582_v23  ;;  %v6414_v23 = vld [vmem:[%s8714_s7 + $0x10] sm:$0xff]  }
 0x3e9   :  { %5716 = vmatprep.mubr.bf16.mxu1 %v6583_v10 }
 0x3f0   :  { %5717 = vmatmul.mubr.bf16.gmra.mrb[40].mxu1 %v6584_v6 }
 0x3f1   :  { %5720 = vmatprep.mubr.bf16.mxu1 %v6585_v61 }
 0x3f8   :  { %5721 = vmatmul.mubr.bf16.gmra.mrb[44].mxu1 %v6586_v42 }
 0x3f9   :  { %5724 = vmatprep.mubr.bf16.mxu1 %v6587_v46  ;;  %v6415_v46 = vld [vmem:[%s8714_s7 + $0x18] sm:$0xff]  }
 0x400   :  { %5725 = vmatmul.mubr.bf16.gmra.mrb[48].mxu1 %v6588_v35 }
 0x401   :  { %5728 = vmatprep.mubr.bf16.mxu1 %v6589_v30 }
 0x408   :  { %5729 = vmatmul.mubr.bf16.gmra.mrb[52].mxu1 %v6590_v31  ;;  %v6416_v31 = vld [vmem:[%s8714_s7 + $0x20] sm:$0xff]  }
 0x409   :  { %5732 = vmatprep.mubr.bf16.mxu1 %v6591_v14 }
 0x410   :  { %5733 = vmatmul.mubr.bf16.gmra.mrb[56].mxu1 %v6592_v0 }
 0x411   :  { %5736 = vmatprep.mubr.bf16.mxu1 %v6593_v17 }
 0x418   :  { %5737 = vmatmul.mubr.bf16.gmra.mrb[60].mxu1 %v6594_v13 }
 0x419   :  { %5740 = vmatprep.mubr.bf16.mxu1 %v6595_v28 }
 0x420   :  { %5741 = vmatmul.mubr.bf16.gmra.mrb[64].mxu1 %v6596_v48 }
 0x421   :  { %5744 = vmatprep.mubr.bf16.mxu1 %v6597_v19 }
 0x428   :  { %5745 = vmatmul.mubr.bf16.gmra.mrb[68].mxu1 %v6598_v40  ;;  %v6419_v40 = vld [vmem:[%s8714_s7 + $0x38] sm:$0xff]  }
 0x429   :  { %5748 = vmatprep.mubr.bf16.mxu1 %v6599_v20 }
 0x430   :  { %5749 = vmatmul.mubr.bf16.gmra.mrb[72].mxu1 %v6600_v38 }
 0x431   :  { %5752 = vmatprep.mubr.bf16.mxu1 %v6601_v45 }
 0x438   :  { %5753 = vmatmul.mubr.bf16.gmra.mrb[76].mxu1 %v6602_v53 }
 0x439   :  { %5900 = vmatprep.mubr.bf16.mxu1 %v7319_v8 }
 0x440   :  { %5901 = vmatmul.mubr.bf16.vlgmr.msra.gmra.mrb[80].mxu1 %v7332_v39 }
 0x441   :  { %5904 = vmatprep.mubr.bf16.mxu1 %v7354_v12 }
 0x448   :  { %5905 = vmatmul.mubr.bf16.gmra.mrb[84].mxu1 %v7362_v63 }
 0x449   :  { %5908 = vmatprep.mubr.bf16.mxu1 %v7377_v37 }
 0x450   :  { %5909 = vmatmul.mubr.bf16.gmra.mrb[88].mxu1 %v7384_v18 }
 0x451   :  { %5912 = vmatprep.mubr.bf16.mxu1 %v7393_v26 }
 0x458   :  { %5913 = vmatmul.mubr.bf16.gmra.mrb[92].mxu1 %v7398_v36 }
 0x493   :  { %v7555_v54 = vpop.f32.mrb[16].mxu1 }
 0x494   :  { %v7557_v41 = vpop.f32.mrb[17].mxu1 }
 0x495   :  { %v7559_v8 = vpop.f32.mrb[18].mxu1 }
 0x496   :  { %v2132_v39 = vpack.c.bf16 %v7559_v8, %v7555_v54  ;;  %v7563_v12 = vpop.f32.mrb[19].mxu1 }
 0x497   :  { %v2131_v63 = vpack.c.bf16 %v7563_v12, %v7557_v41  ;;  %v6422_v12 = vld [vmem:[%s8714_s7 + $0x90] sm:$0xff]  }
 0x49b   :  { %v7567_v37 = vpop.f32.mrb[20].mxu1 }
 0x49c   :  { %v7569_v18 = vpop.f32.mrb[21].mxu1 }
 0x49d   :  { %v7571_v22 = vpop.f32.mrb[22].mxu1 }
 0x49e   :  { %v2134_v16 = vpack.c.bf16 %v7571_v22, %v7567_v37  ;;  %v7575_v26 = vpop.f32.mrb[23].mxu1 }
 0x49f   :  { %v2133_v15 = vpack.c.bf16 %v7575_v26, %v7569_v18  ;;  %v6424_v26 = vld [vmem:[%s8714_s7 + $0xa0] sm:$0xff]  }
 0x4a3   :  { %v7579_v50 = vpop.f32.mrb[24].mxu1 }
 0x4a4   :  { %v7581_v27 = vpop.f32.mrb[25].mxu1 }
 0x4a5   :  { %v7583_v36 = vpop.f32.mrb[26].mxu1 }
 0x4a6   :  { %v2136_v21 = vpack.c.bf16 %v7583_v36, %v7579_v50  ;;  %v7587_v24 = vpop.f32.mrb[27].mxu1 }
 0x4a7   :  { %v2135_v25 = vpack.c.bf16 %v7587_v24, %v7581_v27  ;;  %v6426_v24 = vld [vmem:[%s8714_s7 + $0xb0] sm:$0xff]  }
 0x4ab   :  { %v7591_v62 = vpop.f32.mrb[28].mxu1 }
 0x4ac   :  { %v7593_v49 = vpop.f32.mrb[29].mxu1 }
 0x4ad   :  { %v7595_v52 = vpop.f32.mrb[30].mxu1 }
 0x4ae   :  { %v2138_v56 = vpack.c.bf16 %v7595_v52, %v7591_v62  ;;  %v7599_v1 = vpop.f32.mrb[31].mxu1  ;;  %v6429_v62 = vld [vmem:[%s8714_s7 + $0xc8] sm:$0xff]  }
 0x4af   :  { %v2137_v2 = vpack.c.bf16 %v7599_v1, %v7593_v49  ;;  %v6428_v1 = vld [vmem:[%s8714_s7 + $0xc0] sm:$0xff]  }
 0x4b3   :  { %v5710_v43 = vpop.f32.mrb[32].mxu1 }
 0x4b4   :  { %v1940_v3 = vpop.f32.mrb[33].mxu1 }
 0x4b5   :  { %v5711_v7 = vpop.f32.mrb[34].mxu1 }
 0x4b6   :  { %v2140_v29 = vpack.c.bf16 %v5711_v7, %v5710_v43  ;;  %v1943_v5 = vpop.f32.mrb[35].mxu1 }
 0x4b7   :  { %v2139_v59 = vpack.c.bf16 %v1943_v5, %v1940_v3 }
 0x4b9   :  { %5772 = vmatprep.mubr.bf16.mxu0 %v2139_v59 }
 0x4ba   :  { %5773 = vmatmul.mubr.bf16.vlgmr.msra.gmra.mrb[80].mxu0 %v2140_v29 }
 0x4bb   :  { %v5714_v9 = vpop.f32.mrb[36].mxu1  ;;  %5789 = vmatpush3.bf16.msra.mxu0 %v6412_v60  ;;  %v6421_v60 = vld [vmem:[%s8714_s7 + $0x88] sm:$0xff]  }
 0x4bc   :  { %v1956_v47 = vpop.f32.mrb[37].mxu1  ;;  %5790 = vmatprep.subr.bf16.mxu0 %v6413_v57 }
 0x4bd   :  { %v5715_v10 = vpop.f32.mrb[38].mxu1 }
 0x4be   :  { %v2142_v6 = vpack.c.bf16 %v5715_v10, %v5714_v9  ;;  %v1959_v61 = vpop.f32.mrb[39].mxu1 }
 0x4bf   :  { %v2141_v42 = vpack.c.bf16 %v1959_v61, %v1956_v47  ;;  %5791 = vmatpush3.bf16.msra.mxu0 %v6413_v57 }
 0x4c0   :  { %5792 = vmatprep.subr.bf16.mxu0 %v6414_v23 }
 0x4c1   :  { %5776 = vmatprep.mubr.bf16.mxu0 %v2141_v42 }
 0x4c2   :  { %5777 = vmatmul.mubr.bf16.gmra.mrb[84].mxu0 %v2142_v6 }
 0x4c3   :  { %v5718_v35 = vpop.f32.mrb[40].mxu1  ;;  %5793 = vmatpush3.bf16.msra.mxu0 %v6414_v23 }
 0x4c4   :  { %v1972_v30 = vpop.f32.mrb[41].mxu1  ;;  %5794 = vmatprep.subr.bf16.mxu0 %v6415_v46 }
 0x4c5   :  { %v5719_v14 = vpop.f32.mrb[42].mxu1 }
 0x4c6   :  { %v2144_v0 = vpack.c.bf16 %v5719_v14, %v5718_v35  ;;  %v1975_v17 = vpop.f32.mrb[43].mxu1  ;;  %v6431_v35 = vld [vmem:[%s8714_s7 + $0xd8] sm:$0xff]  }
 0x4c7   :  { %v2143_v13 = vpack.c.bf16 %v1975_v17, %v1972_v30  ;;  %5795 = vmatpush3.bf16.msra.mxu0 %v6415_v46 }
 0x4c8   :  { %5796 = vmatprep.subr.bf16.mxu0 %v6416_v31 }
 0x4c9   :  { %5780 = vmatprep.mubr.bf16.mxu0 %v2143_v13 }
 0x4ca   :  { %5781 = vmatmul.mubr.bf16.gmra.mrb[88].mxu0 %v2144_v0 }
 0x4cb   :  { %v5722_v28 = vpop.f32.mrb[44].mxu1  ;;  %5797 = vmatpush3.bf16.msra.mxu0 %v6416_v31  ;;  %v6432_v31 = vld [vmem:[%s8714_s7 + $0xe0] sm:$0xff]  }
 0x4cc   :  { %v1988_v11 = vpop.f32.mrb[45].mxu1  ;;  %5798 = vmatprep.subr.bf16.mxu0 %v6417_v32 }
 0x4cd   :  { %v5723_v48 = vpop.f32.mrb[46].mxu1 }
 0x4ce   :  { %v2146_v19 = vpack.c.bf16 %v5723_v48, %v5722_v28  ;;  %v1991_v34 = vpop.f32.mrb[47].mxu1  ;;  %v6433_v28 = vld [vmem:[%s8714_s7 + $0xe8] sm:$0xff]   ;;  %v6434_v48 = vld [vmem:[%s8714_s7 + $0xf0] sm:$0xff]  }
 0x4cf   :  { %v2145_v51 = vpack.c.bf16 %v1991_v34, %v1988_v11  ;;  %5799 = vmatpush3.bf16.msra.mxu0 %v6417_v32 }
 0x4d0   :  { %5800 = vmatprep.subr.bf16.mxu0 %v6418_v33 }
 0x4d1   :  { %5784 = vmatprep.mubr.bf16.mxu0 %v2145_v51 }
 0x4d2   :  { %5785 = vmatmul.mubr.bf16.gmra.mrb[92].mxu0 %v2146_v19 }
 0x4d3   :  { %5801 = vmatpush3.bf16.msra.mxu0 %v6418_v33  ;;  %5804 = vmatprep.mubr.bf16.mxu0 %v2131_v63  ;;  %v7627_v20 = vpop.f32.mrb[48].mxu1 }
 0x4d4   :  { %5802 = vmatprep.subr.bf16.mxu0 %v6419_v40  ;;  %v2004_v4 = vpop.f32.mrb[49].mxu1 }
 0x4d5   :  { %v7632_v38 = vpop.f32.mrb[50].mxu1 }
 0x4d6   :  { %v2148_v45 = vpack.c.bf16 %v7632_v38, %v7627_v20  ;;  %v2007_v44 = vpop.f32.mrb[51].mxu1  ;;  %v6435_v20 = vld [vmem:[%s8714_s7 + $0xf8] sm:$0xff]  }
 0x4d7   :  { %5803 = vmatpush3.bf16.msra.mxu0 %v6419_v40  ;;  %v2147_v53 = vpack.c.bf16 %v2007_v44, %v2004_v4 }
 0x4d8   :  { %5820 = vmatprep.subr.bf16.mxu0 %v6420_v55 }
 0x4da   :  { %5805 = vmatmul.mubr.bf16.vlgmr.msra.gmra.mrb[80].mxu0 %v2132_v39  ;;  %v6423_v39 = vld [vmem:[%s8714_s7 + $0x98] sm:$0xff]  }
 0x4db   :  { %5808 = vmatprep.mubr.bf16.mxu0 %v2133_v15  ;;  %5821 = vmatpush3.bf16.msra.mxu0 %v6420_v55  ;;  %v7645_v41 = vpop.f32.mrb[52].mxu1 }
 0x4dc   :  { %5822 = vmatprep.subr.bf16.mxu0 %v6421_v60  ;;  %v2020_v63 = vpop.f32.mrb[53].mxu1 }
 0x4dd   :  { %v7650_v43 = vpop.f32.mrb[54].mxu1 }
 0x4de   :  { %v2150_v3 = vpack.c.bf16 %v7650_v43, %v7645_v41  ;;  %v2023_v54 = vpop.f32.mrb[55].mxu1 }
 0x4df   :  { %5823 = vmatpush3.bf16.msra.mxu0 %v6421_v60  ;;  %v2149_v8 = vpack.c.bf16 %v2023_v54, %v2020_v63 }
 0x4e0   :  { %5824 = vmatprep.subr.bf16.mxu0 %v6422_v12 }
 0x4e2   :  { %5809 = vmatmul.mubr.bf16.gmra.mrb[84].mxu0 %v2134_v16  ;;  %v6425_v16 = vld [vmem:[%s8714_s7 + $0xa8] sm:$0xff]  }
 0x4e3   :  { %5812 = vmatprep.mubr.bf16.mxu0 %v2135_v25  ;;  %5825 = vmatpush3.bf16.msra.mxu0 %v6422_v12  ;;  %v7663_v18 = vpop.f32.mrb[56].mxu1 }
 0x4e4   :  { %5826 = vmatprep.subr.bf16.mxu0 %v6423_v39  ;;  %v2036_v15 = vpop.f32.mrb[57].mxu1 }
 0x4e5   :  { %v7668_v7 = vpop.f32.mrb[58].mxu1 }
 0x4e6   :  { %v2152_v29 = vpack.c.bf16 %v7668_v7, %v7663_v18  ;;  %v2039_v37 = vpop.f32.mrb[59].mxu1 }
 0x4e7   :  { %5827 = vmatpush3.bf16.msra.mxu0 %v6423_v39  ;;  %v2151_v22 = vpack.c.bf16 %v2039_v37, %v2036_v15 }
 0x4e8   :  { %5828 = vmatprep.subr.bf16.mxu0 %v6424_v26 }
 0x4ea   :  { %5813 = vmatmul.mubr.bf16.gmra.mrb[88].mxu0 %v2136_v21  ;;  %v6427_v21 = vld [vmem:[%s8714_s7 + $0xb8] sm:$0xff]  }
 0x4eb   :  { %5816 = vmatprep.mubr.bf16.mxu0 %v2137_v2  ;;  %5829 = vmatpush3.bf16.msra.mxu0 %v6424_v26  ;;  %v7681_v27 = vpop.f32.mrb[60].mxu1  ;;  %v6603_v26 = vld [vmem:[%s8729_s20] sm:$0xff]  }
 0x4ec   :  { %5830 = vmatprep.subr.bf16.mxu0 %v6425_v16  ;;  %v2052_v25 = vpop.f32.mrb[61].mxu1 }
 0x4ed   :  { %v7686_v5 = vpop.f32.mrb[62].mxu1 }
 0x4ee   :  { %v2154_v59 = vpack.c.bf16 %v7686_v5, %v7681_v27  ;;  %v2055_v50 = vpop.f32.mrb[63].mxu1 }
 0x4ef   :  { %5831 = vmatpush3.bf16.msra.mxu0 %v6425_v16  ;;  %v2153_v36 = vpack.c.bf16 %v2055_v50, %v2052_v25 }
 0x4f0   :  { %5832 = vmatprep.subr.bf16.mxu0 %v6426_v24 }
 0x4f2   :  { %5817 = vmatmul.mubr.bf16.gmra.mrb[92].mxu0 %v2138_v56  ;;  %v6430_v56 = vld [vmem:[%s8714_s7 + $0xd0] sm:$0xff]  }
 0x4f3   :  { %5833 = vmatpush3.bf16.msra.mxu0 %v6426_v24  ;;  %5836 = vmatprep.mubr.bf16.mxu0 %v2147_v53  ;;  %v5742_v49 = vpop.f32.mrb[64].mxu1 }
 0x4f4   :  { %5834 = vmatprep.subr.bf16.mxu0 %v6427_v21  ;;  %v2068_v2 = vpop.f32.mrb[65].mxu1 }
 0x4f5   :  { %v5743_v57 = vpop.f32.mrb[66].mxu1 }
 0x4f6   :  { %v2156_v9 = vpack.c.bf16 %v5743_v57, %v5742_v49  ;;  %v2071_v47 = vpop.f32.mrb[67].mxu1 }
 0x4f7   :  { %5835 = vmatpush3.bf16.msra.mxu0 %v6427_v21  ;;  %v2155_v23 = vpack.c.bf16 %v2071_v47, %v2068_v2 }
 0x4f8   :  { %5852 = vmatprep.subr.bf16.mxu0 %v6428_v1 }
 0x4fa   :  { %5837 = vmatmul.mubr.bf16.vlgmr.msra.gmra.mrb[80].mxu0 %v2148_v45 }
 0x4fb   :  { %5853 = vmatpush3.bf16.msra.mxu0 %v6428_v1  ;;  %5840 = vmatprep.mubr.bf16.mxu0 %v2149_v8  ;;  %v5746_v52 = vpop.f32.mrb[68].mxu1 }
 0x4fc   :  { %5854 = vmatprep.subr.bf16.mxu0 %v6429_v62  ;;  %v2084_v10 = vpop.f32.mrb[69].mxu1 }
 0x4fd   :  { %v5747_v6 = vpop.f32.mrb[70].mxu1 }
 0x4fe   :  { %v2158_v61 = vpack.c.bf16 %v5747_v6, %v5746_v52  ;;  %v2087_v42 = vpop.f32.mrb[71].mxu1 }
 0x4ff   :  { %5855 = vmatpush3.bf16.msra.mxu0 %v6429_v62  ;;  %v2157_v46 = vpack.c.bf16 %v2087_v42, %v2084_v10 }
 0x500   :  { %5856 = vmatprep.subr.bf16.mxu0 %v6430_v56 }
 0x502   :  { %5841 = vmatmul.mubr.bf16.gmra.mrb[84].mxu0 %v2150_v3 }
 0x503   :  { %5857 = vmatpush3.bf16.msra.mxu0 %v6430_v56  ;;  %5844 = vmatprep.mubr.bf16.mxu0 %v2151_v22  ;;  %v5750_v30 = vpop.f32.mrb[72].mxu1 }
 0x504   :  { %5858 = vmatprep.subr.bf16.mxu0 %v6431_v35  ;;  %v2100_v14 = vpop.f32.mrb[73].mxu1 }
 0x505   :  { %v5751_v0 = vpop.f32.mrb[74].mxu1 }
 0x506   :  { %v2160_v17 = vpack.c.bf16 %v5751_v0, %v5750_v30  ;;  %v2103_v13 = vpop.f32.mrb[75].mxu1 }
 0x507   :  { %5859 = vmatpush3.bf16.msra.mxu0 %v6431_v35  ;;  %v2159_v32 = vpack.c.bf16 %v2103_v13, %v2100_v14 }
 0x508   :  { %5860 = vmatprep.subr.bf16.mxu0 %v6432_v31 }
 0x50a   :  { %5845 = vmatmul.mubr.bf16.gmra.mrb[88].mxu0 %v2152_v29 }
 0x50b   :  { %5861 = vmatpush3.bf16.msra.mxu0 %v6432_v31  ;;  %5848 = vmatprep.mubr.bf16.mxu0 %v2153_v36  ;;  %v5754_v11 = vpop.f32.mrb[76].mxu1 }
 0x50c   :  { %5862 = vmatprep.subr.bf16.mxu0 %v6433_v28  ;;  %v2116_v33 = vpop.f32.mrb[77].mxu1 }
 0x50d   :  { %v5755_v19 = vpop.f32.mrb[78].mxu1 }
 0x50e   :  { %v2162_v34 = vpack.c.bf16 %v5755_v19, %v5754_v11  ;;  %v2119_v51 = vpop.f32.mrb[79].mxu1 }
 0x50f   :  { %5863 = vmatpush3.bf16.msra.mxu0 %v6433_v28  ;;  %v2161_v40 = vpack.c.bf16 %v2119_v51, %v2116_v33 }
 0x510   :  { %5864 = vmatprep.subr.bf16.mxu0 %v6434_v48 }
 0x512   :  { %5849 = vmatmul.mubr.bf16.gmra.mrb[92].mxu0 %v2154_v59 }
 0x513   :  { %5865 = vmatpush3.bf16.msra.mxu0 %v6434_v48  ;;  %v7720_v55 = vpop.f32.mrb[80].mxu1  ;;  %5868 = vmatprep.mubr.bf16.mxu0 %v2155_v23 }
 0x514   :  { %v7722_v4 = vpop.f32.mrb[81].mxu1  ;;  %5866 = vmatprep.subr.bf16.mxu0 %v6435_v20 }
 0x515   :  { %v7724_v38 = vpop.f32.mrb[82].mxu1 }
 0x516   :  { %v7726_v45 = vpop.f32.mrb[83].mxu1 }
 0x517   :  { %5867 = vmatpush3.bf16.msra.mxu0 %v6435_v20 }
 0x51a   :  { %5869 = vmatmul.mubr.bf16.vlgmr.msra.gmra.mrb[80].mxu0 %v2156_v9 }
 0x51b   :  { %v7728_v44 = vpop.f32.mrb[84].mxu1  ;;  %5872 = vmatprep.mubr.bf16.mxu0 %v2157_v46 }
 0x51c   :  { %v7730_v53 = vpop.f32.mrb[85].mxu1 }
 0x51d   :  { %v7732_v60 = vpop.f32.mrb[86].mxu1 }
 0x51e   :  { %v7734_v41 = vpop.f32.mrb[87].mxu1 }
 0x522   :  { %5873 = vmatmul.mubr.bf16.gmra.mrb[84].mxu0 %v2158_v61 }
 0x523   :  { %v7736_v12 = vpop.f32.mrb[88].mxu1  ;;  %5876 = vmatprep.mubr.bf16.mxu0 %v2159_v32 }
 0x524   :  { %v7738_v63 = vpop.f32.mrb[89].mxu1 }
 0x525   :  { %v7740_v43 = vpop.f32.mrb[90].mxu1 }
 0x526   :  { %v7742_v3 = vpop.f32.mrb[91].mxu1 }
 0x52a   :  { %5877 = vmatmul.mubr.bf16.gmra.mrb[88].mxu0 %v2160_v17 }
 0x52b   :  { %v7744_v54 = vpop.f32.mrb[92].mxu1  ;;  %5880 = vmatprep.mubr.bf16.mxu0 %v2161_v40 }
 0x52c   :  { %v7746_v8 = vpop.f32.mrb[93].mxu1 }
 0x52d   :  { %v7748_v39 = vpop.f32.mrb[94].mxu1 }
 0x52e   :  { %v7750_v18 = vpop.f32.mrb[95].mxu1 }
 0x532   :  { %5881 = vmatmul.mubr.bf16.gmra.mrb[92].mxu0 %v2162_v34 }
 0x533   :  { %5932 = vmatprep.mubr.bf16.mxu0 %v6603_v26 }
 0x5ed   :  { %v5870_v15 = vpop.f32.mrb[80].mxu0 }
 0x5ee   :  { %v2763_v7 = vpop.f32.mrb[81].mxu0 }
 0x5ef   :  { %2842 = vadd.xlane.f32.xlu0 %v2763_v7  ;;  %v5871_v29 = vpop.f32.mrb[82].mxu0 }
 0x5f0   :  { %v2766_v37 = vpop.f32.mrb[83].mxu0 }
 0x5f1   :  { %2844 = vadd.xlane.f32.xlu1 %v2766_v37 }
 0x5f3   :  { %2846 = vadd.xlane.f32.xlu0 %v5870_v15 }
 0x5f5   :  { %2848 = vadd.xlane.f32.xlu1 %v5871_v29  ;;  %v7755_v22 = vpop.f32.mrb[84].mxu0 }
 0x5f6   :  { %v2779_v16 = vpop.f32.mrb[85].mxu0 }
 0x5f7   :  { %2850 = vadd.xlane.f32.xlu0 %v2779_v16  ;;  %v7757_v27 = vpop.f32.mrb[86].mxu0 }
 0x5f8   :  { %v2782_v24 = vpop.f32.mrb[87].mxu0 }
 0x5f9   :  { %2852 = vadd.xlane.f32.xlu1 %v2782_v24 }
 0x5fb   :  { %2854 = vadd.xlane.f32.xlu0 %v7755_v22 }
 0x5fd   :  { %2856 = vadd.xlane.f32.xlu1 %v7757_v27  ;;  %v7761_v25 = vpop.f32.mrb[88].mxu0 }
 0x5fe   :  { %v7763_v5 = vpop.f32.mrb[89].mxu0 }
 0x5ff   :  { %2858 = vadd.xlane.f32.xlu0 %v7763_v5  ;;  %v7766_v59 = vpop.f32.mrb[90].mxu0 }
 0x600   :  { %v7768_v50 = vpop.f32.mrb[91].mxu0 }
 0x601   :  { %2860 = vadd.xlane.f32.xlu1 %v7768_v50 }
 0x603   :  { %2862 = vadd.xlane.f32.xlu0 %v7761_v25 }
 0x605   :  { %2864 = vadd.xlane.f32.xlu1 %v7766_v59  ;;  %v7773_v36 = vpop.f32.mrb[92].mxu0 }
 0x606   :  { %v7775_v21 = vpop.f32.mrb[93].mxu0 }
 0x607   :  { %2866 = vadd.xlane.f32.xlu0 %v7775_v21  ;;  %v7778_v49 = vpop.f32.mrb[94].mxu0 }
 0x608   :  { %v7780_v1 = vpop.f32.mrb[95].mxu0 }
 0x609   :  { %2868 = vadd.xlane.f32.xlu1 %v7780_v1 }
 0x60b   :  { %2870 = vadd.xlane.f32.xlu0 %v7773_v36 }
 0x60d   :  { %2872 = vadd.xlane.f32.xlu1 %v7778_v49 }
 0x67c   :  { %v2843_v2 = vpop.xlane.xlu0 %2842 }
 0x67d   :  { %v2874_v57 = vmul.f32 0.03125, %v2843_v2 }
 0x67e   :  { %v2845_v9 = vpop.xlane.xlu1 %2844 }
 0x67f   :  { %v2890_v47 = vsub.f32 %v2763_v7, %v2874_v57  ;;  %v2875_v23 = vmul.f32 0.03125, %v2845_v9 }
 0x680   :  { %v2847_v62 = vpop.xlane.xlu0 %2846 }
 0x681   :  { %v2891_v52 = vsub.f32 %v2766_v37, %v2875_v23  ;;  %v2876_v56 = vmul.f32 0.03125, %v2847_v62  ;;  %v7787_v10 = vsel %vm1379_vm0, %v2890_v47, 0.0 }
 0x682   :  { %v2849_v6 = vpop.xlane.xlu1 %2848  ;;  %v2922_v61 = vmul.f32 %v7787_v10, %v7787_v10 }
 0x683   :  { %v2892_v42 = vsub.f32 %v5870_v15, %v2876_v56  ;;  %v2877_v46 = vmul.f32 0.03125, %v2849_v6  ;;  %v7793_v35 = vsel %vm1379_vm0, %v2891_v52, 0.0 }
 0x684   :  { %v2851_v30 = vpop.xlane.xlu0 %2850  ;;  %2938 = vadd.xlane.f32.xlu0 %v2922_v61  ;;  %v2923_v31 = vmul.f32 %v7793_v35, %v7793_v35 }
 0x685   :  { %v2893_v14 = vsub.f32 %v5871_v29, %v2877_v46  ;;  %v2878_v0 = vmul.f32 0.03125, %v2851_v30  ;;  %v7799_v17 = vsel %vm1379_vm0, %v2892_v42, 0.0 }
 0x686   :  { %v2853_v13 = vpop.xlane.xlu1 %2852  ;;  %2940 = vadd.xlane.f32.xlu1 %v2923_v31  ;;  %v2924_v32 = vmul.f32 %v7799_v17, %v7799_v17 }
 0x687   :  { %v2894_v28 = vsub.f32 %v2779_v16, %v2878_v0  ;;  %v2879_v11 = vmul.f32 0.03125, %v2853_v13  ;;  %v7805_v33 = vsel %vm1379_vm0, %v2893_v14, 0.0 }
 0x688   :  { %v2855_v48 = vpop.xlane.xlu0 %2854  ;;  %2942 = vadd.xlane.f32.xlu0 %v2924_v32  ;;  %v2925_v19 = vmul.f32 %v7805_v33, %v7805_v33 }
 0x689   :  { %v2895_v34 = vsub.f32 %v2782_v24, %v2879_v11  ;;  %v2880_v51 = vmul.f32 0.03125, %v2855_v48  ;;  %v7811_v40 = vsel %vm1379_vm0, %v2894_v28, 0.0 }
 0x68a   :  { %v2857_v20 = vpop.xlane.xlu1 %2856  ;;  %2944 = vadd.xlane.f32.xlu1 %v2925_v19  ;;  %v2926_v26 = vmul.f32 %v7811_v40, %v7811_v40 }
 0x68b   :  { %v2896_v15 = vsub.f32 %v7755_v22, %v2880_v51  ;;  %v2881_v7 = vmul.f32 0.03125, %v2857_v20  ;;  %v7818_v29 = vsel %vm1379_vm0, %v2895_v34, 0.0 }
 0x68c   :  { %v2859_v37 = vpop.xlane.xlu0 %2858  ;;  %2946 = vadd.xlane.f32.xlu0 %v2926_v26  ;;  %v2927_v16 = vmul.f32 %v7818_v29, %v7818_v29 }
 0x68d   :  { %v2897_v24 = vsub.f32 %v7757_v27, %v2881_v7  ;;  %v2882_v2 = vmul.f32 0.03125, %v2859_v37  ;;  %v7825_v57 = vsel %vm1379_vm0, %v2896_v15, 0.0 }
 0x68e   :  { %v2861_v9 = vpop.xlane.xlu1 %2860  ;;  %2948 = vadd.xlane.f32.xlu1 %v2927_v16  ;;  %v2928_v22 = vmul.f32 %v7825_v57, %v7825_v57 }
 0x68f   :  { %v2898_v47 = vsub.f32 %v7763_v5, %v2882_v2  ;;  %v2883_v23 = vmul.f32 0.03125, %v2861_v9  ;;  %v7832_v62 = vsel %vm1379_vm0, %v2897_v24, 0.0 }
 0x690   :  { %v2863_v52 = vpop.xlane.xlu0 %2862  ;;  %2950 = vadd.xlane.f32.xlu0 %v2928_v22  ;;  %v2929_v27 = vmul.f32 %v7832_v62, %v7832_v62 }
 0x691   :  { %v2899_v56 = vsub.f32 %v7768_v50, %v2883_v23  ;;  %v2884_v6 = vmul.f32 0.03125, %v2863_v52  ;;  %v7839_v61 = vsel %vm1379_vm0, %v2898_v47, 0.0 }
 0x692   :  { %v2865_v42 = vpop.xlane.xlu1 %2864  ;;  %2952 = vadd.xlane.f32.xlu1 %v2929_v27  ;;  %v2930_v5 = vmul.f32 %v7839_v61, %v7839_v61 }
 0x693   :  { %v2900_v46 = vsub.f32 %v7761_v25, %v2884_v6  ;;  %v2885_v30 = vmul.f32 0.03125, %v2865_v42  ;;  %v7846_v31 = vsel %vm1379_vm0, %v2899_v56, 0.0 }
 0x694   :  { %2954 = vadd.xlane.f32.xlu0 %v2930_v5  ;;  %v2867_v14 = vpop.xlane.xlu0 %2866  ;;  %v2931_v50 = vmul.f32 %v7846_v31, %v7846_v31 }
 0x695   :  { %v2901_v0 = vsub.f32 %v7766_v59, %v2885_v30  ;;  %v2886_v13 = vmul.f32 0.03125, %v2867_v14  ;;  %v7853_v32 = vsel %vm1379_vm0, %v2900_v46, 0.0 }
 0x696   :  { %2956 = vadd.xlane.f32.xlu1 %v2931_v50  ;;  %v2869_v28 = vpop.xlane.xlu1 %2868  ;;  %v2932_v25 = vmul.f32 %v7853_v32, %v7853_v32 }
 0x697   :  { %v2902_v11 = vsub.f32 %v7775_v21, %v2886_v13  ;;  %v2887_v48 = vmul.f32 0.03125, %v2869_v28  ;;  %v7860_v19 = vsel %vm1379_vm0, %v2901_v0, 0.0 }
 0x698   :  { %2958 = vadd.xlane.f32.xlu0 %v2932_v25  ;;  %v2871_v34 = vpop.xlane.xlu0 %2870  ;;  %v2933_v59 = vmul.f32 %v7860_v19, %v7860_v19 }
 0x699   :  { %v2903_v51 = vsub.f32 %v7780_v1, %v2887_v48  ;;  %v2888_v20 = vmul.f32 0.03125, %v2871_v34  ;;  %v7867_v26 = vsel %vm1379_vm0, %v2902_v11, 0.0 }
 0x69a   :  { %2960 = vadd.xlane.f32.xlu1 %v2933_v59  ;;  %v2873_v15 = vpop.xlane.xlu1 %2872  ;;  %v2934_v21 = vmul.f32 %v7867_v26, %v7867_v26 }
 0x69b   :  { %v2904_v7 = vsub.f32 %v7773_v36, %v2888_v20  ;;  %v2889_v37 = vmul.f32 0.03125, %v2873_v15  ;;  %v7874_v16 = vsel %vm1379_vm0, %v2903_v51, 0.0 }
 0x69c   :  { %2962 = vadd.xlane.f32.xlu0 %v2934_v21  ;;  %v2935_v1 = vmul.f32 %v7874_v16, %v7874_v16  ;;  %v7894_v21 = vld [vmem:[%s8715_s10] ss:$0 sm:$0xff] }
 0x69d   :  { %v2905_v24 = vsub.f32 %v7778_v49, %v2889_v37  ;;  %v7881_v2 = vsel %vm1379_vm0, %v2904_v7, 0.0 }
 0x69e   :  { %2964 = vadd.xlane.f32.xlu1 %v2935_v1  ;;  %v2936_v9 = vmul.f32 %v7881_v2, %v7881_v2 }
 0x69f   :  { %v7887_v36 = vsel %vm1379_vm0, %v2905_v24, 0.0 }
 0x6a0   :  { %2966 = vadd.xlane.f32.xlu0 %v2936_v9  ;;  %v2937_v22 = vmul.f32 %v7887_v36, %v7887_v36 }
 0x6a2   :  { %2968 = vadd.xlane.f32.xlu1 %v2937_v22  ;;  %v7900_v22 = vld [vmem:[%s8716_s11] ss:$0 sm:$0xff] }
 0x711   :  { %v2939_v47 = vpop.xlane.xlu0 %2938 }
 0x712   :  { %v2970_v23 = vmul.f32 0.03125, %v2939_v47 }
 0x713   :  { %v2941_v49 = vpop.xlane.xlu1 %2940 }
 0x714   :  { %v2986_v52 = vadd.f32 1e-05, %v2970_v23  ;;  %v2971_v27 = vmul.f32 0.03125, %v2941_v49 }
 0x715   :  { %v2943_v56 = vpop.xlane.xlu0 %2942 }
 0x716   :  { %6508 = vrsqrt.f32 %v2986_v52  ;;  %v2987_v6 = vadd.f32 1e-05, %v2971_v27  ;;  %v2972_v42 = vmul.f32 0.03125, %v2943_v56 }
 0x717   :  { %v2945_v5 = vpop.xlane.xlu1 %2944 }
 0x718   :  { %6510 = vrsqrt.f32 %v2987_v6  ;;  %v2988_v46 = vadd.f32 1e-05, %v2972_v42  ;;  %v2973_v30 = vmul.f32 0.03125, %v2945_v5 }
 0x719   :  { %v2947_v14 = vpop.xlane.xlu0 %2946 }
 0x71a   :  { %6512 = vrsqrt.f32 %v2988_v46  ;;  %v2989_v50 = vadd.f32 1e-05, %v2973_v30  ;;  %v2974_v0 = vmul.f32 0.03125, %v2947_v14 }
 0x71b   :  { %v2949_v13 = vpop.xlane.xlu1 %2948 }
 0x71c   :  { %6514 = vrsqrt.f32 %v2989_v50  ;;  %v2990_v28 = vadd.f32 1e-05, %v2974_v0  ;;  %v2975_v25 = vmul.f32 0.03125, %v2949_v13 }
 0x71d   :  { %v2951_v11 = vpop.xlane.xlu0 %2950 }
 0x71e   :  { %6516 = vrsqrt.f32 %v2990_v28  ;;  %v2991_v48 = vadd.f32 1e-05, %v2975_v25  ;;  %v2976_v34 = vmul.f32 0.03125, %v2951_v11 }
 0x71f   :  { %v2953_v59 = vpop.xlane.xlu1 %2952 }
 0x720   :  { %v6509_v51 = vpop.eup %6508  ;;  %6518 = vrsqrt.f32 %v2991_v48  ;;  %v2992_v20 = vadd.f32 1e-05, %v2976_v34  ;;  %v2977_v15 = vmul.f32 0.03125, %v2953_v59 }
 0x721   :  { %v3018_v7 = vmul.f32 %v6509_v51, %v7787_v10  ;;  %v2955_v37 = vpop.xlane.xlu0 %2954  ;;  %v7907_v10 = vld [vmem:[%s8717_s9] ss:$0 sm:$0xff] }
 0x722   :  { %v6511_v1 = vpop.eup %6510  ;;  %6520 = vrsqrt.f32 %v2992_v20  ;;  %v2993_v24 = vadd.f32 1e-05, %v2977_v15  ;;  %v2978_v9 = vmul.f32 0.03125, %v2955_v37 }
 0x723   :  { %v3019_v47 = vmul.f32 %v6511_v1, %v7793_v35  ;;  %v2957_v23 = vpop.xlane.xlu1 %2956  ;;  %v3041_v49 = vmul.f32 %v7894_v21, %v3018_v7 }
 0x724   :  { %v6513_v52 = vpop.eup %6512  ;;  %6522 = vrsqrt.f32 %v2993_v24  ;;  %v2994_v27 = vadd.f32 1e-05, %v2978_v9  ;;  %v2979_v56 = vmul.f32 0.03125, %v2957_v23 }
 0x725   :  { %v3020_v6 = vmul.f32 %v6513_v52, %v7799_v17  ;;  %v2959_v42 = vpop.xlane.xlu0 %2958  ;;  %v3042_v5 = vmul.f32 %v7894_v21, %v3019_v47  ;;  %v3064_v46 = vadd.f32 %v7900_v22, %v3041_v49 }
 0x726   :  { %v6515_v35 = vpop.eup %6514  ;;  %6524 = vrsqrt.f32 %v2994_v27  ;;  %v2995_v30 = vadd.f32 1e-05, %v2979_v56  ;;  %v2980_v14 = vmul.f32 0.03125, %v2959_v42 }
 0x727   :  { %v3021_v50 = vmul.f32 %v6515_v35, %v7805_v33  ;;  %v2961_v0 = vpop.xlane.xlu1 %2960  ;;  %v3065_v13 = vadd.f32 %v7900_v22, %v3042_v5  ;;  %v3087_v28 = vadd.f32 %v7907_v10, %v3064_v46  ;;  %v3043_v25 = vmul.f32 %v7894_v21, %v3020_v6 }
 0x728   :  { %v6517_v11 = vpop.eup %6516  ;;  %6526 = vrsqrt.f32 %v2995_v30  ;;  %v2996_v17 = vadd.f32 1e-05, %v2980_v14  ;;  %v2981_v48 = vmul.f32 0.03125, %v2961_v0 }
 0x729   :  { %v3022_v34 = vmul.f32 %v6517_v11, %v7811_v40  ;;  %v2963_v59 = vpop.xlane.xlu0 %2962  ;;  %v3088_v51 = vadd.f32 %v7907_v10, %v3065_v13  ;;  %v3264_v20 = vadd.f32 %v7722_v4, %v3087_v28  ;;  %v3044_v33 = vmul.f32 %v7894_v21, %v3021_v50 }
 0x72a   :  { %v6519_v15 = vpop.eup %6518  ;;  %6528 = vrsqrt.f32 %v2996_v17  ;;  %v2997_v7 = vadd.f32 1e-05, %v2981_v48  ;;  %v2982_v37 = vmul.f32 0.03125, %v2963_v59  ;;  %v3066_v1 = vadd.f32 %v7900_v22, %v3043_v25 }
 0x72b   :  { %v3023_v24 = vmul.f32 %v6519_v15, %v7818_v29  ;;  %v2965_v9 = vpop.xlane.xlu1 %2964  ;;  %v3265_v47 = vadd.f32 %v7726_v45, %v3088_v51  ;;  %v3280_v23 = vmax.f32 %v3264_v20, 0.0  ;;  %v3067_v40 = vadd.f32 %v7900_v22, %v3044_v33 }
 0x72c   :  { %v6521_v49 = vpop.eup %6520  ;;  %6530 = vrsqrt.f32 %v2997_v7  ;;  %v2998_v52 = vadd.f32 1e-05, %v2982_v37  ;;  %v2983_v4 = vmul.f32 0.03125, %v2965_v9  ;;  %v3089_v27 = vadd.f32 %v7907_v10, %v3066_v1 }
 0x72d   :  { %v3024_v56 = vmul.f32 %v6521_v49, %v7825_v57  ;;  %v2967_v6 = vpop.xlane.xlu0 %2966  ;;  %v3281_v42 = vmax.f32 %v3265_v47, 0.0  ;;  %v3090_v5 = vadd.f32 %v7907_v10, %v3067_v40  ;;  %v3045_v29 = vmul.f32 %v7894_v21, %v3022_v34 }
 0x72e   :  { %v6523_v46 = vpop.eup %6522  ;;  %6532 = vrsqrt.f32 %v2998_v52  ;;  %v2999_v45 = vadd.f32 1e-05, %v2983_v4  ;;  %v2984_v35 = vmul.f32 0.03125, %v2967_v6  ;;  %v3266_v30 = vadd.f32 %v7720_v55, %v3089_v27 }
 0x72f   :  { %v3025_v14 = vmul.f32 %v6523_v46, %v7832_v62  ;;  %v2969_v50 = vpop.xlane.xlu1 %2968  ;;  %v7930_v0 = vpack.c.bf16 %v3281_v42, %v3280_v23  ;;  %v3267_v13 = vadd.f32 %v7724_v38, %v3090_v5  ;;  %v3046_v57 = vmul.f32 %v7894_v21, %v3023_v24 }
 0x730   :  { %v6525_v28 = vpop.eup %6524  ;;  %6534 = vrsqrt.f32 %v2999_v45  ;;  %v3000_v25 = vadd.f32 1e-05, %v2984_v35  ;;  %v2985_v11 = vmul.f32 0.03125, %v2969_v50  ;;  %v3282_v17 = vmax.f32 %v3266_v30, 0.0 }
 0x731   :  { %v3026_v48 = vmul.f32 %v6525_v28, %v7839_v61  ;;  %5916 = vmatprep.subr.bf16.mxu0 %v7930_v0  ;;  %v3283_v34 = vmax.f32 %v3267_v13, 0.0  ;;  %v3068_v55 = vadd.f32 %v7900_v22, %v3045_v29  ;;  %v3069_v62 = vadd.f32 %v7900_v22, %v3046_v57 }
 0x732   :  { %v6527_v59 = vpop.eup %6526  ;;  %6536 = vrsqrt.f32 %v3000_v25  ;;  %v3001_v51 = vadd.f32 1e-05, %v2985_v11  ;;  %5917 = vmatpush3.bf16.msra.mxu0 %v7930_v0  ;;  %v3047_v38 = vmul.f32 %v7894_v21, %v3024_v56  ;;  %v3048_v20 = vmul.f32 %v7894_v21, %v3025_v14 }
 0x733   :  { %v3027_v33 = vmul.f32 %v6527_v59, %v7846_v31  ;;  %v7942_v15 = vpack.c.bf16 %v3283_v34, %v3282_v17  ;;  %v3091_v61 = vadd.f32 %v7907_v10, %v3068_v55  ;;  %v3092_v7 = vadd.f32 %v7907_v10, %v3069_v62 }
 0x734   :  { %v6529_v37 = vpop.eup %6528  ;;  %6538 = vrsqrt.f32 %v3001_v51  ;;  %v3070_v1 = vadd.f32 %v7900_v22, %v3047_v38  ;;  %v3071_v24 = vadd.f32 %v7900_v22, %v3048_v20  ;;  %v3049_v9 = vmul.f32 %v7894_v21, %v3026_v48 }
 0x735   :  { %v3028_v47 = vmul.f32 %v6529_v37, %v7853_v32  ;;  %5918 = vmatprep.subr.bf16.mxu0 %v7942_v15  ;;  %v3268_v31 = vadd.f32 %v7730_v53, %v3091_v61  ;;  %v3269_v23 = vadd.f32 %v7734_v41, %v3092_v7  ;;  %v3050_v40 = vmul.f32 %v7894_v21, %v3027_v33 }
 0x736   :  { %v6531_v49 = vpop.eup %6530  ;;  %5919 = vmatpush3.bf16.msra.mxu0 %v7942_v15  ;;  %v3093_v52 = vadd.f32 %v7907_v10, %v3070_v1  ;;  %v3094_v4 = vadd.f32 %v7907_v10, %v3071_v24  ;;  %v3072_v27 = vadd.f32 %v7900_v22, %v3049_v9 }
 0x737   :  { %v3029_v56 = vmul.f32 %v6531_v49, %v7860_v19  ;;  %v3284_v32 = vmax.f32 %v3268_v31, 0.0  ;;  %v3285_v6 = vmax.f32 %v3269_v23, 0.0  ;;  %v3073_v42 = vadd.f32 %v7900_v22, %v3050_v40 }
 0x738   :  { %v6533_v53 = vpop.eup %6532  ;;  %v3270_v41 = vadd.f32 %v7728_v44, %v3093_v52  ;;  %v3271_v5 = vadd.f32 %v7732_v60, %v3094_v4  ;;  %v3095_v29 = vadd.f32 %v7907_v10, %v3072_v27  ;;  %v3051_v46 = vmul.f32 %v7894_v21, %v3028_v47 }
 0x739   :  { %v3030_v45 = vmul.f32 %v6533_v53, %v7867_v26  ;;  %v7965_v35 = vpack.c.bf16 %v3285_v6, %v3284_v32  ;;  %v3096_v30 = vadd.f32 %v7907_v10, %v3073_v42  ;;  %v3052_v19 = vmul.f32 %v7894_v21, %v3029_v56  ;;  %v6605_v56 = vld [vmem:[%s8729_s20 + $0x10] sm:$0xff]   ;;  %v8047_v6 = vld [vmem:[%s8718_s13 + $0x18] sm:$0xff]   ;;  %v6607_v53 = vld [vmem:[%s8729_s20 + $0x20] sm:$0xff]  }
 0x73a   :  { %v6535_v14 = vpop.eup %6534  ;;  %v3286_v50 = vmax.f32 %v3270_v41, 0.0  ;;  %v3287_v13 = vmax.f32 %v3271_v5, 0.0  ;;  %v3272_v57 = vadd.f32 %v7738_v63, %v3095_v29  ;;  %v3074_v44 = vadd.f32 %v7900_v22, %v3051_v46  ;;  %v8040_v32 = vld [vmem:[%s8718_s13 + $0x10] sm:$0xff]   ;;  %v6606_v42 = vld [vmem:[%s8729_s20 + $0x18] sm:$0xff]   ;;  %v8060_v41 = vld [vmem:[%s8718_s13 + $0x20] sm:$0xff]  }
 0x73b   :  { %v3031_v60 = vmul.f32 %v6535_v14, %v7874_v16  ;;  %5920 = vmatprep.subr.bf16.mxu0 %v7965_v35  ;;  %v3273_v28 = vadd.f32 %v7742_v3, %v3096_v30  ;;  %v3075_v26 = vadd.f32 %v7900_v22, %v3052_v19  ;;  %v3053_v25 = vmul.f32 %v7894_v21, %v3030_v45  ;;  %v8067_v5 = vld [vmem:[%s8718_s13 + $0x28] sm:$0xff]   ;;  %v6609_v46 = vld [vmem:[%s8729_s20 + $0x30] sm:$0xff]   ;;  %v8087_v30 = vld [vmem:[%s8718_s13 + $0x38] sm:$0xff]  }
 0x73c   :  { %v6537_v11 = vpop.eup %6536  ;;  %5921 = vmatpush3.bf16.msra.mxu0 %v7965_v35  ;;  %v7977_v17 = vpack.c.bf16 %v3287_v13, %v3286_v50  ;;  %v3288_v48 = vmax.f32 %v3272_v57, 0.0  ;;  %v3097_v63 = vadd.f32 %v7907_v10, %v3074_v44  ;;  %v6608_v29 = vld [vmem:[%s8729_s20 + $0x28] sm:$0xff]   ;;  %v8080_v45 = vld [vmem:[%s8718_s13 + $0x30] sm:$0xff]   ;;  %v6610_v19 = vld [vmem:[%s8729_s20 + $0x38] sm:$0xff]  }
 0x73d   :  { %v3032_v34 = vmul.f32 %v6537_v11, %v7881_v2  ;;  %v3289_v55 = vmax.f32 %v3273_v28, 0.0  ;;  %v3098_v16 = vadd.f32 %v7907_v10, %v3075_v26  ;;  %v3054_v62 = vmul.f32 %v7894_v21, %v3031_v60  ;;  %v6611_v14 = vld [vmem:[%s8729_s20 + $0x40] sm:$0xff]   ;;  %v6612_v50 = vld [vmem:[%s8729_s20 + $0x48] sm:$0xff]   ;;  %v6613_v13 = vld [vmem:[%s8729_s20 + $0x50] sm:$0xff]  }
 0x73e   :  { %v6539_v3 = vpop.eup %6538  ;;  %5922 = vmatprep.subr.bf16.mxu0 %v7977_v17  ;;  %v3274_v59 = vadd.f32 %v7736_v12, %v3097_v63  ;;  %v3076_v51 = vadd.f32 %v7900_v22, %v3053_v25  ;;  %v6614_v57 = vld [vmem:[%s8729_s20 + $0x58] sm:$0xff]   ;;  %v6615_v44 = vld [vmem:[%s8729_s20 + $0x60] sm:$0xff]   ;;  %v6616_v60 = vld [vmem:[%s8729_s20 + $0x68] sm:$0xff]  }
 0x73f   :  { %v3033_v38 = vmul.f32 %v6539_v3, %v7887_v36  ;;  %v7987_v20 = vpack.c.bf16 %v3289_v55, %v3288_v48  ;;  %v3275_v33 = vadd.f32 %v7740_v43, %v3098_v16  ;;  %v3077_v2 = vadd.f32 %v7900_v22, %v3054_v62  ;;  %v6617_v28 = vld [vmem:[%s8729_s20 + $0x70] sm:$0xff]   ;;  %v6618_v26 = vld [vmem:[%s8729_s20 + $0x78] sm:$0xff]   ;;  %v6619_v25 = vld [vmem:[%s8729_s20 + $0x80] sm:$0xff]  }
 0x740   :  { %5923 = vmatpush3.bf16.msra.mxu0 %v7977_v17  ;;  %v3099_v61 = vadd.f32 %v7907_v10, %v3076_v51  ;;  %v3055_v7 = vmul.f32 %v7894_v21, %v3032_v34  ;;  %v3290_v37 = vmax.f32 %v3274_v59, 0.0  ;;  %v6620_v11 = vld [vmem:[%s8729_s20 + $0x88] sm:$0xff]   ;;  %v6621_v48 = vld [vmem:[%s8729_s20 + $0x90] sm:$0xff]   ;;  %v6622_v63 = vld [vmem:[%s8729_s20 + $0x98] sm:$0xff]  }
 0x741   :  { %5924 = vmatprep.subr.bf16.mxu0 %v7987_v20  ;;  %v3291_v12 = vmax.f32 %v3275_v33, 0.0  ;;  %v3100_v1 = vadd.f32 %v7907_v10, %v3077_v2  ;;  %v3056_v36 = vmul.f32 %v7894_v21, %v3033_v38  ;;  %v6623_v34 = vld [vmem:[%s8729_s20 + $0xa0] sm:$0xff]   ;;  %v6624_v55 = vld [vmem:[%s8729_s20 + $0xa8] sm:$0xff]   ;;  %v6625_v16 = vld [vmem:[%s8729_s20 + $0xb0] sm:$0xff]  }
 0x742   :  { %v3276_v24 = vadd.f32 %v7746_v8, %v3099_v61  ;;  %v3078_v43 = vadd.f32 %v7900_v22, %v3055_v7  ;;  %v6626_v62 = vld [vmem:[%s8729_s20 + $0xb8] sm:$0xff]   ;;  %v6444_v3 = vld [vmem:[%s8719_s12 + $0x40] sm:$0xff]   ;;  %v6445_v51 = vld [vmem:[%s8719_s12 + $0x48] sm:$0xff]  }
 0x743   :  { %v7999_v9 = vpack.c.bf16 %v3291_v12, %v3290_v37  ;;  %v3277_v47 = vadd.f32 %v7750_v18, %v3100_v1  ;;  %v3079_v31 = vadd.f32 %v7900_v22, %v3056_v36  ;;  %v6627_v59 = vld [vmem:[%s8729_s20 + $0xc0] sm:$0xff]   ;;  %5996 = vmatprep.subr.bf16.mxu1 %v6444_v3  ;;  %v6446_v38 = vld [vmem:[%s8719_s12 + $0x50] sm:$0xff]   ;;  %v6628_v33 = vld [vmem:[%s8729_s20 + $0xc8] sm:$0xff]  }
 0x744   :  { %5925 = vmatpush3.bf16.msra.mxu0 %v7987_v20  ;;  %v3101_v23 = vadd.f32 %v7907_v10, %v3078_v43  ;;  %v3292_v40 = vmax.f32 %v3276_v24, 0.0  ;;  %5997 = vmatpush3.bf16.msra.mxu1 %v6444_v3  ;;  %v6629_v2 = vld [vmem:[%s8729_s20 + $0xd0] sm:$0xff]   ;;  %v6447_v61 = vld [vmem:[%s8719_s12 + $0x58] sm:$0xff]   ;;  %v6448_v7 = vld [vmem:[%s8719_s12 + $0x60] sm:$0xff]  }
 0x745   :  { %5926 = vmatprep.subr.bf16.mxu0 %v7999_v9  ;;  %v3293_v49 = vmax.f32 %v3277_v47, 0.0  ;;  %v3102_v21 = vadd.f32 %v7907_v10, %v3079_v31  ;;  %v6604_v10 = vld [vmem:[%s8729_s20 + $0x8] sm:$0xff]   ;;  %5998 = vmatprep.subr.bf16.mxu1 %v6445_v51  ;;  %v6630_v37 = vld [vmem:[%s8729_s20 + $0xd8] sm:$0xff]   ;;  %v6631_v12 = vld [vmem:[%s8729_s20 + $0xe0] sm:$0xff]  }
 0x746   :  { %v3278_v8 = vadd.f32 %v7744_v54, %v3101_v23  ;;  %v8020_v54 = vld [vmem:[%s8718_s13] sm:$0xff]   ;;  %v6449_v1 = vld [vmem:[%s8719_s12 + $0x68] sm:$0xff]   ;;  %v6450_v36 = vld [vmem:[%s8719_s12 + $0x70] sm:$0xff]  }
 0x747   :  { %v8008_v52 = vpack.c.bf16 %v3293_v49, %v3292_v40  ;;  %v3279_v4 = vadd.f32 %v7748_v39, %v3102_v21  ;;  %v8027_v39 = vld [vmem:[%s8718_s13 + $0x8] sm:$0xff]   ;;  %v6633_v43 = vld [vmem:[%s8729_s20 + $0xf0] sm:$0xff]   ;;  %v6451_v47 = vld [vmem:[%s8719_s12 + $0x78] sm:$0xff]  }
 0x748   :  { %5927 = vmatpush3.bf16.msra.mxu0 %v7999_v9  ;;  %v3294_v18 = vmax.f32 %v3278_v8, 0.0  ;;  %5999 = vmatpush3.bf16.msra.mxu1 %v6445_v51  ;;  %v6632_v24 = vld [vmem:[%s8729_s20 + $0xe8] sm:$0xff]   ;;  %v6634_v31 = vld [vmem:[%s8729_s20 + $0xf8] sm:$0xff]   ;;  %v6452_v23 = vld [vmem:[%s8719_s12] sm:$0xff]  }
 0x749   :  { %5928 = vmatprep.subr.bf16.mxu0 %v8008_v52  ;;  %v3295_v22 = vmax.f32 %v3279_v4, 0.0  ;;  %6000 = vmatprep.subr.bf16.mxu1 %v6446_v38 }
 0x74b   :  { %v8013_v27 = vpack.c.bf16 %v3295_v22, %v3294_v18 }
 0x74c   :  { %5929 = vmatpush3.bf16.msra.mxu0 %v8008_v52  ;;  %6001 = vmatpush3.bf16.msra.mxu1 %v6446_v38 }
 0x74d   :  { %5930 = vmatprep.subr.bf16.mxu0 %v8013_v27  ;;  %6002 = vmatprep.subr.bf16.mxu1 %v6447_v61 }
 0x750   :  { %5931 = vmatpush3.bf16.msra.mxu0 %v8013_v27  ;;  %6003 = vmatpush3.bf16.msra.mxu1 %v6447_v61 }
 0x751   :  { %6124 = vmatprep.subr.bf16.mxu0 %v8020_v54  ;;  %6004 = vmatprep.subr.bf16.mxu1 %v6448_v7 }
 0x753   :  { %5933 = vmatmul.mubr.bf16.vlgmr.msra.gmra.mrb[96].mxu0 %v6604_v10 }
 0x754   :  { %5936 = vmatprep.mubr.bf16.mxu0 %v6605_v56  ;;  %6125 = vmatpush3.bf16.msra.mxu0 %v8020_v54 }
 0x755   :  { %6126 = vmatprep.subr.bf16.mxu0 %v8027_v39  ;;  %6005 = vmatpush3.bf16.msra.mxu1 %v6448_v7  ;;  %v6456_v7 = vld [vmem:[%s8719_s12 + $0x20] sm:$0xff]  }
 0x756   :  { %6006 = vmatprep.subr.bf16.mxu1 %v6449_v1 }
 0x758   :  { %6127 = vmatpush3.bf16.msra.mxu0 %v8027_v39 }
 0x759   :  { %6128 = vmatprep.subr.bf16.mxu0 %v8040_v32  ;;  %6007 = vmatpush3.bf16.msra.mxu1 %v6449_v1 }
 0x75a   :  { %6008 = vmatprep.subr.bf16.mxu1 %v6450_v36 }
 0x75b   :  { %5937 = vmatmul.mubr.bf16.gmra.mrb[100].mxu0 %v6606_v42 }
 0x75c   :  { %5940 = vmatprep.mubr.bf16.mxu0 %v6607_v53  ;;  %6129 = vmatpush3.bf16.msra.mxu0 %v8040_v32 }
 0x75d   :  { %6130 = vmatprep.subr.bf16.mxu0 %v8047_v6  ;;  %6009 = vmatpush3.bf16.msra.mxu1 %v6450_v36 }
 0x75e   :  { %6010 = vmatprep.subr.bf16.mxu1 %v6451_v47 }
 0x760   :  { %6131 = vmatpush3.bf16.msra.mxu0 %v8047_v6 }
 0x761   :  { %6132 = vmatprep.subr.bf16.mxu0 %v8060_v41  ;;  %6011 = vmatpush3.bf16.msra.mxu1 %v6451_v47 }
 0x762   :  { %6028 = vmatprep.subr.bf16.mxu1 %v6452_v23 }
 0x763   :  { %5941 = vmatmul.mubr.bf16.gmra.mrb[104].mxu0 %v6608_v29 }
 0x764   :  { %5944 = vmatprep.mubr.bf16.mxu0 %v6609_v46  ;;  %6133 = vmatpush3.bf16.msra.mxu0 %v8060_v41 }
 0x765   :  { %6134 = vmatprep.subr.bf16.mxu0 %v8067_v5 }
 0x768   :  { %6135 = vmatpush3.bf16.msra.mxu0 %v8067_v5 }
 0x769   :  { %6136 = vmatprep.subr.bf16.mxu0 %v8080_v45 }
 0x76b   :  { %5945 = vmatmul.mubr.bf16.gmra.mrb[108].mxu0 %v6610_v19 }
 0x76c   :  { %5948 = vmatprep.mubr.bf16.mxu0 %v6611_v14  ;;  %6137 = vmatpush3.bf16.msra.mxu0 %v8080_v45 }
 0x76d   :  { %6138 = vmatprep.subr.bf16.mxu0 %v8087_v30 }
 0x770   :  { %6139 = vmatpush3.bf16.msra.mxu0 %v8087_v30 }
 0x773   :  { %5949 = vmatmul.mubr.bf16.gmra.mrb[112].mxu0 %v6612_v50 }
 0x774   :  { %5952 = vmatprep.mubr.bf16.mxu0 %v6613_v13 }
 0x77b   :  { %5953 = vmatmul.mubr.bf16.gmra.mrb[116].mxu0 %v6614_v57 }
 0x77c   :  { %5956 = vmatprep.mubr.bf16.mxu0 %v6615_v44 }
 0x783   :  { %5957 = vmatmul.mubr.bf16.gmra.mrb[120].mxu0 %v6616_v60 }
 0x784   :  { %5960 = vmatprep.mubr.bf16.mxu0 %v6617_v28 }
 0x78b   :  { %5961 = vmatmul.mubr.bf16.gmra.mrb[124].mxu0 %v6618_v26 }
 0x78c   :  { %5964 = vmatprep.mubr.bf16.mxu0 %v6619_v25 }
 0x793   :  { %5965 = vmatmul.mubr.bf16.gmra.mrb[128].mxu0 %v6620_v11 }
 0x794   :  { %5968 = vmatprep.mubr.bf16.mxu0 %v6621_v48 }
 0x79b   :  { %5969 = vmatmul.mubr.bf16.gmra.mrb[132].mxu0 %v6622_v63 }
 0x79c   :  { %5972 = vmatprep.mubr.bf16.mxu0 %v6623_v34  ;;  %v6453_v34 = vld [vmem:[%s8719_s12 + $0x8] sm:$0xff]  }
 0x7a3   :  { %5973 = vmatmul.mubr.bf16.gmra.mrb[136].mxu0 %v6624_v55 }
 0x7a4   :  { %5976 = vmatprep.mubr.bf16.mxu0 %v6625_v16 }
 0x7ab   :  { %5977 = vmatmul.mubr.bf16.gmra.mrb[140].mxu0 %v6626_v62  ;;  %v6454_v62 = vld [vmem:[%s8719_s12 + $0x10] sm:$0xff]  }
 0x7ac   :  { %5980 = vmatprep.mubr.bf16.mxu0 %v6627_v59 }
 0x7b3   :  { %5981 = vmatmul.mubr.bf16.gmra.mrb[144].mxu0 %v6628_v33  ;;  %v6455_v33 = vld [vmem:[%s8719_s12 + $0x18] sm:$0xff]  }
 0x7b4   :  { %5984 = vmatprep.mubr.bf16.mxu0 %v6629_v2 }
 0x7bb   :  { %5985 = vmatmul.mubr.bf16.gmra.mrb[148].mxu0 %v6630_v37 }
 0x7bc   :  { %5988 = vmatprep.mubr.bf16.mxu0 %v6631_v12 }
 0x7c3   :  { %5989 = vmatmul.mubr.bf16.gmra.mrb[152].mxu0 %v6632_v24  ;;  %v6457_v24 = vld [vmem:[%s8719_s12 + $0x28] sm:$0xff]  }
 0x7c4   :  { %5992 = vmatprep.mubr.bf16.mxu0 %v6633_v43 }
 0x7cb   :  { %5993 = vmatmul.mubr.bf16.gmra.mrb[156].mxu0 %v6634_v31  ;;  %v6458_v31 = vld [vmem:[%s8719_s12 + $0x30] sm:$0xff]  }
 0x7cc   :  { %6140 = vmatprep.mubr.bf16.mxu0 %v7930_v0 }
 0x7d3   :  { %6141 = vmatmul.mubr.bf16.vlgmr.msra.gmra.mrb[160].mxu0 %v7942_v15 }
 0x7d4   :  { %6144 = vmatprep.mubr.bf16.mxu0 %v7965_v35 }
 0x7db   :  { %6145 = vmatmul.mubr.bf16.gmra.mrb[164].mxu0 %v7977_v17 }
 0x826   :  { %v8198_v40 = vpop.f32.mrb[96].mxu0 }
 0x827   :  { %v8200_v49 = vpop.f32.mrb[97].mxu0 }
 0x828   :  { %v8202_v21 = vpop.f32.mrb[98].mxu0 }
 0x829   :  { %v3594_v0 = vpack.c.bf16 %v8202_v21, %v8198_v40  ;;  %v8206_v8 = vpop.f32.mrb[99].mxu0 }
 0x82a   :  { %v3593_v4 = vpack.c.bf16 %v8206_v8, %v8200_v49  ;;  %v6461_v49 = vld [vmem:[%s8719_s12 + $0x88] sm:$0xff]  }
 0x82e   :  { %v8210_v18 = vpop.f32.mrb[100].mxu0 }
 0x82f   :  { %v8212_v15 = vpop.f32.mrb[101].mxu0 }
 0x830   :  { %v8214_v35 = vpop.f32.mrb[102].mxu0 }
 0x831   :  { %v3596_v17 = vpack.c.bf16 %v8214_v35, %v8210_v18  ;;  %v8218_v22 = vpop.f32.mrb[103].mxu0 }
 0x832   :  { %v3595_v10 = vpack.c.bf16 %v8218_v22, %v8212_v15  ;;  %v6464_v22 = vld [vmem:[%s8719_s12 + $0xa0] sm:$0xff]  }
 0x836   :  { %v8222_v56 = vpop.f32.mrb[104].mxu0 }
 0x837   :  { %v8224_v42 = vpop.f32.mrb[105].mxu0 }
 0x838   :  { %v8226_v53 = vpop.f32.mrb[106].mxu0 }
 0x839   :  { %v3598_v29 = vpack.c.bf16 %v8226_v53, %v8222_v56  ;;  %v8230_v46 = vpop.f32.mrb[107].mxu0 }
 0x83a   :  { %v3597_v19 = vpack.c.bf16 %v8230_v46, %v8224_v42  ;;  %v6466_v46 = vld [vmem:[%s8719_s12 + $0xb0] sm:$0xff]  }
 0x83e   :  { %v8234_v14 = vpop.f32.mrb[108].mxu0 }
 0x83f   :  { %v8236_v50 = vpop.f32.mrb[109].mxu0 }
 0x840   :  { %v8238_v13 = vpop.f32.mrb[110].mxu0 }
 0x841   :  { %v3600_v57 = vpack.c.bf16 %v8238_v13, %v8234_v14  ;;  %v8242_v44 = vpop.f32.mrb[111].mxu0  ;;  %v6469_v14 = vld [vmem:[%s8719_s12 + $0xc8] sm:$0xff]  }
 0x842   :  { %v3599_v60 = vpack.c.bf16 %v8242_v44, %v8236_v50  ;;  %v6468_v44 = vld [vmem:[%s8719_s12 + $0xc0] sm:$0xff]  }
 0x846   :  { %v5950_v28 = vpop.f32.mrb[112].mxu0 }
 0x847   :  { %v3402_v26 = vpop.f32.mrb[113].mxu0 }
 0x848   :  { %v5951_v25 = vpop.f32.mrb[114].mxu0 }
 0x849   :  { %v3602_v11 = vpack.c.bf16 %v5951_v25, %v5950_v28  ;;  %v3405_v48 = vpop.f32.mrb[115].mxu0 }
 0x84a   :  { %v3601_v63 = vpack.c.bf16 %v3405_v48, %v3402_v26 }
 0x84c   :  { %6012 = vmatprep.mubr.bf16.mxu1 %v3601_v63  ;;  %v6460_v63 = vld [vmem:[%s8719_s12 + $0x80] sm:$0xff]  }
 0x84d   :  { %6013 = vmatmul.mubr.bf16.vlgmr.msra.gmra.mrb[96].mxu1 %v3602_v11  ;;  %v6459_v11 = vld [vmem:[%s8719_s12 + $0x38] sm:$0xff]  }
 0x84e   :  { %v5954_v55 = vpop.f32.mrb[116].mxu0  ;;  %6029 = vmatpush3.bf16.msra.mxu1 %v6452_v23 }
 0x84f   :  { %v3418_v16 = vpop.f32.mrb[117].mxu0  ;;  %6030 = vmatprep.subr.bf16.mxu1 %v6453_v34 }
 0x850   :  { %v5955_v3 = vpop.f32.mrb[118].mxu0 }
 0x851   :  { %v3604_v59 = vpack.c.bf16 %v5955_v3, %v5954_v55  ;;  %v3421_v51 = vpop.f32.mrb[119].mxu0 }
 0x852   :  { %v3603_v38 = vpack.c.bf16 %v3421_v51, %v3418_v16  ;;  %6031 = vmatpush3.bf16.msra.mxu1 %v6453_v34 }
 0x853   :  { %6032 = vmatprep.subr.bf16.mxu1 %v6454_v62 }
 0x854   :  { %6016 = vmatprep.mubr.bf16.mxu1 %v3603_v38 }
 0x855   :  { %6017 = vmatmul.mubr.bf16.gmra.mrb[100].mxu1 %v3604_v59 }
 0x856   :  { %v5958_v2 = vpop.f32.mrb[120].mxu0  ;;  %6033 = vmatpush3.bf16.msra.mxu1 %v6454_v62 }
 0x857   :  { %v3434_v61 = vpop.f32.mrb[121].mxu0  ;;  %6034 = vmatprep.subr.bf16.mxu1 %v6455_v33 }
 0x858   :  { %v5959_v37 = vpop.f32.mrb[122].mxu0 }
 0x859   :  { %v3606_v12 = vpack.c.bf16 %v5959_v37, %v5958_v2  ;;  %v3437_v1 = vpop.f32.mrb[123].mxu0 }
 0x85a   :  { %v3605_v36 = vpack.c.bf16 %v3437_v1, %v3434_v61  ;;  %6035 = vmatpush3.bf16.msra.mxu1 %v6455_v33 }
 0x85b   :  { %6036 = vmatprep.subr.bf16.mxu1 %v6456_v7 }
 0x85c   :  { %6020 = vmatprep.mubr.bf16.mxu1 %v3605_v36 }
 0x85d   :  { %6021 = vmatmul.mubr.bf16.gmra.mrb[104].mxu1 %v3606_v12 }
 0x85e   :  { %v5962_v43 = vpop.f32.mrb[124].mxu0  ;;  %6037 = vmatpush3.bf16.msra.mxu1 %v6456_v7 }
 0x85f   :  { %v3450_v47 = vpop.f32.mrb[125].mxu0  ;;  %6038 = vmatprep.subr.bf16.mxu1 %v6457_v24 }
 0x860   :  { %v5963_v23 = vpop.f32.mrb[126].mxu0 }
 0x861   :  { %v3608_v28 = vpack.c.bf16 %v5963_v23, %v5962_v43  ;;  %v3453_v26 = vpop.f32.mrb[127].mxu0 }
 0x862   :  { %v3607_v25 = vpack.c.bf16 %v3453_v26, %v3450_v47  ;;  %6039 = vmatpush3.bf16.msra.mxu1 %v6457_v24 }
 0x863   :  { %6040 = vmatprep.subr.bf16.mxu1 %v6458_v31 }
 0x864   :  { %6024 = vmatprep.mubr.bf16.mxu1 %v3607_v25  ;;  %v6472_v25 = vld [vmem:[%s8719_s12 + $0xe0] sm:$0xff]  }
 0x865   :  { %6025 = vmatmul.mubr.bf16.gmra.mrb[108].mxu1 %v3608_v28  ;;  %v6471_v28 = vld [vmem:[%s8719_s12 + $0xd8] sm:$0xff]  }
 0x866   :  { %6041 = vmatpush3.bf16.msra.mxu1 %v6458_v31  ;;  %6044 = vmatprep.mubr.bf16.mxu1 %v3593_v4  ;;  %v8270_v48 = vpop.f32.mrb[128].mxu0  ;;  %v6462_v4 = vld [vmem:[%s8719_s12 + $0x90] sm:$0xff]  }
 0x867   :  { %6042 = vmatprep.subr.bf16.mxu1 %v6459_v11  ;;  %v3466_v34 = vpop.f32.mrb[129].mxu0 }
 0x868   :  { %v8275_v55 = vpop.f32.mrb[130].mxu0 }
 0x869   :  { %v3610_v16 = vpack.c.bf16 %v8275_v55, %v8270_v48  ;;  %v3469_v62 = vpop.f32.mrb[131].mxu0 }
 0x86a   :  { %6043 = vmatpush3.bf16.msra.mxu1 %v6459_v11  ;;  %v3609_v3 = vpack.c.bf16 %v3469_v62, %v3466_v34 }
 0x86b   :  { %6060 = vmatprep.subr.bf16.mxu1 %v6460_v63 }
 0x86d   :  { %6045 = vmatmul.mubr.bf16.vlgmr.msra.gmra.mrb[96].mxu1 %v3594_v0  ;;  %v6463_v0 = vld [vmem:[%s8719_s12 + $0x98] sm:$0xff]  }
 0x86e   :  { %6048 = vmatprep.mubr.bf16.mxu1 %v3595_v10  ;;  %6061 = vmatpush3.bf16.msra.mxu1 %v6460_v63  ;;  %v8288_v8 = vpop.f32.mrb[132].mxu0 }
 0x86f   :  { %6062 = vmatprep.subr.bf16.mxu1 %v6461_v49  ;;  %v3482_v59 = vpop.f32.mrb[133].mxu0 }
 0x870   :  { %v8293_v51 = vpop.f32.mrb[134].mxu0 }
 0x871   :  { %v3612_v38 = vpack.c.bf16 %v8293_v51, %v8288_v8  ;;  %v3485_v40 = vpop.f32.mrb[135].mxu0 }
 0x872   :  { %6063 = vmatpush3.bf16.msra.mxu1 %v6461_v49  ;;  %v3611_v21 = vpack.c.bf16 %v3485_v40, %v3482_v59  ;;  %v6474_v49 = vld [vmem:[%s8719_s12 + $0xf0] sm:$0xff]  }
 0x873   :  { %6064 = vmatprep.subr.bf16.mxu1 %v6462_v4 }
 0x875   :  { %6049 = vmatmul.mubr.bf16.gmra.mrb[100].mxu1 %v3596_v17  ;;  %v6465_v17 = vld [vmem:[%s8719_s12 + $0xa8] sm:$0xff]  }
 0x876   :  { %6052 = vmatprep.mubr.bf16.mxu1 %v3597_v19  ;;  %6065 = vmatpush3.bf16.msra.mxu1 %v6462_v4  ;;  %v8306_v15 = vpop.f32.mrb[136].mxu0 }
 0x877   :  { %6066 = vmatprep.subr.bf16.mxu1 %v6463_v0  ;;  %v3498_v10 = vpop.f32.mrb[137].mxu0 }
 0x878   :  { %v8311_v33 = vpop.f32.mrb[138].mxu0 }
 0x879   :  { %v3614_v2 = vpack.c.bf16 %v8311_v33, %v8306_v15  ;;  %v3501_v18 = vpop.f32.mrb[139].mxu0 }
 0x87a   :  { %6067 = vmatpush3.bf16.msra.mxu1 %v6463_v0  ;;  %v3613_v35 = vpack.c.bf16 %v3501_v18, %v3498_v10 }
 0x87b   :  { %6068 = vmatprep.subr.bf16.mxu1 %v6464_v22 }
 0x87d   :  { %6053 = vmatmul.mubr.bf16.gmra.mrb[104].mxu1 %v3598_v29  ;;  %v6467_v29 = vld [vmem:[%s8719_s12 + $0xb8] sm:$0xff]  }
 0x87e   :  { %6056 = vmatprep.mubr.bf16.mxu1 %v3599_v60  ;;  %6069 = vmatpush3.bf16.msra.mxu1 %v6464_v22  ;;  %v8324_v42 = vpop.f32.mrb[140].mxu0 }
 0x87f   :  { %6070 = vmatprep.subr.bf16.mxu1 %v6465_v17  ;;  %v3514_v19 = vpop.f32.mrb[141].mxu0 }
 0x880   :  { %v8329_v61 = vpop.f32.mrb[142].mxu0 }
 0x881   :  { %v3616_v7 = vpack.c.bf16 %v8329_v61, %v8324_v42  ;;  %v3517_v56 = vpop.f32.mrb[143].mxu0 }
 0x882   :  { %6071 = vmatpush3.bf16.msra.mxu1 %v6465_v17  ;;  %v3615_v53 = vpack.c.bf16 %v3517_v56, %v3514_v19 }
 0x883   :  { %6072 = vmatprep.subr.bf16.mxu1 %v6466_v46 }
 0x885   :  { %6057 = vmatmul.mubr.bf16.gmra.mrb[108].mxu1 %v3600_v57  ;;  %v6470_v57 = vld [vmem:[%s8719_s12 + $0xd0] sm:$0xff]  }
 0x886   :  { %6073 = vmatpush3.bf16.msra.mxu1 %v6466_v46  ;;  %6076 = vmatprep.mubr.bf16.mxu1 %v3609_v3  ;;  %v8339_v50 = vpop.f32.mrb[144].mxu0 }
 0x887   :  { %6074 = vmatprep.subr.bf16.mxu1 %v6467_v29  ;;  %v3530_v60 = vpop.f32.mrb[145].mxu0 }
 0x888   :  { %v5983_v37 = vpop.f32.mrb[146].mxu0 }
 0x889   :  { %v3618_v12 = vpack.c.bf16 %v5983_v37, %v8339_v50  ;;  %v3533_v1 = vpop.f32.mrb[147].mxu0 }
 0x88a   :  { %6075 = vmatpush3.bf16.msra.mxu1 %v6467_v29  ;;  %v3617_v36 = vpack.c.bf16 %v3533_v1, %v3530_v60 }
 0x88b   :  { %6092 = vmatprep.subr.bf16.mxu1 %v6468_v44 }
 0x88d   :  { %6077 = vmatmul.mubr.bf16.vlgmr.msra.gmra.mrb[96].mxu1 %v3610_v16  ;;  %v6473_v16 = vld [vmem:[%s8719_s12 + $0xe8] sm:$0xff]  }
 0x88e   :  { %6093 = vmatpush3.bf16.msra.mxu1 %v6468_v44  ;;  %6080 = vmatprep.mubr.bf16.mxu1 %v3611_v21  ;;  %v5986_v13 = vpop.f32.mrb[148].mxu0 }
 0x88f   :  { %6094 = vmatprep.subr.bf16.mxu1 %v6469_v14  ;;  %v3546_v24 = vpop.f32.mrb[149].mxu0 }
 0x890   :  { %v5987_v43 = vpop.f32.mrb[150].mxu0 }
 0x891   :  { %v3620_v47 = vpack.c.bf16 %v5987_v43, %v5986_v13  ;;  %v3549_v31 = vpop.f32.mrb[151].mxu0 }
 0x892   :  { %6095 = vmatpush3.bf16.msra.mxu1 %v6469_v14  ;;  %v3619_v23 = vpack.c.bf16 %v3549_v31, %v3546_v24 }
 0x893   :  { %6096 = vmatprep.subr.bf16.mxu1 %v6470_v57 }
 0x895   :  { %6081 = vmatmul.mubr.bf16.gmra.mrb[100].mxu1 %v3612_v38  ;;  %v6475_v38 = vld [vmem:[%s8719_s12 + $0xf8] sm:$0xff]  }
 0x896   :  { %6097 = vmatpush3.bf16.msra.mxu1 %v6470_v57  ;;  %6084 = vmatprep.mubr.bf16.mxu1 %v3613_v35  ;;  %v5990_v26 = vpop.f32.mrb[152].mxu0 }
 0x897   :  { %6098 = vmatprep.subr.bf16.mxu1 %v6471_v28  ;;  %v3562_v11 = vpop.f32.mrb[153].mxu0 }
 0x898   :  { %v5991_v48 = vpop.f32.mrb[154].mxu0 }
 0x899   :  { %v3622_v63 = vpack.c.bf16 %v5991_v48, %v5990_v26  ;;  %v3565_v34 = vpop.f32.mrb[155].mxu0 }
 0x89a   :  { %6099 = vmatpush3.bf16.msra.mxu1 %v6471_v28  ;;  %v3621_v55 = vpack.c.bf16 %v3565_v34, %v3562_v11 }
 0x89b   :  { %6100 = vmatprep.subr.bf16.mxu1 %v6472_v25 }
 0x89d   :  { %6085 = vmatmul.mubr.bf16.gmra.mrb[104].mxu1 %v3614_v2 }
 0x89e   :  { %6101 = vmatpush3.bf16.msra.mxu1 %v6472_v25  ;;  %v5994_v62 = vpop.f32.mrb[156].mxu0  ;;  %6088 = vmatprep.mubr.bf16.mxu1 %v3615_v53 }
 0x89f   :  { %6102 = vmatprep.subr.bf16.mxu1 %v6473_v16  ;;  %v3578_v3 = vpop.f32.mrb[157].mxu0 }
 0x8a0   :  { %v5995_v8 = vpop.f32.mrb[158].mxu0 }
 0x8a1   :  { %v3624_v4 = vpack.c.bf16 %v5995_v8, %v5994_v62  ;;  %v3581_v59 = vpop.f32.mrb[159].mxu0 }
 0x8a2   :  { %6103 = vmatpush3.bf16.msra.mxu1 %v6473_v16  ;;  %v3623_v51 = vpack.c.bf16 %v3581_v59, %v3578_v3 }
 0x8a3   :  { %6104 = vmatprep.subr.bf16.mxu1 %v6474_v49 }
 0x8a5   :  { %6089 = vmatmul.mubr.bf16.gmra.mrb[108].mxu1 %v3616_v7 }
 0x8a6   :  { %6105 = vmatpush3.bf16.msra.mxu1 %v6474_v49  ;;  %v8366_v40 = vpop.f32.mrb[160].mxu0  ;;  %6108 = vmatprep.mubr.bf16.mxu1 %v3617_v36 }
 0x8a7   :  { %v8368_v21 = vpop.f32.mrb[161].mxu0  ;;  %6106 = vmatprep.subr.bf16.mxu1 %v6475_v38 }
 0x8a8   :  { %v8370_v0 = vpop.f32.mrb[162].mxu0 }
 0x8a9   :  { %v8372_v15 = vpop.f32.mrb[163].mxu0 }
 0x8aa   :  { %6107 = vmatpush3.bf16.msra.mxu1 %v6475_v38 }
 0x8ab   :  { %6156 = vmatprep.subr.bf16.mxu1 %v8020_v54 }
 0x8ad   :  { %6109 = vmatmul.mubr.bf16.vlgmr.msra.gmra.mrb[96].mxu1 %v3618_v12 }
 0x8ae   :  { %6164 = vmatpush3.bf16.msra.mxu1 %v8020_v54  ;;  %v8376_v22 = vpop.f32.mrb[164].mxu0  ;;  %6112 = vmatprep.mubr.bf16.mxu1 %v3619_v23 }
 0x8af   :  { %v8378_v10 = vpop.f32.mrb[165].mxu0  ;;  %6157 = vmatprep.subr.bf16.mxu1 %v8027_v39 }
 0x8b0   :  { %v8381_v33 = vpop.f32.mrb[166].mxu0 }
 0x8b1   :  { %v8383_v2 = vpop.f32.mrb[167].mxu0 }
 0x8b2   :  { %6165 = vmatpush3.bf16.msra.mxu1 %v8027_v39 }
 0x8b3   :  { %6158 = vmatprep.subr.bf16.mxu1 %v8040_v32 }
 0x8b5   :  { %6113 = vmatmul.mubr.bf16.gmra.mrb[100].mxu1 %v3620_v47 }
 0x8b6   :  { %6166 = vmatpush3.bf16.msra.mxu1 %v8040_v32  ;;  %6116 = vmatprep.mubr.bf16.mxu1 %v3621_v55 }
 0x8b7   :  { %6159 = vmatprep.subr.bf16.mxu1 %v8047_v6 }
 0x8ba   :  { %6167 = vmatpush3.bf16.msra.mxu1 %v8047_v6 }
 0x8bb   :  { %6160 = vmatprep.subr.bf16.mxu1 %v8060_v41 }
 0x8bd   :  { %6117 = vmatmul.mubr.bf16.gmra.mrb[104].mxu1 %v3622_v63 }
 0x8be   :  { %6168 = vmatpush3.bf16.msra.mxu1 %v8060_v41  ;;  %6120 = vmatprep.mubr.bf16.mxu1 %v3623_v51 }
 0x8bf   :  { %6161 = vmatprep.subr.bf16.mxu1 %v8067_v5 }
 0x8c2   :  { %6169 = vmatpush3.bf16.msra.mxu1 %v8067_v5 }
 0x8c3   :  { %6162 = vmatprep.subr.bf16.mxu1 %v8080_v45 }
 0x8c5   :  { %6121 = vmatmul.mubr.bf16.gmra.mrb[108].mxu1 %v3624_v4 }
 0x8c6   :  { %6170 = vmatpush3.bf16.msra.mxu1 %v8080_v45  ;;  %6148 = vmatprep.mubr.bf16.mxu1 %v7987_v20 }
 0x8c7   :  { %6163 = vmatprep.subr.bf16.mxu1 %v8087_v30 }
 0x8ca   :  { %6171 = vmatpush3.bf16.msra.mxu1 %v8087_v30 }
 0x8cd   :  { %6149 = vmatmul.mubr.bf16.vlgmr.msra.gmra.mrb[112].mxu1 %v7999_v9 }
 0x8ce   :  { %6152 = vmatprep.mubr.bf16.mxu1 %v8008_v52 }
 0x8d5   :  { %6153 = vmatmul.mubr.bf16.gmra.mrb[116].mxu1 %v8013_v27 }
 0x980   :  { %v6110_v54 = vpop.f32.mrb[96].mxu1 }
 0x981   :  { %4309 = vadd.xlane.f32.xlu0 %v6110_v54  ;;  %v4225_v39 = vpop.f32.mrb[97].mxu1 }
 0x982   :  { %v6111_v32 = vpop.f32.mrb[98].mxu1 }
 0x983   :  { %4311 = vadd.xlane.f32.xlu1 %v6111_v32  ;;  %v4228_v6 = vpop.f32.mrb[99].mxu1 }
 0x985   :  { %4305 = vadd.xlane.f32.xlu0 %v4225_v39 }
 0x987   :  { %4307 = vadd.xlane.f32.xlu1 %v4228_v6 }
 0x988   :  { %v8402_v41 = vpop.f32.mrb[100].mxu1 }
 0x989   :  { %4317 = vadd.xlane.f32.xlu0 %v8402_v41  ;;  %v8405_v20 = vpop.f32.mrb[101].mxu1 }
 0x98a   :  { %v8407_v5 = vpop.f32.mrb[102].mxu1 }
 0x98b   :  { %4319 = vadd.xlane.f32.xlu1 %v8407_v5  ;;  %v8410_v9 = vpop.f32.mrb[103].mxu1 }
 0x98d   :  { %4313 = vadd.xlane.f32.xlu0 %v8405_v20 }
 0x98f   :  { %4315 = vadd.xlane.f32.xlu1 %v8410_v9 }
 0x990   :  { %v8414_v52 = vpop.f32.mrb[104].mxu1 }
 0x991   :  { %4325 = vadd.xlane.f32.xlu0 %v8414_v52  ;;  %v8417_v27 = vpop.f32.mrb[105].mxu1 }
 0x992   :  { %v8419_v45 = vpop.f32.mrb[106].mxu1 }
 0x993   :  { %4327 = vadd.xlane.f32.xlu1 %v8419_v45  ;;  %v8422_v30 = vpop.f32.mrb[107].mxu1 }
 0x995   :  { %4321 = vadd.xlane.f32.xlu0 %v8417_v27 }
 0x997   :  { %4323 = vadd.xlane.f32.xlu1 %v8422_v30 }
 0x998   :  { %v8426_v18 = vpop.f32.mrb[108].mxu1 }
 0x999   :  { %v8428_v35 = vpop.f32.mrb[109].mxu1 }
 0x99a   :  { %4329 = vadd.xlane.f32.xlu0 %v8428_v35  ;;  %v8431_v17 = vpop.f32.mrb[110].mxu1 }
 0x99b   :  { %v8433_v42 = vpop.f32.mrb[111].mxu1 }
 0x99c   :  { %4331 = vadd.xlane.f32.xlu1 %v8433_v42 }
 0x99e   :  { %4333 = vadd.xlane.f32.xlu0 %v8426_v18 }
 0x9a0   :  { %4335 = vadd.xlane.f32.xlu1 %v8431_v17  ;;  %v8438_v46 = vpop.f32.mrb[112].mxu1 }
 0x9a1   :  { %v8440_v19 = vpop.f32.mrb[113].mxu1 }
 0x9a2   :  { %v8442_v61 = vpop.f32.mrb[114].mxu1 }
 0x9a3   :  { %v8444_v7 = vpop.f32.mrb[115].mxu1 }
 0x9a8   :  { %v8446_v56 = vpop.f32.mrb[116].mxu1 }
 0x9a9   :  { %v8448_v53 = vpop.f32.mrb[117].mxu1 }
 0x9aa   :  { %v8450_v29 = vpop.f32.mrb[118].mxu1 }
 0x9ab   :  { %v8452_v50 = vpop.f32.mrb[119].mxu1 }
 0xa0e   :  { %v4310_v44 = vpop.xlane.xlu0 %4309 }
 0xa0f   :  { %v4339_v60 = vmul.f32 0.0625, %v4310_v44 }
 0xa10   :  { %v4312_v37 = vpop.xlane.xlu1 %4311 }
 0xa11   :  { %v4355_v12 = vsub.f32 %v6110_v54, %v4339_v60  ;;  %v4340_v1 = vmul.f32 0.0625, %v4312_v37 }
 0xa12   :  { %v4306_v36 = vpop.xlane.xlu0 %4305 }
 0xa13   :  { %v4356_v14 = vsub.f32 %v6111_v32, %v4340_v1  ;;  %v4337_v13 = vmul.f32 0.0625, %v4306_v36  ;;  %v8457_v57 = vsel %vm4304_vm1, %v4355_v12, 0.0 }
 0xa14   :  { %v4308_v24 = vpop.xlane.xlu1 %4307  ;;  %v4387_v43 = vmul.f32 %v8457_v57, %v8457_v57 }
 0xa15   :  { %v4353_v47 = vsub.f32 %v4225_v39, %v4337_v13  ;;  %v4338_v31 = vmul.f32 0.0625, %v4308_v24  ;;  %v8463_v23 = vsel %vm4304_vm1, %v4356_v14, 0.0 }
 0xa16   :  { %v4318_v28 = vpop.xlane.xlu0 %4317  ;;  %4405 = vadd.xlane.f32.xlu0 %v4387_v43  ;;  %v4388_v26 = vmul.f32 %v8463_v23, %v8463_v23 }
 0xa17   :  { %v4354_v25 = vsub.f32 %v4228_v6, %v4338_v31  ;;  %v4343_v11 = vmul.f32 0.0625, %v4318_v28  ;;  %v8469_v48 = vsel %vm4304_vm1, %v4353_v47, 0.0 }
 0xa18   :  { %v4320_v63 = vpop.xlane.xlu1 %4319  ;;  %4407 = vadd.xlane.f32.xlu1 %v4388_v26  ;;  %v4385_v34 = vmul.f32 %v8469_v48, %v8469_v48 }
 0xa19   :  { %v4359_v55 = vsub.f32 %v8402_v41, %v4343_v11  ;;  %v4344_v16 = vmul.f32 0.0625, %v4320_v63  ;;  %v8476_v62 = vsel %vm4304_vm1, %v4354_v25, 0.0 }
 0xa1a   :  { %v4314_v3 = vpop.xlane.xlu0 %4313  ;;  %4401 = vadd.xlane.f32.xlu0 %v4385_v34  ;;  %v4386_v49 = vmul.f32 %v8476_v62, %v8476_v62 }
 0xa1b   :  { %v4360_v8 = vsub.f32 %v8407_v5, %v4344_v16  ;;  %v4341_v4 = vmul.f32 0.0625, %v4314_v3  ;;  %v8483_v59 = vsel %vm4304_vm1, %v4359_v55, 0.0 }
 0xa1c   :  { %v4316_v51 = vpop.xlane.xlu1 %4315  ;;  %4403 = vadd.xlane.f32.xlu1 %v4386_v49  ;;  %v4391_v38 = vmul.f32 %v8483_v59, %v8483_v59 }
 0xa1d   :  { %v4357_v54 = vsub.f32 %v8405_v20, %v4341_v4  ;;  %v4342_v39 = vmul.f32 0.0625, %v4316_v51  ;;  %v8490_v32 = vsel %vm4304_vm1, %v4360_v8, 0.0 }
 0xa1e   :  { %v4326_v6 = vpop.xlane.xlu0 %4325  ;;  %4413 = vadd.xlane.f32.xlu0 %v4391_v38  ;;  %v4392_v41 = vmul.f32 %v8490_v32, %v8490_v32 }
 0xa1f   :  { %v4358_v5 = vsub.f32 %v8410_v9, %v4342_v39  ;;  %v4347_v44 = vmul.f32 0.0625, %v4326_v6  ;;  %v8497_v60 = vsel %vm4304_vm1, %v4357_v54, 0.0 }
 0xa20   :  { %v4328_v37 = vpop.xlane.xlu1 %4327  ;;  %4415 = vadd.xlane.f32.xlu1 %v4392_v41  ;;  %v4389_v20 = vmul.f32 %v8497_v60, %v8497_v60 }
 0xa21   :  { %v4363_v12 = vsub.f32 %v8414_v52, %v4347_v44  ;;  %v4348_v1 = vmul.f32 0.0625, %v4328_v37  ;;  %v8504_v36 = vsel %vm4304_vm1, %v4358_v5, 0.0 }
 0xa22   :  { %v4322_v14 = vpop.xlane.xlu0 %4321  ;;  %4409 = vadd.xlane.f32.xlu0 %v4389_v20  ;;  %v4390_v9 = vmul.f32 %v8504_v36, %v8504_v36 }
 0xa23   :  { %v4364_v13 = vsub.f32 %v8419_v45, %v4348_v1  ;;  %v4345_v24 = vmul.f32 0.0625, %v4322_v14  ;;  %v8511_v43 = vsel %vm4304_vm1, %v4363_v12, 0.0 }
 0xa24   :  { %v4324_v47 = vpop.xlane.xlu1 %4323  ;;  %4411 = vadd.xlane.f32.xlu1 %v4390_v9  ;;  %v4395_v52 = vmul.f32 %v8511_v43, %v8511_v43 }
 0xa25   :  { %v4361_v31 = vsub.f32 %v8417_v27, %v4345_v24  ;;  %v4346_v28 = vmul.f32 0.0625, %v4324_v47  ;;  %v8518_v26 = vsel %vm4304_vm1, %v4364_v13, 0.0 }
 0xa26   :  { %4421 = vadd.xlane.f32.xlu0 %v4395_v52  ;;  %v4396_v45 = vmul.f32 %v8518_v26, %v8518_v26 }
 0xa27   :  { %v4362_v25 = vsub.f32 %v8422_v30, %v4346_v28  ;;  %v4330_v11 = vpop.xlane.xlu0 %4329  ;;  %v8525_v63 = vsel %vm4304_vm1, %v4361_v31, 0.0 }
 0xa28   :  { %v4349_v34 = vmul.f32 0.0625, %v4330_v11  ;;  %4423 = vadd.xlane.f32.xlu1 %v4396_v45  ;;  %v4393_v27 = vmul.f32 %v8525_v63, %v8525_v63 }
 0xa29   :  { %v4332_v55 = vpop.xlane.xlu1 %4331  ;;  %v8531_v16 = vsel %vm4304_vm1, %v4362_v25, 0.0 }
 0xa2a   :  { %v4365_v3 = vsub.f32 %v8428_v35, %v4349_v34  ;;  %v4350_v49 = vmul.f32 0.0625, %v4332_v55  ;;  %4417 = vadd.xlane.f32.xlu0 %v4393_v27  ;;  %v4394_v30 = vmul.f32 %v8531_v16, %v8531_v16 }
 0xa2b   :  { %v4334_v8 = vpop.xlane.xlu0 %4333 }
 0xa2c   :  { %v4366_v4 = vsub.f32 %v8433_v42, %v4350_v49  ;;  %v4351_v51 = vmul.f32 0.0625, %v4334_v8  ;;  %4419 = vadd.xlane.f32.xlu1 %v4394_v30  ;;  %v8539_v38 = vsel %vm4304_vm1, %v4365_v3, 0.0 }
 0xa2d   :  { %v4336_v54 = vpop.xlane.xlu1 %4335  ;;  %v4397_v39 = vmul.f32 %v8539_v38, %v8539_v38 }
 0xa2e   :  { %v4367_v35 = vsub.f32 %v8426_v18, %v4351_v51  ;;  %v4352_v6 = vmul.f32 0.0625, %v4336_v54  ;;  %v8546_v41 = vsel %vm4304_vm1, %v4366_v4, 0.0  ;;  %v8566_v4 = vld [vmem:[%s8720_s15] ss:$0 sm:$0xff] }
 0xa2f   :  { %4425 = vadd.xlane.f32.xlu0 %v4397_v39  ;;  %v4398_v42 = vmul.f32 %v8546_v41, %v8546_v41 }
 0xa30   :  { %v4368_v5 = vsub.f32 %v8431_v17, %v4352_v6  ;;  %v8553_v44 = vsel %vm4304_vm1, %v4367_v35, 0.0 }
 0xa31   :  { %4427 = vadd.xlane.f32.xlu1 %v4398_v42  ;;  %v4399_v37 = vmul.f32 %v8553_v44, %v8553_v44  ;;  %v8572_v42 = vld [vmem:[%s8721_s16] ss:$0 sm:$0xff] }
 0xa32   :  { %v8559_v18 = vsel %vm4304_vm1, %v4368_v5, 0.0 }
 0xa33   :  { %4429 = vadd.xlane.f32.xlu0 %v4399_v37  ;;  %v4400_v20 = vmul.f32 %v8559_v18, %v8559_v18 }
 0xa35   :  { %4431 = vadd.xlane.f32.xlu1 %v4400_v20 }
 0xaa3   :  { %v4406_v12 = vpop.xlane.xlu0 %4405 }
 0xaa4   :  { %v4435_v1 = vmul.f32 0.0625, %v4406_v12 }
 0xaa5   :  { %v4408_v17 = vpop.xlane.xlu1 %4407 }
 0xaa6   :  { %v4451_v14 = vadd.f32 1e-05, %v4435_v1  ;;  %v4436_v9 = vmul.f32 0.0625, %v4408_v17 }
 0xaa7   :  { %v4402_v13 = vpop.xlane.xlu0 %4401 }
 0xaa8   :  { %6540 = vrsqrt.f32 %v4451_v14  ;;  %v4452_v24 = vadd.f32 1e-05, %v4436_v9  ;;  %v4433_v47 = vmul.f32 0.0625, %v4402_v13 }
 0xaa9   :  { %v4404_v52 = vpop.xlane.xlu1 %4403 }
 0xaaa   :  { %6542 = vrsqrt.f32 %v4452_v24  ;;  %v4449_v31 = vadd.f32 1e-05, %v4433_v47  ;;  %v4434_v58 = vmul.f32 0.0625, %v4404_v52 }
 0xaab   :  { %v4414_v28 = vpop.xlane.xlu0 %4413 }
 0xaac   :  { %6544 = vrsqrt.f32 %v4449_v31  ;;  %v4450_v45 = vadd.f32 1e-05, %v4434_v58  ;;  %v4439_v25 = vmul.f32 0.0625, %v4414_v28 }
 0xaad   :  { %v4416_v11 = vpop.xlane.xlu1 %4415 }
 0xaae   :  { %6546 = vrsqrt.f32 %v4450_v45  ;;  %v4455_v34 = vadd.f32 1e-05, %v4439_v25  ;;  %v4440_v27 = vmul.f32 0.0625, %v4416_v11 }
 0xaaf   :  { %v4410_v55 = vpop.xlane.xlu0 %4409 }
 0xab0   :  { %6548 = vrsqrt.f32 %v4455_v34  ;;  %v4456_v3 = vadd.f32 1e-05, %v4440_v27  ;;  %v4437_v49 = vmul.f32 0.0625, %v4410_v55 }
 0xab1   :  { %v4412_v30 = vpop.xlane.xlu1 %4411 }
 0xab2   :  { %v6541_v8 = vpop.eup %6540  ;;  %6550 = vrsqrt.f32 %v4456_v3  ;;  %v4453_v51 = vadd.f32 1e-05, %v4437_v49  ;;  %v4438_v54 = vmul.f32 0.0625, %v4412_v30 }
 0xab3   :  { %v4483_v39 = vmul.f32 %v6541_v8, %v8457_v57  ;;  %v4422_v35 = vpop.xlane.xlu0 %4421  ;;  %v8579_v57 = vld [vmem:[%s8722_s14] ss:$0 sm:$0xff] }
 0xab4   :  { %v6543_v6 = vpop.eup %6542  ;;  %6552 = vrsqrt.f32 %v4453_v51  ;;  %v4454_v5 = vadd.f32 1e-05, %v4438_v54  ;;  %v4443_v37 = vmul.f32 0.0625, %v4422_v35 }
 0xab5   :  { %v4506_v20 = vmul.f32 %v8566_v4, %v4483_v39  ;;  %v4484_v12 = vmul.f32 %v6543_v6, %v8463_v23  ;;  %v4424_v1 = vpop.xlane.xlu1 %4423 }
 0xab6   :  { %v6545_v17 = vpop.eup %6544  ;;  %6554 = vrsqrt.f32 %v4454_v5  ;;  %v4459_v14 = vadd.f32 1e-05, %v4443_v37  ;;  %v4444_v9 = vmul.f32 0.0625, %v4424_v1 }
 0xab7   :  { %v4529_v13 = vadd.f32 %v8572_v42, %v4506_v20  ;;  %v4507_v24 = vmul.f32 %v8566_v4, %v4484_v12  ;;  %v4481_v47 = vmul.f32 %v6545_v17, %v8469_v48  ;;  %v4418_v52 = vpop.xlane.xlu0 %4417 }
 0xab8   :  { %v6547_v31 = vpop.eup %6546  ;;  %6556 = vrsqrt.f32 %v4459_v14  ;;  %v4460_v23 = vadd.f32 1e-05, %v4444_v9  ;;  %v4441_v58 = vmul.f32 0.0625, %v4418_v52 }
 0xab9   :  { %v4552_v28 = vadd.f32 %v8579_v57, %v4529_v13  ;;  %v4530_v45 = vadd.f32 %v8572_v42, %v4507_v24  ;;  %v4504_v25 = vmul.f32 %v8566_v4, %v4481_v47  ;;  %v4482_v11 = vmul.f32 %v6547_v31, %v8476_v62  ;;  %v4420_v34 = vpop.xlane.xlu1 %4419 }
 0xaba   :  { %v6549_v27 = vpop.eup %6548  ;;  %6558 = vrsqrt.f32 %v4460_v23  ;;  %v4457_v55 = vadd.f32 1e-05, %v4441_v58  ;;  %v4442_v3 = vmul.f32 0.0625, %v4420_v34 }
 0xabb   :  { %v4729_v48 = vadd.f32 %v8366_v40, %v4552_v28  ;;  %v4553_v49 = vadd.f32 %v8579_v57, %v4530_v45  ;;  %v4527_v30 = vadd.f32 %v8572_v42, %v4504_v25  ;;  %v4505_v8 = vmul.f32 %v8566_v4, %v4482_v11 }
 0xabc   :  { %v6551_v51 = vpop.eup %6550  ;;  %v4487_v54 = vmul.f32 %v6549_v27, %v8483_v59  ;;  %6560 = vrsqrt.f32 %v4457_v55  ;;  %v4458_v39 = vadd.f32 1e-05, %v4442_v3  ;;  %v4426_v35 = vpop.xlane.xlu0 %4425 }
 0xabd   :  { %4745 = vst [vmem:[%s8723_s17 + $0x10] sm:$0xff] %v4729_v48  ;;  %v4730_v62 = vadd.f32 %v8370_v0, %v4553_v49  ;;  %v4550_v40 = vadd.f32 %v8579_v57, %v4527_v30  ;;  %v4528_v6 = vadd.f32 %v8572_v42, %v4505_v8  ;;  %v4488_v5 = vmul.f32 %v6551_v51, %v8490_v32 }
 0xabe   :  { %v6553_v37 = vpop.eup %6552  ;;  %v4510_v20 = vmul.f32 %v8566_v4, %v4487_v54  ;;  %6562 = vrsqrt.f32 %v4458_v39  ;;  %v4445_v59 = vmul.f32 0.0625, %v4426_v35  ;;  %v4428_v12 = vpop.xlane.xlu1 %4427 }
 0xabf   :  { %4746 = vst [vmem:[%s8723_s17 + $0x18] sm:$0xff] %v4730_v62  ;;  %v4727_v1 = vadd.f32 %v8368_v21, %v4550_v40  ;;  %v4551_v0 = vadd.f32 %v8579_v57, %v4528_v6  ;;  %v4511_v17 = vmul.f32 %v8566_v4, %v4488_v5  ;;  %v4485_v14 = vmul.f32 %v6553_v37, %v8497_v60 }
 0xac0   :  { %v6555_v9 = vpop.eup %6554  ;;  %v4533_v32 = vadd.f32 %v8572_v42, %v4510_v20  ;;  %v4461_v13 = vadd.f32 1e-05, %v4445_v59  ;;  %v4446_v24 = vmul.f32 0.0625, %v4428_v12  ;;  %v4430_v47 = vpop.xlane.xlu0 %4429 }
 0xac1   :  { %4743 = vst [vmem:[%s8723_s17] sm:$0xff] %v4727_v1  ;;  %v4728_v52 = vadd.f32 %v8372_v15, %v4551_v0  ;;  %v4534_v21 = vadd.f32 %v8572_v42, %v4511_v17  ;;  %v4508_v31 = vmul.f32 %v8566_v4, %v4485_v14  ;;  %v4486_v23 = vmul.f32 %v6555_v9, %v8504_v36 }
 0xac2   :  { %v6557_v58 = vpop.eup %6556  ;;  %v4556_v60 = vadd.f32 %v8579_v57, %v4533_v32  ;;  %6564 = vrsqrt.f32 %v4461_v13  ;;  %v4462_v28 = vadd.f32 1e-05, %v4446_v24  ;;  %v4447_v45 = vmul.f32 0.0625, %v4430_v47  ;;  %v4432_v25 = vpop.xlane.xlu1 %4431 }
 0xac3   :  { %4744 = vst [vmem:[%s8723_s17 + $0x8] sm:$0xff] %v4728_v52  ;;  %v4557_v11 = vadd.f32 %v8579_v57, %v4534_v21  ;;  %v4531_v15 = vadd.f32 %v8572_v42, %v4508_v31  ;;  %v4509_v34 = vmul.f32 %v8566_v4, %v4486_v23  ;;  %v4491_v27 = vmul.f32 %v6557_v58, %v8511_v43 }
 0xac4   :  { %v6559_v36 = vpop.eup %6558  ;;  %v4733_v55 = vadd.f32 %v8376_v22, %v4556_v60  ;;  %6566 = vrsqrt.f32 %v4462_v28  ;;  %v4463_v3 = vadd.f32 1e-05, %v4447_v45  ;;  %v4448_v48 = vmul.f32 0.0625, %v4432_v25 }
 0xac5   :  { %v4734_v49 = vadd.f32 %v8381_v33, %v4557_v11  ;;  %v4554_v30 = vadd.f32 %v8579_v57, %v4531_v15  ;;  %v4532_v8 = vadd.f32 %v8572_v42, %v4509_v34  ;;  %v4514_v51 = vmul.f32 %v8566_v4, %v4491_v27 }
 0xac6   :  { %v6561_v54 = vpop.eup %6560  ;;  %4749 = vst [vmem:[%s8723_s17 + $0x30] sm:$0xff] %v4733_v55  ;;  %v4492_v43 = vmul.f32 %v6559_v36, %v8518_v26  ;;  %6568 = vrsqrt.f32 %v4463_v3  ;;  %v4464_v22 = vadd.f32 1e-05, %v4448_v48 }
 0xac7   :  { %4750 = vst [vmem:[%s8723_s17 + $0x38] sm:$0xff] %v4734_v49  ;;  %v4731_v33 = vadd.f32 %v8378_v10, %v4554_v30  ;;  %v4555_v39 = vadd.f32 %v8579_v57, %v4532_v8  ;;  %v4537_v35 = vadd.f32 %v8572_v42, %v4514_v51  ;;  %v4489_v62 = vmul.f32 %v6561_v54, %v8525_v63 }
 0xac8   :  { %v6563_v40 = vpop.eup %6562  ;;  %v4515_v6 = vmul.f32 %v8566_v4, %v4492_v43  ;;  %6570 = vrsqrt.f32 %v4464_v22 }
 0xac9   :  { %4747 = vst [vmem:[%s8723_s17 + $0x20] sm:$0xff] %v4731_v33  ;;  %v4732_v26 = vadd.f32 %v8383_v2, %v4555_v39  ;;  %v4560_v5 = vadd.f32 %v8579_v57, %v4537_v35  ;;  %v4512_v10 = vmul.f32 %v8566_v4, %v4489_v62  ;;  %v4490_v37 = vmul.f32 %v6563_v40, %v8531_v16 }
 0xaca   :  { %v4538_v20 = vadd.f32 %v8572_v42, %v4515_v6 }
 0xacb   :  { %4748 = vst [vmem:[%s8723_s17 + $0x28] sm:$0xff] %v4732_v26  ;;  %v4737_v63 = vadd.f32 %v8438_v46, %v4560_v5  ;;  %v4535_v59 = vadd.f32 %v8572_v42, %v4512_v10  ;;  %v4513_v12 = vmul.f32 %v8566_v4, %v4490_v37 }
 0xacc   :  { %v6565_v1 = vpop.eup %6564  ;;  %v4561_v2 = vadd.f32 %v8579_v57, %v4538_v20 }
 0xacd   :  { %4753 = vst [vmem:[%s8723_s17 + $0x50] sm:$0xff] %v4737_v63  ;;  %v4558_v16 = vadd.f32 %v8579_v57, %v4535_v59  ;;  %v4536_v0 = vadd.f32 %v8572_v42, %v4513_v12  ;;  %v4493_v17 = vmul.f32 %v6565_v1, %v8539_v38 }
 0xace   :  { %v6567_v14 = vpop.eup %6566  ;;  %v4738_v46 = vadd.f32 %v8442_v61, %v4561_v2 }
 0xacf   :  { %v4735_v9 = vadd.f32 %v8440_v19, %v4558_v16  ;;  %v4559_v32 = vadd.f32 %v8579_v57, %v4536_v0  ;;  %v4516_v13 = vmul.f32 %v8566_v4, %v4493_v17  ;;  %v4494_v24 = vmul.f32 %v6567_v14, %v8546_v41 }
 0xad0   :  { %v6569_v47 = vpop.eup %6568  ;;  %4754 = vst [vmem:[%s8723_s17 + $0x58] sm:$0xff] %v4738_v46 }
 0xad1   :  { %4751 = vst [vmem:[%s8723_s17 + $0x40] sm:$0xff] %v4735_v9  ;;  %v4736_v38 = vadd.f32 %v8444_v7, %v4559_v32  ;;  %v4539_v61 = vadd.f32 %v8572_v42, %v4516_v13  ;;  %v4517_v19 = vmul.f32 %v8566_v4, %v4494_v24  ;;  %v4495_v52 = vmul.f32 %v6569_v47, %v8553_v44 }
 0xad2   :  { %v6571_v21 = vpop.eup %6570 }
 0xad3   :  { %4752 = vst [vmem:[%s8723_s17 + $0x48] sm:$0xff] %v4736_v38  ;;  %v4562_v41 = vadd.f32 %v8579_v57, %v4539_v61  ;;  %v4540_v31 = vadd.f32 %v8572_v42, %v4517_v19  ;;  %v4518_v23 = vmul.f32 %v8566_v4, %v4495_v52  ;;  %v4496_v58 = vmul.f32 %v6571_v21, %v8559_v18 }
 0xad5   :  { %v4739_v7 = vadd.f32 %v8448_v53, %v4562_v41  ;;  %v4563_v60 = vadd.f32 %v8579_v57, %v4540_v31  ;;  %v4541_v28 = vadd.f32 %v8572_v42, %v4518_v23  ;;  %v4519_v44 = vmul.f32 %v8566_v4, %v4496_v58 }
 0xad7   :  { %4755 = vst [vmem:[%s8723_s17 + $0x60] sm:$0xff] %v4739_v7  ;;  %v4740_v45 = vadd.f32 %v8452_v50, %v4563_v60  ;;  %v4564_v25 = vadd.f32 %v8579_v57, %v4541_v28  ;;  %v4542_v11 = vadd.f32 %v8572_v42, %v4519_v44 }
 0xad9   :  { %4756 = vst [vmem:[%s8723_s17 + $0x68] sm:$0xff] %v4740_v45  ;;  %v4741_v53 = vadd.f32 %v8446_v56, %v4564_v25  ;;  %v4565_v18 = vadd.f32 %v8579_v57, %v4542_v11 }
 0xadb   :  { %4757 = vst [vmem:[%s8723_s17 + $0x70] sm:$0xff] %v4741_v53  ;;  %v4742_v4 = vadd.f32 %v8450_v29, %v4565_v18 }
 0xadd   :  { %4758 = vst [vmem:[%s8723_s17 + $0x78] sm:$0xff] %v4742_v4 }

</bundles_post_ra>
